<compile_context>
chip_gen: v6e
topology: v6e:2x2x1
jax: 0.10.0
libtpu: 0.0.40
codegen_flags: <defaults>
</compile_context>

<pallas_src>
import functools

import numpy as np
import jax
import jax.numpy as jnp
from jax import lax
from jax.experimental import pallas as pl
from jax.experimental.pallas import tpu as pltpu


# ----------------------------------------------------------------------------
# Fused forward kernel (one pallas_call; grid over batch blocks)
# ----------------------------------------------------------------------------
def _fused_forward_kernel(x_ref, ae_ref, ao_ref,
                          t1_ref, t2_ref,
                          wx_ref, bx_ref, b1_ref, b2_ref,
                          wfx_ref, wc_ref, bf_ref, wo_ref, bo_ref,
                          out_ref, act2bm_ref, *, bb):
    """Row layouts (batch innermost, so H shifts are contiguous row slices):

       ae_ref / ao_ref : (15, bb, 128)  padded image rows, even / odd padded-H
                         parity; col = w_pad*4 + cin (w_pad padded to 32).
       conv1 activation: computed as two parity groups of shape (14*bb, 256):
                         group A = padded-H rows {2,4,...,28}
                         group B = padded-H rows {1,3,...,27}
                         col = ow*8 + c (ow padded to 32).
       conv2 activation: (14*bb, 256), row = oh2*bb + b, col = ow2*16 + c
                         (ow2 padded to 16); relaid out batch-major into
                         act2bm_ref (bb, 14*256) for the single head matmul.
    """
    B = bb
    f32 = jnp.float32
    bf16 = jnp.bfloat16

    # ---------- branch 1: x = ReLU(x @ Wx + bx) ----------
    x_act = jnp.maximum(
        jnp.dot(x_ref[...], wx_ref[...], preferred_element_type=f32)
        + bx_ref[...], 0.0).astype(bf16)                              # (B, 64)

    # ---------- conv1 3x3 / stride 1 / pad 1 (W-Toeplitz matmuls) ----------
    # Hoisted loads: each parity half of the padded image is read once.
    ae = ae_ref[...].reshape(15 * B, 128)   # padded H rows {0,2,...,28}
    ao = ao_ref[...].reshape(15 * B, 128)   # padded H rows {1,3,...,29}
    t1_0, t1_1, t1_2 = t1_ref[0], t1_ref[1], t1_ref[2]

    # Group A: conv1 outputs at even padded-H rows {2,...,28}  (oh = 1,3,...,27)
    accA = jnp.dot(ao[: 14 * B], t1_0, preferred_element_type=f32)
    accA = accA + jnp.dot(ae[B: 15 * B], t1_1, preferred_element_type=f32)
    accA = accA + jnp.dot(ao[B: 15 * B], t1_2, preferred_element_type=f32)
    actA = jnp.maximum(accA + b1_ref[...], 0.0).astype(bf16)          # (14B, 256)

    # Group B: conv1 outputs at odd padded-H rows {1,...,27}  (oh = 0,2,...,26)
    accB = jnp.dot(ae[: 14 * B], t1_0, preferred_element_type=f32)
    accB = accB + jnp.dot(ao[: 14 * B], t1_1, preferred_element_type=f32)
    accB = accB + jnp.dot(ae[B: 15 * B], t1_2, preferred_element_type=f32)
    actB = jnp.maximum(accB + b1_ref[...], 0.0).astype(bf16)          # (14B, 256)

    # ---------- conv2 3x3 / stride 2 / pad 1 ----------
    # H tap i needs conv1 padded rows 2*oh2 + i:
    #   i=0 -> {0,2,...,26} = [zero pad row ; group A rows 0..12]
    #   i=1 -> {1,3,...,27} = group B (all rows)
    #   i=2 -> {2,4,...,28} = group A (all rows)
    lhs0 = jnp.concatenate(
        [jnp.zeros((B, 256), bf16), actA[: 13 * B]], axis=0)          # (14B, 256)
    acc2 = jnp.dot(actB, t2_ref[1], preferred_element_type=f32)
    acc2 = acc2 + jnp.dot(lhs0, t2_ref[0], preferred_element_type=f32)
    acc2 = acc2 + jnp.dot(actA, t2_ref[2], preferred_element_type=f32)
    act2 = jnp.maximum(acc2 + b2_ref[...], 0.0).astype(bf16)          # (14B, 256)

    # ---------- relayout conv2 activation to batch-major (B, 14*256) ----------
    for oh2 in range(14):
        act2bm_ref[:, oh2 * 256:(oh2 + 1) * 256] = act2[oh2 * B:(oh2 + 1) * B, :]

    # ---------- fused head: one K=3584 matmul + tiny x-feature matmul ----------
    hacc = jnp.dot(act2bm_ref[...], wc_ref[...], preferred_element_type=f32)
    hacc = hacc + jnp.dot(x_act, wfx_ref[...], preferred_element_type=f32)
    h = jnp.maximum(hacc + bf_ref[...], 0.0).astype(bf16)             # (B, 128)
    out_ref[...] = (jnp.dot(h, wo_ref[...], preferred_element_type=f32)
                    + bo_ref[...])                                    # (B, 10)


def fused_forward(kparams, x, img_nchw, *, batch_block=64):
    """x: (B,256) f32, img_nchw: (B,3,28,28) f32 (PyTorch layout) -> (B,10) f32."""
    B = x.shape[0]
    assert B % 16 == 0, "kernel assumes B is a multiple of 16"
    bb = batch_block if (B % batch_block == 0 and batch_block <= B) else B
    nb = B // bb
    bf16 = jnp.bfloat16

    # Glue (cheap XLA ops): NCHW -> (H, B, W, C), zero-pad H by 1, W by 1 (+pad
    # to 32), channels 3 -> 4, flatten W*C to 128 lanes, cast to bf16 and split
    # into even / odd padded-H rows so all in-kernel H shifts are contiguous.
    a = jnp.transpose(img_nchw, (2, 0, 3, 1))                 # (28, B, 28, 3)
    a = jnp.pad(a, ((1, 1), (0, 0), (1, 3), (0, 1)))          # (30, B, 32, 4)
    a = a.reshape(30, B, 128).astype(bf16)
    a_even = a[0::2]                                          # (15, B, 128)
    a_odd = a[1::2]                                           # (15, B, 128)
    xb = x.astype(bf16)

    def full_spec(shape):
        n = len(shape)
        return pl.BlockSpec(shape, lambda i, _n=n: (0,) * _n)

    kernel = functools.partial(_fused_forward_kernel, bb=bb)
    return pl.pallas_call(
        kernel,
        out_shape=jax.ShapeDtypeStruct((B, 10), jnp.float32),
        grid=(nb,),
        in_specs=[
            pl.BlockSpec((bb, 256), lambda i: (i, 0)),         # x (bf16)
            pl.BlockSpec((15, bb, 128), lambda i: (0, i, 0)),  # a_even (bf16)
            pl.BlockSpec((15, bb, 128), lambda i: (0, i, 0)),  # a_odd  (bf16)
            full_spec((3, 128, 256)),                          # t1
            full_spec((3, 256, 256)),                          # t2
            full_spec((256, 64)),                              # wx
            full_spec((1, 64)),                                # bx
            full_spec((1, 256)),                               # b1row
            full_spec((1, 256)),                               # b2row
            full_spec((64, 128)),                              # wfx
            full_spec((3584, 128)),                            # wc_bm
            full_spec((1, 128)),                               # bf
            full_spec((128, 10)),                              # wo
            full_spec((1, 10)),                                # bo
        ],
        out_specs=pl.BlockSpec((bb, 10), lambda i: (i, 0)),
        scratch_shapes=[pltpu.VMEM((bb, 14 * 256), bf16)],     # batch-major act2
        compiler_params=pltpu.CompilerParams(
            dimension_semantics=("parallel",),
            vmem_limit_bytes=32 * 1024 * 1024),
    )(xb, a_even, a_odd,
      kparams["t1"], kparams["t2"],
      kparams["wx"], kparams["bx"], kparams["b1row"], kparams["b2row"],
      kparams["wfx"], kparams["wc_bm"], kparams["bf"],
      kparams["wo"], kparams["bo"])


# ----------------------------------------------------------------------------
# Parameters (deterministic, bf16-rounded) and offline preprocessing
# ----------------------------------------------------------------------------
def _uniform(key, shape, scale):
    return jax.random.uniform(key, shape, jnp.float32, -scale, scale)


def init_weights(key):
    def rnd(a):  # round to bf16 and back: kernel uses bf16 weights
        return a.astype(jnp.bfloat16).astype(jnp.float32)
    ks = jax.random.split(key, 10)
    w = {}
    s = 1.0 / np.sqrt(256.0)
    w["wx"], w["bx"] = rnd(_uniform(ks[0], (256, 64), s)), rnd(_uniform(ks[1], (64,), s))
    s = 1.0 / np.sqrt(27.0)
    w["w1"], w["b1"] = rnd(_uniform(ks[2], (3, 3, 3, 8), s)), rnd(_uniform(ks[3], (8,), s))
    s = 1.0 / np.sqrt(72.0)
    w["w2"], w["b2"] = rnd(_uniform(ks[4], (3, 3, 8, 16), s)), rnd(_uniform(ks[5], (16,), s))
    s = 1.0 / np.sqrt(3200.0)
    w["wf"], w["bf"] = rnd(_uniform(ks[6], (3200, 128), s)), rnd(_uniform(ks[7], (128,), s))
    s = 1.0 / np.sqrt(128.0)
    w["wo"], w["bo"] = rnd(_uniform(ks[8], (128, 10), s)), rnd(_uniform(ks[9], (10,), s))
    return w


def prepare_kernel_params(w):
    """Offline numpy prep (batch-size independent): Toeplitz conv matrices with
    lane-aligned padding, and the flatten-order-permuted fc_fuse weight."""
    w1 = np.asarray(w["w1"], np.float32)         # (kh, kw, cin=3,  cout=8)
    w2 = np.asarray(w["w2"], np.float32)         # (kh, kw, cin=8, cout=16)

    # conv1 W-taps: T1[i, wp*4+ci, ow*8+co] = W1[i, wp-ow, ci, co]
    # K padded 30*4 -> 32*4 = 128, N padded 28*8 -> 32*8 = 256 (pad rows/cols zero)
    t1 = np.zeros((3, 128, 256), np.float32)
    for j in range(3):
        for ow in range(28):
            wp = ow + j
            t1[:, wp * 4: wp * 4 + 3, ow * 8:(ow + 1) * 8] = w1[:, j]

    # conv2 W-taps (stride 2): T2[i, w*8+ci, ow2*16+co] = W2[i, w-(2*ow2-1), ci, co]
    # K = 256 (conv1 padded width), N padded 14*16 -> 16*16 = 256
    t2 = np.zeros((3, 256, 256), np.float32)
    for j in range(3):
        for ow2 in range(14):
            wi = 2 * ow2 - 1 + j
            if 0 <= wi <= 27:
                t2[:, wi * 8:(wi + 1) * 8, ow2 * 16:(ow2 + 1) * 16] = w2[:, j]

    # fc_fuse: split + permute rows from torch (C,H,W) flatten order to the
    # kernel's batch-major (oh2, ow2, c) layout, ow2 padded 14 -> 16.
    wf = np.asarray(w["wf"], np.float32)                               # (3200, 128)
    wfx = wf[:64]                                                      # x-feature rows
    wc = wf[64:].reshape(16, 14, 14, 128).transpose(1, 2, 0, 3)        # (oh2, ow2, c, 128)
    wc = np.pad(wc, ((0, 0), (0, 2), (0, 0), (0, 0)))                  # ow2: 14 -> 16
    wc_bm = wc.reshape(14 * 256, 128)                                  # (3584, 128)

    b1row = np.concatenate([np.tile(np.asarray(w["b1"], np.float32), 28),
                            np.zeros(32, np.float32)]).reshape(1, 256)
    b2row = np.concatenate([np.tile(np.asarray(w["b2"], np.float32), 14),
                            np.zeros(32, np.float32)]).reshape(1, 256)

    bf16 = jnp.bfloat16
    return dict(
        t1=jnp.asarray(t1, bf16), t2=jnp.asarray(t2, bf16),
        wx=jnp.asarray(w["wx"], bf16),
        bx=jnp.asarray(w["bx"], jnp.float32).reshape(1, 64),
        b1row=jnp.asarray(b1row), b2row=jnp.asarray(b2row),
        wfx=jnp.asarray(wfx, bf16), wc_bm=jnp.asarray(wc_bm, bf16),
        bf=jnp.asarray(w["bf"], jnp.float32).reshape(1, 128),
        wo=jnp.asarray(w["wo"], bf16),
        bo=jnp.asarray(w["bo"], jnp.float32).reshape(1, 10),
    )


# ----------------------------------------------------------------------------
# Pure-JAX reference (same weights, f32) to validate the fused kernel
# ----------------------------------------------------------------------------
def reference_forward(w, x, img_nchw):
    xh = jnp.maximum(x @ w["wx"] + w["bx"], 0.0)
    img = jnp.transpose(img_nchw, (0, 2, 3, 1))
    y1 = lax.conv_general_dilated(img, w["w1"], (1, 1), ((1, 1), (1, 1)),
                                  dimension_numbers=("NHWC", "HWIO", "NHWC"))
    y1 = jnp.maximum(y1 + w["b1"], 0.0)
    y2 = lax.conv_general_dilated(y1, w["w2"], (2, 2), ((1, 1), (1, 1)),
                                  dimension_numbers=("NHWC", "HWIO", "NHWC"))
    y2 = jnp.maximum(y2 + w["b2"], 0.0)
    flat = jnp.transpose(y2, (0, 3, 1, 2)).reshape(x.shape[0], -1)   # torch (C,H,W) order
    fused = jnp.concatenate([xh, flat], axis=1)
    h = jnp.maximum(fused @ w["wf"] + w["bf"], 0.0)
    return h @ w["wo"] + w["bo"]


if __name__ == "__main__":
    key = jax.random.PRNGKey(0)
    kx, kimg, kw = jax.random.split(key, 3)

    B = 16  # small batch (multiple of 16; original example used 128)
    x = jax.random.normal(kx, (B, 256), jnp.float32)
    img = jax.random.normal(kimg, (B, 3, 28, 28), jnp.float32)   # NCHW like PyTorch

    weights = init_weights(kw)
    kparams = prepare_kernel_params(weights)

    out = jax.jit(fused_forward)(kparams, x, img)
    out = jax.block_until_ready(out)

    assert out.shape == (B, 10), out.shape
    assert bool(jnp.all(jnp.isfinite(out)))

    ref = jax.block_until_ready(reference_forward(weights, x, img))
    np.testing.assert_allclose(np.asarray(out), np.asarray(ref), rtol=3e-2, atol=3e-2)

    print("KERNEL_OK")
</pallas_src>

<mosaic_0001>
module attributes {stable_mosaic.version = 11 : i64} {
  func.func @_fused_forward_kernel(%arg0: i32, %arg1: memref<16x256xbf16, #tpu.memory_space<vmem>>, %arg2: memref<15x16x128xbf16, #tpu.memory_space<vmem>>, %arg3: memref<15x16x128xbf16, #tpu.memory_space<vmem>>, %arg4: memref<3x128x256xbf16, #tpu.memory_space<vmem>>, %arg5: memref<3x256x256xbf16, #tpu.memory_space<vmem>>, %arg6: memref<256x64xbf16, #tpu.memory_space<vmem>>, %arg7: memref<1x64xf32, #tpu.memory_space<vmem>>, %arg8: memref<1x256xf32, #tpu.memory_space<vmem>>, %arg9: memref<1x256xf32, #tpu.memory_space<vmem>>, %arg10: memref<64x128xbf16, #tpu.memory_space<vmem>>, %arg11: memref<3584x128xbf16, #tpu.memory_space<vmem>>, %arg12: memref<1x128xf32, #tpu.memory_space<vmem>>, %arg13: memref<128x10xbf16, #tpu.memory_space<vmem>>, %arg14: memref<1x10xf32, #tpu.memory_space<vmem>>, %arg15: memref<16x10xf32, #tpu.memory_space<vmem>>, %arg16: memref<16x3584xbf16, #tpu.memory_space<vmem>>) attributes {dimension_semantics = [#tpu.dimension_semantics<parallel>], iteration_bounds = array<i64: 1>, scalar_prefetch = 0 : i64, scratch_operands = 1 : i64, tpu.core_type = #tpu.core_type<tc>, window_params = [{transform_indices = @transform_0, window_bounds = array<i64: 16, 256>}, {transform_indices = @transform_1, window_bounds = array<i64: 15, 16, 128>}, {transform_indices = @transform_2, window_bounds = array<i64: 15, 16, 128>}, {pipeline_mode = #tpu.pipeline_mode<synchronous>, transform_indices = @transform_3, window_bounds = array<i64: 3, 128, 256>}, {pipeline_mode = #tpu.pipeline_mode<synchronous>, transform_indices = @transform_4, window_bounds = array<i64: 3, 256, 256>}, {pipeline_mode = #tpu.pipeline_mode<synchronous>, transform_indices = @transform_5, window_bounds = array<i64: 256, 64>}, {pipeline_mode = #tpu.pipeline_mode<synchronous>, transform_indices = @transform_6, window_bounds = array<i64: 1, 64>}, {pipeline_mode = #tpu.pipeline_mode<synchronous>, transform_indices = @transform_7, window_bounds = array<i64: 1, 256>}, {pipeline_mode = #tpu.pipeline_mode<synchronous>, transform_indices = @transform_8, window_bounds = array<i64: 1, 256>}, {pipeline_mode = #tpu.pipeline_mode<synchronous>, transform_indices = @transform_9, window_bounds = array<i64: 64, 128>}, {pipeline_mode = #tpu.pipeline_mode<synchronous>, transform_indices = @transform_10, window_bounds = array<i64: 3584, 128>}, {pipeline_mode = #tpu.pipeline_mode<synchronous>, transform_indices = @transform_11, window_bounds = array<i64: 1, 128>}, {pipeline_mode = #tpu.pipeline_mode<synchronous>, transform_indices = @transform_12, window_bounds = array<i64: 128, 10>}, {pipeline_mode = #tpu.pipeline_mode<synchronous>, transform_indices = @transform_13, window_bounds = array<i64: 1, 10>}, {transform_indices = @transform_14, window_bounds = array<i64: 16, 10>}]} {
    %c0 = arith.constant 0 : index
    %c0_0 = arith.constant 0 : index
    %0 = vector.load %arg1[%c0, %c0_0] : memref<16x256xbf16, #tpu.memory_space<vmem>>, vector<16x256xbf16>
    %c0_1 = arith.constant 0 : index
    %c0_2 = arith.constant 0 : index
    %1 = vector.load %arg6[%c0_1, %c0_2] : memref<256x64xbf16, #tpu.memory_space<vmem>>, vector<256x64xbf16>
    %cst = arith.constant dense<0.000000e+00> : vector<16x64xf32>
    %2 = tpu.matmul %0, %1, %cst {dimension_numbers = #tpu.dot_dimension_numbers<[1], [0], [0], [1], [0, 0, 1, 1], [], []>} : vector<16x256xbf16>, vector<256x64xbf16>, vector<16x64xf32> -> vector<16x64xf32>
    %c0_3 = arith.constant 0 : index
    %c0_4 = arith.constant 0 : index
    %3 = vector.load %arg7[%c0_3, %c0_4] : memref<1x64xf32, #tpu.memory_space<vmem>>, vector<1x64xf32>
    %4 = vector.broadcast %3 : vector<1x64xf32> to vector<16x64xf32>
    %5 = arith.addf %2, %4 : vector<16x64xf32>
    %cst_5 = arith.constant 0.000000e+00 : f32
    %6 = vector.broadcast %cst_5 : f32 to vector<16x64xf32>
    %7 = arith.maximumf %5, %6 : vector<16x64xf32>
    %8 = arith.truncf %7 : vector<16x64xf32> to vector<16x64xbf16>
    %c0_6 = arith.constant 0 : index
    %c0_7 = arith.constant 0 : index
    %c0_8 = arith.constant 0 : index
    %9 = vector.load %arg2[%c0_6, %c0_7, %c0_8] : memref<15x16x128xbf16, #tpu.memory_space<vmem>>, vector<15x16x128xbf16>
    %10 = vector.shape_cast %9 : vector<15x16x128xbf16> to vector<240x128xbf16>
    %c0_9 = arith.constant 0 : index
    %c0_10 = arith.constant 0 : index
    %c0_11 = arith.constant 0 : index
    %11 = vector.load %arg3[%c0_9, %c0_10, %c0_11] : memref<15x16x128xbf16, #tpu.memory_space<vmem>>, vector<15x16x128xbf16>
    %12 = vector.shape_cast %11 : vector<15x16x128xbf16> to vector<240x128xbf16>
    %c0_12 = arith.constant 0 : index
    %c0_13 = arith.constant 0 : index
    %c0_14 = arith.constant 0 : index
    %13 = vector.load %arg4[%c0_12, %c0_13, %c0_14] : memref<3x128x256xbf16, #tpu.memory_space<vmem>>, vector<1x128x256xbf16>
    %14 = vector.shape_cast %13 : vector<1x128x256xbf16> to vector<128x256xbf16>
    %c1 = arith.constant 1 : index
    %c0_15 = arith.constant 0 : index
    %c0_16 = arith.constant 0 : index
    %15 = vector.load %arg4[%c1, %c0_15, %c0_16] : memref<3x128x256xbf16, #tpu.memory_space<vmem>>, vector<1x128x256xbf16>
    %16 = vector.shape_cast %15 : vector<1x128x256xbf16> to vector<128x256xbf16>
    %c2 = arith.constant 2 : index
    %c0_17 = arith.constant 0 : index
    %c0_18 = arith.constant 0 : index
    %17 = vector.load %arg4[%c2, %c0_17, %c0_18] : memref<3x128x256xbf16, #tpu.memory_space<vmem>>, vector<1x128x256xbf16>
    %18 = vector.shape_cast %17 : vector<1x128x256xbf16> to vector<128x256xbf16>
    %19 = vector.extract_strided_slice %12 {offsets = [0, 0], sizes = [224, 128], strides = [1, 1]} : vector<240x128xbf16> to vector<224x128xbf16>
    %cst_19 = arith.constant dense<0.000000e+00> : vector<224x256xf32>
    %20 = tpu.matmul %19, %14, %cst_19 {dimension_numbers = #tpu.dot_dimension_numbers<[1], [0], [0], [1], [0, 0, 1, 1], [], []>} : vector<224x128xbf16>, vector<128x256xbf16>, vector<224x256xf32> -> vector<224x256xf32>
    %21 = vector.extract_strided_slice %10 {offsets = [16, 0], sizes = [224, 128], strides = [1, 1]} : vector<240x128xbf16> to vector<224x128xbf16>
    %cst_20 = arith.constant dense<0.000000e+00> : vector<224x256xf32>
    %22 = tpu.matmul %21, %16, %cst_20 {dimension_numbers = #tpu.dot_dimension_numbers<[1], [0], [0], [1], [0, 0, 1, 1], [], []>} : vector<224x128xbf16>, vector<128x256xbf16>, vector<224x256xf32> -> vector<224x256xf32>
    %23 = arith.addf %20, %22 : vector<224x256xf32>
    %24 = vector.extract_strided_slice %12 {offsets = [16, 0], sizes = [224, 128], strides = [1, 1]} : vector<240x128xbf16> to vector<224x128xbf16>
    %cst_21 = arith.constant dense<0.000000e+00> : vector<224x256xf32>
    %25 = tpu.matmul %24, %18, %cst_21 {dimension_numbers = #tpu.dot_dimension_numbers<[1], [0], [0], [1], [0, 0, 1, 1], [], []>} : vector<224x128xbf16>, vector<128x256xbf16>, vector<224x256xf32> -> vector<224x256xf32>
    %26 = arith.addf %23, %25 : vector<224x256xf32>
    %c0_22 = arith.constant 0 : index
    %c0_23 = arith.constant 0 : index
    %27 = vector.load %arg8[%c0_22, %c0_23] : memref<1x256xf32, #tpu.memory_space<vmem>>, vector<1x256xf32>
    %28 = vector.broadcast %27 : vector<1x256xf32> to vector<224x256xf32>
    %29 = arith.addf %26, %28 : vector<224x256xf32>
    %cst_24 = arith.constant 0.000000e+00 : f32
    %30 = vector.broadcast %cst_24 : f32 to vector<224x256xf32>
    %31 = arith.maximumf %29, %30 : vector<224x256xf32>
    %32 = arith.truncf %31 : vector<224x256xf32> to vector<224x256xbf16>
    %33 = vector.extract_strided_slice %10 {offsets = [0, 0], sizes = [224, 128], strides = [1, 1]} : vector<240x128xbf16> to vector<224x128xbf16>
    %cst_25 = arith.constant dense<0.000000e+00> : vector<224x256xf32>
    %34 = tpu.matmul %33, %14, %cst_25 {dimension_numbers = #tpu.dot_dimension_numbers<[1], [0], [0], [1], [0, 0, 1, 1], [], []>} : vector<224x128xbf16>, vector<128x256xbf16>, vector<224x256xf32> -> vector<224x256xf32>
    %35 = vector.extract_strided_slice %12 {offsets = [0, 0], sizes = [224, 128], strides = [1, 1]} : vector<240x128xbf16> to vector<224x128xbf16>
    %cst_26 = arith.constant dense<0.000000e+00> : vector<224x256xf32>
    %36 = tpu.matmul %35, %16, %cst_26 {dimension_numbers = #tpu.dot_dimension_numbers<[1], [0], [0], [1], [0, 0, 1, 1], [], []>} : vector<224x128xbf16>, vector<128x256xbf16>, vector<224x256xf32> -> vector<224x256xf32>
    %37 = arith.addf %34, %36 : vector<224x256xf32>
    %38 = vector.extract_strided_slice %10 {offsets = [16, 0], sizes = [224, 128], strides = [1, 1]} : vector<240x128xbf16> to vector<224x128xbf16>
    %cst_27 = arith.constant dense<0.000000e+00> : vector<224x256xf32>
    %39 = tpu.matmul %38, %18, %cst_27 {dimension_numbers = #tpu.dot_dimension_numbers<[1], [0], [0], [1], [0, 0, 1, 1], [], []>} : vector<224x128xbf16>, vector<128x256xbf16>, vector<224x256xf32> -> vector<224x256xf32>
    %40 = arith.addf %37, %39 : vector<224x256xf32>
    %c0_28 = arith.constant 0 : index
    %c0_29 = arith.constant 0 : index
    %41 = vector.load %arg8[%c0_28, %c0_29] : memref<1x256xf32, #tpu.memory_space<vmem>>, vector<1x256xf32>
    %42 = vector.broadcast %41 : vector<1x256xf32> to vector<224x256xf32>
    %43 = arith.addf %40, %42 : vector<224x256xf32>
    %cst_30 = arith.constant 0.000000e+00 : f32
    %44 = vector.broadcast %cst_30 : f32 to vector<224x256xf32>
    %45 = arith.maximumf %43, %44 : vector<224x256xf32>
    %46 = arith.truncf %45 : vector<224x256xf32> to vector<224x256xbf16>
    %cst_31 = arith.constant 0.000000e+00 : bf16
    %47 = vector.broadcast %cst_31 : bf16 to vector<16x256xbf16>
    %48 = vector.extract_strided_slice %32 {offsets = [0, 0], sizes = [208, 256], strides = [1, 1]} : vector<224x256xbf16> to vector<208x256xbf16>
    %49 = tpu.concatenate %47, %48 in 0 : vector<16x256xbf16>, vector<208x256xbf16> -> vector<224x256xbf16>
    %c1_32 = arith.constant 1 : index
    %c0_33 = arith.constant 0 : index
    %c0_34 = arith.constant 0 : index
    %50 = vector.load %arg5[%c1_32, %c0_33, %c0_34] : memref<3x256x256xbf16, #tpu.memory_space<vmem>>, vector<1x256x256xbf16>
    %51 = vector.shape_cast %50 : vector<1x256x256xbf16> to vector<256x256xbf16>
    %cst_35 = arith.constant dense<0.000000e+00> : vector<224x256xf32>
    %52 = tpu.matmul %46, %51, %cst_35 {dimension_numbers = #tpu.dot_dimension_numbers<[1], [0], [0], [1], [0, 0, 1, 1], [], []>} : vector<224x256xbf16>, vector<256x256xbf16>, vector<224x256xf32> -> vector<224x256xf32>
    %c0_36 = arith.constant 0 : index
    %c0_37 = arith.constant 0 : index
    %c0_38 = arith.constant 0 : index
    %53 = vector.load %arg5[%c0_36, %c0_37, %c0_38] : memref<3x256x256xbf16, #tpu.memory_space<vmem>>, vector<1x256x256xbf16>
    %54 = vector.shape_cast %53 : vector<1x256x256xbf16> to vector<256x256xbf16>
    %cst_39 = arith.constant dense<0.000000e+00> : vector<224x256xf32>
    %55 = tpu.matmul %49, %54, %cst_39 {dimension_numbers = #tpu.dot_dimension_numbers<[1], [0], [0], [1], [0, 0, 1, 1], [], []>} : vector<224x256xbf16>, vector<256x256xbf16>, vector<224x256xf32> -> vector<224x256xf32>
    %56 = arith.addf %52, %55 : vector<224x256xf32>
    %c2_40 = arith.constant 2 : index
    %c0_41 = arith.constant 0 : index
    %c0_42 = arith.constant 0 : index
    %57 = vector.load %arg5[%c2_40, %c0_41, %c0_42] : memref<3x256x256xbf16, #tpu.memory_space<vmem>>, vector<1x256x256xbf16>
    %58 = vector.shape_cast %57 : vector<1x256x256xbf16> to vector<256x256xbf16>
    %cst_43 = arith.constant dense<0.000000e+00> : vector<224x256xf32>
    %59 = tpu.matmul %32, %58, %cst_43 {dimension_numbers = #tpu.dot_dimension_numbers<[1], [0], [0], [1], [0, 0, 1, 1], [], []>} : vector<224x256xbf16>, vector<256x256xbf16>, vector<224x256xf32> -> vector<224x256xf32>
    %60 = arith.addf %56, %59 : vector<224x256xf32>
    %c0_44 = arith.constant 0 : index
    %c0_45 = arith.constant 0 : index
    %61 = vector.load %arg9[%c0_44, %c0_45] : memref<1x256xf32, #tpu.memory_space<vmem>>, vector<1x256xf32>
    %62 = vector.broadcast %61 : vector<1x256xf32> to vector<224x256xf32>
    %63 = arith.addf %60, %62 : vector<224x256xf32>
    %cst_46 = arith.constant 0.000000e+00 : f32
    %64 = vector.broadcast %cst_46 : f32 to vector<224x256xf32>
    %65 = arith.maximumf %63, %64 : vector<224x256xf32>
    %66 = arith.truncf %65 : vector<224x256xf32> to vector<224x256xbf16>
    %67 = vector.extract_strided_slice %66 {offsets = [0, 0], sizes = [16, 256], strides = [1, 1]} : vector<224x256xbf16> to vector<16x256xbf16>
    %c0_47 = arith.constant 0 : index
    %c0_48 = arith.constant 0 : index
    %68 = vector.load %arg16[%c0_47, %c0_48] : memref<16x3584xbf16, #tpu.memory_space<vmem>>, vector<16x256xbf16>
    tpu.vector_store %arg16[%c0_47, %c0_48], %67 {strides = array<i32>} : memref<16x3584xbf16, #tpu.memory_space<vmem>>, vector<16x256xbf16>,
    %69 = vector.extract_strided_slice %66 {offsets = [16, 0], sizes = [16, 256], strides = [1, 1]} : vector<224x256xbf16> to vector<16x256xbf16>
    %c0_49 = arith.constant 0 : index
    %c256 = arith.constant 256 : index
    %70 = vector.load %arg16[%c0_49, %c256] : memref<16x3584xbf16, #tpu.memory_space<vmem>>, vector<16x256xbf16>
    tpu.vector_store %arg16[%c0_49, %c256], %69 {strides = array<i32>} : memref<16x3584xbf16, #tpu.memory_space<vmem>>, vector<16x256xbf16>,
    %71 = vector.extract_strided_slice %66 {offsets = [32, 0], sizes = [16, 256], strides = [1, 1]} : vector<224x256xbf16> to vector<16x256xbf16>
    %c0_50 = arith.constant 0 : index
    %c512 = arith.constant 512 : index
    %72 = vector.load %arg16[%c0_50, %c512] : memref<16x3584xbf16, #tpu.memory_space<vmem>>, vector<16x256xbf16>
    tpu.vector_store %arg16[%c0_50, %c512], %71 {strides = array<i32>} : memref<16x3584xbf16, #tpu.memory_space<vmem>>, vector<16x256xbf16>,
    %73 = vector.extract_strided_slice %66 {offsets = [48, 0], sizes = [16, 256], strides = [1, 1]} : vector<224x256xbf16> to vector<16x256xbf16>
    %c0_51 = arith.constant 0 : index
    %c768 = arith.constant 768 : index
    %74 = vector.load %arg16[%c0_51, %c768] : memref<16x3584xbf16, #tpu.memory_space<vmem>>, vector<16x256xbf16>
    tpu.vector_store %arg16[%c0_51, %c768], %73 {strides = array<i32>} : memref<16x3584xbf16, #tpu.memory_space<vmem>>, vector<16x256xbf16>,
    %75 = vector.extract_strided_slice %66 {offsets = [64, 0], sizes = [16, 256], strides = [1, 1]} : vector<224x256xbf16> to vector<16x256xbf16>
    %c0_52 = arith.constant 0 : index
    %c1024 = arith.constant 1024 : index
    %76 = vector.load %arg16[%c0_52, %c1024] : memref<16x3584xbf16, #tpu.memory_space<vmem>>, vector<16x256xbf16>
    tpu.vector_store %arg16[%c0_52, %c1024], %75 {strides = array<i32>} : memref<16x3584xbf16, #tpu.memory_space<vmem>>, vector<16x256xbf16>,
    %77 = vector.extract_strided_slice %66 {offsets = [80, 0], sizes = [16, 256], strides = [1, 1]} : vector<224x256xbf16> to vector<16x256xbf16>
    %c0_53 = arith.constant 0 : index
    %c1280 = arith.constant 1280 : index
    %78 = vector.load %arg16[%c0_53, %c1280] : memref<16x3584xbf16, #tpu.memory_space<vmem>>, vector<16x256xbf16>
    tpu.vector_store %arg16[%c0_53, %c1280], %77 {strides = array<i32>} : memref<16x3584xbf16, #tpu.memory_space<vmem>>, vector<16x256xbf16>,
    %79 = vector.extract_strided_slice %66 {offsets = [96, 0], sizes = [16, 256], strides = [1, 1]} : vector<224x256xbf16> to vector<16x256xbf16>
    %c0_54 = arith.constant 0 : index
    %c1536 = arith.constant 1536 : index
    %80 = vector.load %arg16[%c0_54, %c1536] : memref<16x3584xbf16, #tpu.memory_space<vmem>>, vector<16x256xbf16>
    tpu.vector_store %arg16[%c0_54, %c1536], %79 {strides = array<i32>} : memref<16x3584xbf16, #tpu.memory_space<vmem>>, vector<16x256xbf16>,
    %81 = vector.extract_strided_slice %66 {offsets = [112, 0], sizes = [16, 256], strides = [1, 1]} : vector<224x256xbf16> to vector<16x256xbf16>
    %c0_55 = arith.constant 0 : index
    %c1792 = arith.constant 1792 : index
    %82 = vector.load %arg16[%c0_55, %c1792] : memref<16x3584xbf16, #tpu.memory_space<vmem>>, vector<16x256xbf16>
    tpu.vector_store %arg16[%c0_55, %c1792], %81 {strides = array<i32>} : memref<16x3584xbf16, #tpu.memory_space<vmem>>, vector<16x256xbf16>,
    %83 = vector.extract_strided_slice %66 {offsets = [128, 0], sizes = [16, 256], strides = [1, 1]} : vector<224x256xbf16> to vector<16x256xbf16>
    %c0_56 = arith.constant 0 : index
    %c2048 = arith.constant 2048 : index
    %84 = vector.load %arg16[%c0_56, %c2048] : memref<16x3584xbf16, #tpu.memory_space<vmem>>, vector<16x256xbf16>
    tpu.vector_store %arg16[%c0_56, %c2048], %83 {strides = array<i32>} : memref<16x3584xbf16, #tpu.memory_space<vmem>>, vector<16x256xbf16>,
    %85 = vector.extract_strided_slice %66 {offsets = [144, 0], sizes = [16, 256], strides = [1, 1]} : vector<224x256xbf16> to vector<16x256xbf16>
    %c0_57 = arith.constant 0 : index
    %c2304 = arith.constant 2304 : index
    %86 = vector.load %arg16[%c0_57, %c2304] : memref<16x3584xbf16, #tpu.memory_space<vmem>>, vector<16x256xbf16>
    tpu.vector_store %arg16[%c0_57, %c2304], %85 {strides = array<i32>} : memref<16x3584xbf16, #tpu.memory_space<vmem>>, vector<16x256xbf16>,
    %87 = vector.extract_strided_slice %66 {offsets = [160, 0], sizes = [16, 256], strides = [1, 1]} : vector<224x256xbf16> to vector<16x256xbf16>
    %c0_58 = arith.constant 0 : index
    %c2560 = arith.constant 2560 : index
    %88 = vector.load %arg16[%c0_58, %c2560] : memref<16x3584xbf16, #tpu.memory_space<vmem>>, vector<16x256xbf16>
    tpu.vector_store %arg16[%c0_58, %c2560], %87 {strides = array<i32>} : memref<16x3584xbf16, #tpu.memory_space<vmem>>, vector<16x256xbf16>,
    %89 = vector.extract_strided_slice %66 {offsets = [176, 0], sizes = [16, 256], strides = [1, 1]} : vector<224x256xbf16> to vector<16x256xbf16>
    %c0_59 = arith.constant 0 : index
    %c2816 = arith.constant 2816 : index
    %90 = vector.load %arg16[%c0_59, %c2816] : memref<16x3584xbf16, #tpu.memory_space<vmem>>, vector<16x256xbf16>
    tpu.vector_store %arg16[%c0_59, %c2816], %89 {strides = array<i32>} : memref<16x3584xbf16, #tpu.memory_space<vmem>>, vector<16x256xbf16>,
    %91 = vector.extract_strided_slice %66 {offsets = [192, 0], sizes = [16, 256], strides = [1, 1]} : vector<224x256xbf16> to vector<16x256xbf16>
    %c0_60 = arith.constant 0 : index
    %c3072 = arith.constant 3072 : index
    %92 = vector.load %arg16[%c0_60, %c3072] : memref<16x3584xbf16, #tpu.memory_space<vmem>>, vector<16x256xbf16>
    tpu.vector_store %arg16[%c0_60, %c3072], %91 {strides = array<i32>} : memref<16x3584xbf16, #tpu.memory_space<vmem>>, vector<16x256xbf16>,
    %93 = vector.extract_strided_slice %66 {offsets = [208, 0], sizes = [16, 256], strides = [1, 1]} : vector<224x256xbf16> to vector<16x256xbf16>
    %c0_61 = arith.constant 0 : index
    %c3328 = arith.constant 3328 : index
    %94 = vector.load %arg16[%c0_61, %c3328] : memref<16x3584xbf16, #tpu.memory_space<vmem>>, vector<16x256xbf16>
    tpu.vector_store %arg16[%c0_61, %c3328], %93 {strides = array<i32>} : memref<16x3584xbf16, #tpu.memory_space<vmem>>, vector<16x256xbf16>,
    %c0_62 = arith.constant 0 : index
    %c0_63 = arith.constant 0 : index
    %95 = vector.load %arg16[%c0_62, %c0_63] : memref<16x3584xbf16, #tpu.memory_space<vmem>>, vector<16x3584xbf16>
    %c0_64 = arith.constant 0 : index
    %c0_65 = arith.constant 0 : index
    %96 = vector.load %arg11[%c0_64, %c0_65] : memref<3584x128xbf16, #tpu.memory_space<vmem>>, vector<3584x128xbf16>
    %cst_66 = arith.constant dense<0.000000e+00> : vector<16x128xf32>
    %97 = tpu.matmul %95, %96, %cst_66 {dimension_numbers = #tpu.dot_dimension_numbers<[1], [0], [0], [1], [0, 0, 1, 1], [], []>} : vector<16x3584xbf16>, vector<3584x128xbf16>, vector<16x128xf32> -> vector<16x128xf32>
    %c0_67 = arith.constant 0 : index
    %c0_68 = arith.constant 0 : index
    %98 = vector.load %arg10[%c0_67, %c0_68] : memref<64x128xbf16, #tpu.memory_space<vmem>>, vector<64x128xbf16>
    %cst_69 = arith.constant dense<0.000000e+00> : vector<16x128xf32>
    %99 = tpu.matmul %8, %98, %cst_69 {dimension_numbers = #tpu.dot_dimension_numbers<[1], [0], [0], [1], [0, 0, 1, 1], [], []>} : vector<16x64xbf16>, vector<64x128xbf16>, vector<16x128xf32> -> vector<16x128xf32>
    %100 = arith.addf %97, %99 : vector<16x128xf32>
    %c0_70 = arith.constant 0 : index
    %c0_71 = arith.constant 0 : index
    %101 = vector.load %arg12[%c0_70, %c0_71] : memref<1x128xf32, #tpu.memory_space<vmem>>, vector<1x128xf32>
    %102 = vector.broadcast %101 : vector<1x128xf32> to vector<16x128xf32>
    %103 = arith.addf %100, %102 : vector<16x128xf32>
    %cst_72 = arith.constant 0.000000e+00 : f32
    %104 = vector.broadcast %cst_72 : f32 to vector<16x128xf32>
    %105 = arith.maximumf %103, %104 : vector<16x128xf32>
    %106 = arith.truncf %105 : vector<16x128xf32> to vector<16x128xbf16>
    %c0_73 = arith.constant 0 : index
    %c0_74 = arith.constant 0 : index
    %107 = vector.load %arg13[%c0_73, %c0_74] : memref<128x10xbf16, #tpu.memory_space<vmem>>, vector<128x10xbf16>
    %cst_75 = arith.constant dense<0.000000e+00> : vector<16x10xf32>
    %108 = tpu.matmul %106, %107, %cst_75 {dimension_numbers = #tpu.dot_dimension_numbers<[1], [0], [0], [1], [0, 0, 1, 1], [], []>} : vector<16x128xbf16>, vector<128x10xbf16>, vector<16x10xf32> -> vector<16x10xf32>
    %c0_76 = arith.constant 0 : index
    %c0_77 = arith.constant 0 : index
    %109 = vector.load %arg14[%c0_76, %c0_77] : memref<1x10xf32, #tpu.memory_space<vmem>>, vector<1x10xf32>
    %110 = vector.broadcast %109 : vector<1x10xf32> to vector<16x10xf32>
    %111 = arith.addf %108, %110 : vector<16x10xf32>
    %c0_78 = arith.constant 0 : index
    %c0_79 = arith.constant 0 : index
    %112 = vector.load %arg15[%c0_78, %c0_79] : memref<16x10xf32, #tpu.memory_space<vmem>>, vector<16x10xf32>
    tpu.vector_store %arg15[%c0_78, %c0_79], %111 {strides = array<i32>} : memref<16x10xf32, #tpu.memory_space<vmem>>, vector<16x10xf32>,
    return
  }
  func.func @transform_0(%arg0: i32) -> (i32, i32) {
    %c0_i32 = arith.constant 0 : i32
    %c0_i32_0 = arith.constant 0 : i32
    return %arg0, %c0_i32 : i32, i32
  }
  func.func @transform_1(%arg0: i32) -> (i32, i32, i32) {
    %c0_i32 = arith.constant 0 : i32
    %c0_i32_0 = arith.constant 0 : i32
    %c0_i32_1 = arith.constant 0 : i32
    return %c0_i32, %arg0, %c0_i32_0 : i32, i32, i32
  }
  func.func @transform_2(%arg0: i32) -> (i32, i32, i32) {
    %c0_i32 = arith.constant 0 : i32
    %c0_i32_0 = arith.constant 0 : i32
    %c0_i32_1 = arith.constant 0 : i32
    return %c0_i32, %arg0, %c0_i32_0 : i32, i32, i32
  }
  func.func @transform_3(%arg0: i32) -> (i32, i32, i32) {
    %c0_i32 = arith.constant 0 : i32
    %c0_i32_0 = arith.constant 0 : i32
    %c0_i32_1 = arith.constant 0 : i32
    %c0_i32_2 = arith.constant 0 : i32
    return %c0_i32, %c0_i32_0, %c0_i32_1 : i32, i32, i32
  }
  func.func @transform_4(%arg0: i32) -> (i32, i32, i32) {
    %c0_i32 = arith.constant 0 : i32
    %c0_i32_0 = arith.constant 0 : i32
    %c0_i32_1 = arith.constant 0 : i32
    %c0_i32_2 = arith.constant 0 : i32
    return %c0_i32, %c0_i32_0, %c0_i32_1 : i32, i32, i32
  }
  func.func @transform_5(%arg0: i32) -> (i32, i32) {
    %c0_i32 = arith.constant 0 : i32
    %c0_i32_0 = arith.constant 0 : i32
    %c0_i32_1 = arith.constant 0 : i32
    return %c0_i32, %c0_i32_0 : i32, i32
  }
  func.func @transform_6(%arg0: i32) -> (i32, i32) {
    %c0_i32 = arith.constant 0 : i32
    %c0_i32_0 = arith.constant 0 : i32
    %c0_i32_1 = arith.constant 0 : i32
    return %c0_i32, %c0_i32_0 : i32, i32
  }
  func.func @transform_7(%arg0: i32) -> (i32, i32) {
    %c0_i32 = arith.constant 0 : i32
    %c0_i32_0 = arith.constant 0 : i32
    %c0_i32_1 = arith.constant 0 : i32
    return %c0_i32, %c0_i32_0 : i32, i32
  }
  func.func @transform_8(%arg0: i32) -> (i32, i32) {
    %c0_i32 = arith.constant 0 : i32
    %c0_i32_0 = arith.constant 0 : i32
    %c0_i32_1 = arith.constant 0 : i32
    return %c0_i32, %c0_i32_0 : i32, i32
  }
  func.func @transform_9(%arg0: i32) -> (i32, i32) {
    %c0_i32 = arith.constant 0 : i32
    %c0_i32_0 = arith.constant 0 : i32
    %c0_i32_1 = arith.constant 0 : i32
    return %c0_i32, %c0_i32_0 : i32, i32
  }
  func.func @transform_10(%arg0: i32) -> (i32, i32) {
    %c0_i32 = arith.constant 0 : i32
    %c0_i32_0 = arith.constant 0 : i32
    %c0_i32_1 = arith.constant 0 : i32
    return %c0_i32, %c0_i32_0 : i32, i32
  }
  func.func @transform_11(%arg0: i32) -> (i32, i32) {
    %c0_i32 = arith.constant 0 : i32
    %c0_i32_0 = arith.constant 0 : i32
    %c0_i32_1 = arith.constant 0 : i32
    return %c0_i32, %c0_i32_0 : i32, i32
  }
  func.func @transform_12(%arg0: i32) -> (i32, i32) {
    %c0_i32 = arith.constant 0 : i32
    %c0_i32_0 = arith.constant 0 : i32
    %c0_i32_1 = arith.constant 0 : i32
    return %c0_i32, %c0_i32_0 : i32, i32
  }
  func.func @transform_13(%arg0: i32) -> (i32, i32) {
    %c0_i32 = arith.constant 0 : i32
    %c0_i32_0 = arith.constant 0 : i32
    %c0_i32_1 = arith.constant 0 : i32
    return %c0_i32, %c0_i32_0 : i32, i32
  }
  func.func @transform_14(%arg0: i32) -> (i32, i32) {
    %c0_i32 = arith.constant 0 : i32
    %c0_i32_0 = arith.constant 0 : i32
    return %arg0, %c0_i32 : i32, i32
  }
}

</mosaic_0001>

<bundles_post_ra>
// kernel: fused_forward.1
= control target key start
LH: loop header
LB: loop body
LE: loop exit
PB: predicated region body
PF: predicated region fallthrough
CT: control target
= control target key end

     0   :  { %v11177_v2 = vmov 0   ;;  %s11162_s0 = inlined_call_operand.vmem [shape: bf16[16,256], index: 0, kind: input, shape index: {}]   ;;  %s11163_s1 = inlined_call_operand.vmem [shape: bf16[15,16,128], index: 1, kind: input, shape index: {}]   ;;  %s11164_s2 = inlined_call_operand.vmem [shape: bf16[15,16,128], index: 2, kind: input, shape index: {}]   ;;  %s11165_s3 = inlined_call_operand.vmem [shape: bf16[3,128,256], index: 3, kind: input, shape index: {}]   ;;  %s11166_s4 = inlined_call_operand.vmem [shape: bf16[3,256,256], index: 4, kind: input, shape index: {}]   ;;  %s11167_s5 = inlined_call_operand.vmem [shape: bf16[256,64], index: 5, kind: input, shape index: {}]   ;;  %s11168_s6 = inlined_call_operand.vmem [shape: f32[1,64], index: 6, kind: input, shape index: {}]   ;;  %s11169_s7 = inlined_call_operand.vmem [shape: f32[1,256], index: 7, kind: input, shape index: {}]   ;;  %s11170_s8 = inlined_call_operand.vmem [shape: f32[1,256], index: 8, kind: input, shape index: {}]   ;;  %s11171_s9 = inlined_call_operand.vmem [shape: bf16[64,128], index: 9, kind: input, shape index: {}]   ;;  %s11172_s10 = inlined_call_operand.vmem [shape: bf16[3584,128], index: 10, kind: input, shape index: {}]   ;;  %s11173_s11 = inlined_call_operand.vmem [shape: f32[1,128], index: 11, kind: input, shape index: {}]   ;;  %s11174_s12 = inlined_call_operand.vmem [shape: bf16[128,10], index: 12, kind: input, shape index: {}]   ;;  %s11175_s13 = inlined_call_operand.vmem [shape: f32[1,10], index: 13, kind: input, shape index: {}]   ;;  %s11176_s14 = inlined_call_operand.hbm [shape: f32[16,10], index: 14, kind: output, shape index: {}]  }
   0x1   :  { %v7461_v0 = vld [vmem:[%s11167_s5 + $0x78] sm:$0xff]   ;;  %546 = vmatprep.mubr.bf16.mxu1 %v11177_v2  ;;  %v7466_v5 = vld [vmem:[%s11167_s5 + $0x70] sm:$0xff]   ;;  %v8115_v6 = vld [vmem:[%s11165_s3 + $0xe4] ss:$8 sps:$4 sm:$0xff]  }
   0x2   :  { %v8096_v1 = vld [vmem:[%s11165_s3 + $0xf4] ss:$8 sps:$4 sm:$0xff]   ;;  %7079 = vmatprep.subr.bf16.mxu0 %v7461_v0  ;;  %v8106_v4 = vld [vmem:[%s11165_s3 + $0xf0] ss:$8 sps:$4 sm:$0xff]   ;;  %v8123_v8 = vld [vmem:[%s11165_s3 + $0xe0] ss:$8 sps:$4 sm:$0xff]  }
   0x3   :  { %v7464_v3 = vld [vmem:[%s11167_s5 + $0x38] sm:$0xff]   ;;  %514 = vmatprep.subr.bf16.mxu1 %v8096_v1  ;;  %v7469_v7 = vld [vmem:[%s11167_s5 + $0x30] sm:$0xff]   ;;  %v7471_v9 = vld [vmem:[%s11167_s5 + $0x68] sm:$0xff]  }
   0x4   :  { %7080 = vmatpush3.bf16.msra.mxu0 %v7464_v3  ;;  %515 = vmatpush1.bf16.msra.mxu1 %v8106_v4  ;;  %v8132_v10 = vld [vmem:[%s11165_s3 + $0xd4] ss:$8 sps:$4 sm:$0xff]   ;;  %v7474_v11 = vld [vmem:[%s11167_s5 + $0x28] sm:$0xff]   ;;  %v8141_v12 = vld [vmem:[%s11165_s3 + $0xd0] ss:$8 sps:$4 sm:$0xff]  }
   0x5   :  { %7081 = vmatprep.subr.bf16.mxu0 %v7466_v5  ;;  %516 = vmatprep.subr.bf16.mxu1 %v8115_v6  ;;  %v7476_v13 = vld [vmem:[%s11167_s5 + $0x60] sm:$0xff]   ;;  %v7481_v17 = vld [vmem:[%s11167_s5 + $0x58] sm:$0xff]   ;;  %v7486_v21 = vld [vmem:[%s11167_s5 + $0x50] sm:$0xff]  }
   0x6   :  { %v8150_v14 = vld [vmem:[%s11165_s3 + $0xc4] ss:$8 sps:$4 sm:$0xff]   ;;  %v8159_v16 = vld [vmem:[%s11165_s3 + $0xc0] ss:$8 sps:$4 sm:$0xff]   ;;  %v8168_v18 = vld [vmem:[%s11165_s3 + $0xb4] ss:$8 sps:$4 sm:$0xff]  }
   0x7   :  { %v7479_v15 = vld [vmem:[%s11167_s5 + $0x20] sm:$0xff]   ;;  %v7484_v19 = vld [vmem:[%s11167_s5 + $0x18] sm:$0xff]   ;;  %v7489_v23 = vld [vmem:[%s11167_s5 + $0x10] sm:$0xff]  }
   0x8   :  { %7082 = vmatpush3.bf16.msra.mxu0 %v7469_v7  ;;  %517 = vmatpush1.bf16.msra.mxu1 %v8123_v8  ;;  %v8176_v20 = vld [vmem:[%s11165_s3 + $0xb0] ss:$8 sps:$4 sm:$0xff]   ;;  %v8186_v22 = vld [vmem:[%s11165_s3 + $0xa4] ss:$8 sps:$4 sm:$0xff]   ;;  %v8194_v24 = vld [vmem:[%s11165_s3 + $0xa0] ss:$8 sps:$4 sm:$0xff]  }
   0x9   :  { %7083 = vmatprep.subr.bf16.mxu0 %v7471_v9  ;;  %518 = vmatprep.subr.bf16.mxu1 %v8132_v10  ;;  %v7491_v25 = vld [vmem:[%s11167_s5 + $0x48] sm:$0xff]   ;;  %v8204_v26 = vld [vmem:[%s11165_s3 + $0x94] ss:$8 sps:$4 sm:$0xff]   ;;  %v8212_v28 = vld [vmem:[%s11165_s3 + $0x90] ss:$8 sps:$4 sm:$0xff]  }
   0xa   :  { %v7494_v27 = vld [vmem:[%s11167_s5 + $0x8] sm:$0xff]   ;;  %v7496_v29 = vld [vmem:[%s11167_s5 + $0x40] sm:$0xff]   ;;  %v8240_v34 = vld [vmem:[%s11165_s3 + $0x74] ss:$8 sps:$4 sm:$0xff]  }
   0xb   :  { %v8222_v30 = vld [vmem:[%s11165_s3 + $0x84] ss:$8 sps:$4 sm:$0xff]   ;;  %v8234_v33 = vld [vmem:[%s11165_s3 + $0x80] ss:$8 sps:$4 sm:$0xff]   ;;  %v8251_v37 = vld [vmem:[%s11165_s3 + $0x70] ss:$8 sps:$4 sm:$0xff]  }
   0xc   :  { %7084 = vmatpush3.bf16.msra.mxu0 %v7474_v11  ;;  %519 = vmatpush1.bf16.msra.mxu1 %v8141_v12  ;;  %v7503_v31 = vld [vmem:[%s11162_s0 + $0x4] ss:$8 sps:$4 sm:$0xff]   ;;  %v7501_v35 = vld [vmem:[%s11162_s0] ss:$8 sps:$4 sm:$0xff]   ;;  %v8271_v40 = vld [vmem:[%s11165_s3 + $0x54] ss:$8 sps:$4 sm:$0xff]  }
   0xd   :  { %7085 = vmatprep.subr.bf16.mxu0 %v7476_v13  ;;  %520 = vmatprep.subr.bf16.mxu1 %v8150_v14  ;;  %v7499_v32 = vld [vmem:[%s11167_s5] sm:$0xff]   ;;  %v7504_v36 = vld [vmem:[%s11163_s1 + $0x8] sm:$0xff]   ;;  %v7522_v41 = vld [vmem:[%s11165_s3 + $0x170] ss:$8 sps:$4 sm:$0xff]  }
   0xe   :  { %228 = vmatprep.mubr.bf16.mxu0 %v7503_v31  ;;  %v8258_v38 = vld [vmem:[%s11165_s3 + $0x64] ss:$8 sps:$4 sm:$0xff]   ;;  %v8264_v39 = vld [vmem:[%s11165_s3 + $0x60] ss:$8 sps:$4 sm:$0xff]   ;;  %v8279_v42 = vld [vmem:[%s11165_s3 + $0x174] ss:$8 sps:$4 sm:$0xff]  }
   0xf   :  { %v7511_v43 = vld [vmem:[%s11163_s1 + $0x10] sm:$0xff]   ;;  %v8296_v45 = vld [vmem:[%s11165_s3 + $0x44] ss:$8 sps:$4 sm:$0xff]   ;;  %v8302_v46 = vld [vmem:[%s11165_s3 + $0x40] ss:$8 sps:$4 sm:$0xff]  }
  0x10   :  { %7086 = vmatpush3.bf16.msra.mxu0 %v7479_v15  ;;  %521 = vmatpush1.bf16.msra.mxu1 %v8159_v16  ;;  %v8289_v44 = vld [vmem:[%s11165_s3 + $0x50] ss:$8 sps:$4 sm:$0xff]   ;;  %v8309_v47 = vld [vmem:[%s11165_s3 + $0x34] ss:$8 sps:$4 sm:$0xff]   ;;  %v7537_v49 = vld [vmem:[%s11165_s3 + $0x160] ss:$8 sps:$4 sm:$0xff]  }
  0x11   :  { %7087 = vmatprep.subr.bf16.mxu0 %v7481_v17  ;;  %522 = vmatprep.subr.bf16.mxu1 %v8168_v18  ;;  %v7518_v48 = vld [vmem:[%s11163_s1 + $0x18] sm:$0xff]   ;;  %v7539_v50 = vld [vmem:[%s11165_s3 + $0x164] ss:$8 sps:$4 sm:$0xff]   ;;  %v8342_v55 = vld [vmem:[%s11165_s3 + $0x20] ss:$8 sps:$4 sm:$0xff]  }
  0x12   :  { %v8324_v51 = vld [vmem:[%s11165_s3 + $0x30] ss:$8 sps:$4 sm:$0xff]   ;;  %v8330_v52 = vld [vmem:[%s11165_s3 + $0x24] ss:$8 sps:$4 sm:$0xff]   ;;  %v7544_v53 = vld [vmem:[%s11165_s3 + $0x154] ss:$8 sps:$4 sm:$0xff]  }
  0x13   :  { %v7542_v54 = vld [vmem:[%s11165_s3 + $0x150] ss:$8 sps:$4 sm:$0xff]   ;;  %v8349_v56 = vld [vmem:[%s11165_s3 + $0x14] ss:$8 sps:$4 sm:$0xff]   ;;  %v7528_v57 = vld [vmem:[%s11163_s1 + $0x20] sm:$0xff]  }
  0x14   :  { %7088 = vmatpush3.bf16.msra.mxu0 %v7484_v19  ;;  %523 = vmatpush1.bf16.msra.mxu1 %v8176_v20  ;;  %v7549_v58 = vld [vmem:[%s11165_s3 + $0x140] ss:$8 sps:$4 sm:$0xff]   ;;  %v7551_v59 = vld [vmem:[%s11165_s3 + $0x144] ss:$8 sps:$4 sm:$0xff]   ;;  %v8364_v60 = vld [vmem:[%s11165_s3 + $0x10] ss:$8 sps:$4 sm:$0xff]  }
  0x15   :  { %7089 = vmatprep.subr.bf16.mxu0 %v7486_v21  ;;  %524 = vmatprep.subr.bf16.mxu1 %v8186_v22  ;;  %v8370_v61 = vld [vmem:[%s11165_s3 + $0x4] ss:$8 sps:$4 sm:$0xff]   ;;  %v8375_v62 = vld [vmem:[%s11165_s3] ss:$8 sps:$4 sm:$0xff]   ;;  %v7556_v63 = vld [vmem:[%s11165_s3 + $0x130] ss:$8 sps:$4 sm:$0xff]  }
  0x16   :  { %v8386_v0 = vld [vmem:[%s11165_s3 + $0x134] ss:$8 sps:$4 sm:$0xff]   ;;  %v8391_v3 = vld [vmem:[%s11164_s2] sm:$0xff]   ;;  %v7535_v5 = vld [vmem:[%s11163_s1 + $0x28] sm:$0xff]  }
  0x17   :  { %v8402_v7 = vld [vmem:[%s11165_s3 + $0x124] ss:$8 sps:$4 sm:$0xff]   ;;  %v7563_v9 = vld [vmem:[%s11165_s3 + $0x120] ss:$8 sps:$4 sm:$0xff]   ;;  %v7540_v13 = vld [vmem:[%s11163_s1 + $0x30] sm:$0xff]  }
  0x18   :  { %7090 = vmatpush3.bf16.msra.mxu0 %v7489_v23  ;;  %525 = vmatpush1.bf16.msra.mxu1 %v8194_v24  ;;  %v8419_v11 = vld [vmem:[%s11164_s2 + $0x8] sm:$0xff]   ;;  %v7554_v19 = vld [vmem:[%s11163_s1 + $0x50] sm:$0xff]   ;;  %v7559_v21 = vld [vmem:[%s11163_s1 + $0x58] sm:$0xff]  }
  0x19   :  { %7091 = vmatprep.subr.bf16.mxu0 %v7491_v25  ;;  %526 = vmatprep.subr.bf16.mxu1 %v8204_v26  ;;  %v7573_v15 = vld [vmem:[%s11165_s3 + $0x100] ss:$8 sps:$4 sm:$0xff]  }
  0x1a   :  { %v7552_v17 = vld [vmem:[%s11163_s1 + $0x48] sm:$0xff]   ;;  %v7561_v23 = vld [vmem:[%s11163_s1 + $0x60] sm:$0xff]  }
  0x1b   :  { %v7566_v25 = vld [vmem:[%s11163_s1 + $0x68] sm:$0xff]  }
  0x1c   :  { %7092 = vmatpush3.bf16.msra.mxu0 %v7494_v27  ;;  %527 = vmatpush1.bf16.msra.mxu1 %v8212_v28  ;;  %v7571_v27 = vld [vmem:[%s11163_s1 + $0x70] sm:$0xff]   ;;  %v8583_v31 = vld [vmem:[%s11164_s2 + $0x68] sm:$0xff]  }
  0x1d   :  { %7093 = vmatprep.subr.bf16.mxu0 %v7496_v29  ;;  %528 = vmatprep.subr.bf16.mxu1 %v8222_v30  ;;  %v8558_v29 = vld [vmem:[%s11164_s2 + $0x58] sm:$0xff]  }
  0x20   :  { %7094 = vmatpush3.bf16.msra.mxu0 %v7499_v32  ;;  %529 = vmatpush1.bf16.msra.mxu1 %v8234_v33  ;;  %v7584_v32 = vld [vmem:[%s11166_s4 + $0x74] ss:$8 sps:$4 sm:$0xff]  }
  0x21   :  { %851 = vmatprep.subr.bf16.mxu0 %v8240_v34  ;;  %1110 = vmatprep.subr.bf16.mxu1 %v8279_v42 }
  0x23   :  { %229 = vmatmul.mubr.bf16.vlgmr.msra.gmra.mxu0 %v7501_v35  ;;  %547 = vmatmul.mubr.bf16.vlgmr.msra.gmra.mxu1 %v7504_v36  ;;  %v7964_v35 = vld [vmem:[%s11165_s3 + $0x160] ss:$8 sps:$4 sm:$0xff]   ;;  %v7965_v36 = vld [vmem:[%s11165_s3 + $0x154] ss:$8 sps:$4 sm:$0xff]  }
  0x24   :  { %852 = vmatpush1.bf16.msra.mxu0 %v8251_v37  ;;  %556 = vmatprep.mubr.bf16.mxu1 %v11177_v2 }
  0x25   :  { %853 = vmatprep.subr.bf16.mxu0 %v8258_v38  ;;  %883 = vmatprep.mubr.bf16.mxu0 %v11177_v2 }
  0x26   :  { %1111 = vmatpush1.bf16.msra.mxu1 %v7522_v41  ;;  %v7970_v41 = vld [vmem:[%s11165_s3 + $0x120] ss:$8 sps:$4 sm:$0xff]  }
  0x27   :  { %1112 = vmatprep.subr.bf16.mxu1 %v7539_v50 }
  0x28   :  { %854 = vmatpush1.bf16.msra.mxu0 %v8264_v39 }
  0x29   :  { %855 = vmatprep.subr.bf16.mxu0 %v8271_v40 }
  0x2a   :  { %1113 = vmatpush1.bf16.msra.mxu1 %v7537_v49  ;;  %v6439_v49 = vld [vmem:[%s11168_s6] ss:$0 sm:$0xff] }
  0x2b   :  { %557 = vmatmul.mubr.bf16.gmra.mxu1 %v7511_v43  ;;  %1114 = vmatprep.subr.bf16.mxu1 %v7544_v53  ;;  %v7972_v43 = vld [vmem:[%s11165_s3 + $0x100] ss:$8 sps:$4 sm:$0xff]  }
  0x2c   :  { %856 = vmatpush1.bf16.msra.mxu0 %v8289_v44  ;;  %566 = vmatprep.mubr.bf16.mxu1 %v11177_v2 }
  0x2d   :  { %857 = vmatprep.subr.bf16.mxu0 %v8296_v45 }
  0x2e   :  { %1115 = vmatpush1.bf16.msra.mxu1 %v7542_v54 }
  0x2f   :  { %1116 = vmatprep.subr.bf16.mxu1 %v7551_v59 }
  0x30   :  { %858 = vmatpush1.bf16.msra.mxu0 %v8302_v46 }
  0x31   :  { %859 = vmatprep.subr.bf16.mxu0 %v8309_v47 }
  0x32   :  { %1117 = vmatpush1.bf16.msra.mxu1 %v7549_v58 }
  0x33   :  { %567 = vmatmul.mubr.bf16.gmra.mxu1 %v7518_v48  ;;  %1118 = vmatprep.subr.bf16.mxu1 %v8386_v0 }
  0x34   :  { %860 = vmatpush1.bf16.msra.mxu0 %v8324_v51  ;;  %576 = vmatprep.mubr.bf16.mxu1 %v11177_v2 }
  0x35   :  { %861 = vmatprep.subr.bf16.mxu0 %v8330_v52 }
  0x36   :  { %1119 = vmatpush1.bf16.msra.mxu1 %v7556_v63 }
  0x37   :  { %1120 = vmatprep.subr.bf16.mxu1 %v8402_v7 }
  0x38   :  { %862 = vmatpush1.bf16.msra.mxu0 %v8342_v55 }
  0x39   :  { %863 = vmatprep.subr.bf16.mxu0 %v8349_v56 }
  0x3a   :  { %1121 = vmatpush1.bf16.msra.mxu1 %v7563_v9 }
  0x3b   :  { %577 = vmatmul.mubr.bf16.gmra.mxu1 %v7528_v57 }
  0x3c   :  { %864 = vmatpush1.bf16.msra.mxu0 %v8364_v60  ;;  %586 = vmatprep.mubr.bf16.mxu1 %v11177_v2 }
  0x3d   :  { %865 = vmatprep.subr.bf16.mxu0 %v8370_v61 }
  0x40   :  { %866 = vmatpush1.bf16.msra.mxu0 %v8375_v62 }
  0x41   :  { %1491 = vmatprep.subr.bf16.mxu0 %v8096_v1  ;;  %v8414_v1 = vld [vmem:[%s11165_s3 + $0x114] ss:$8 sps:$4 sm:$0xff]  }
  0x42   :  { %1122 = vmatprep.subr.bf16.mxu1 %v8414_v1 }
  0x43   :  { %884 = vmatmul.mubr.bf16.vlgmr.msra.gmra.mxu0 %v8391_v3  ;;  %587 = vmatmul.mubr.bf16.gmra.mxu1 %v7535_v5  ;;  %v7580_v5 = vld [vmem:[%s11164_s2 + $0x70] sm:$0xff]  }
  0x44   :  { %1492 = vmatpush1.bf16.msra.mxu0 %v8106_v4  ;;  %596 = vmatprep.mubr.bf16.mxu1 %v11177_v2  ;;  %v7568_v4 = vld [vmem:[%s11165_s3 + $0x110] ss:$8 sps:$4 sm:$0xff]  }
  0x45   :  { %893 = vmatprep.mubr.bf16.mxu0 %v11177_v2  ;;  %1493 = vmatprep.subr.bf16.mxu0 %v8115_v6  ;;  %v8435_v6 = vld [vmem:[%s11165_s3 + $0x104] ss:$8 sps:$4 sm:$0xff]  }
  0x46   :  { %1123 = vmatpush1.bf16.msra.mxu1 %v7568_v4  ;;  %v7581_v4 = vld [vmem:[%s11163_s1] sm:$0xff]  }
  0x47   :  { %1124 = vmatprep.subr.bf16.mxu1 %v8435_v6 }
  0x48   :  { %1494 = vmatpush1.bf16.msra.mxu0 %v8123_v8  ;;  %v8446_v8 = vld [vmem:[%s11164_s2 + $0x10] sm:$0xff]  }
  0x49   :  { %1495 = vmatprep.subr.bf16.mxu0 %v8132_v10  ;;  %v7545_v10 = vld [vmem:[%s11163_s1 + $0x38] sm:$0xff]  }
  0x4a   :  { %1125 = vmatpush1.bf16.msra.mxu1 %v7573_v15  ;;  %v7587_v15 = vld [vmem:[%s11166_s4 + $0x64] ss:$8 sps:$4 sm:$0xff]  }
  0x4b   :  { %894 = vmatmul.mubr.bf16.gmra.mxu0 %v8419_v11  ;;  %597 = vmatmul.mubr.bf16.gmra.mxu1 %v7540_v13  ;;  %v7582_v13 = vld [vmem:[%s11166_s4 + $0x70] ss:$8 sps:$4 sm:$0xff]  }
  0x4c   :  { %903 = vmatprep.mubr.bf16.mxu0 %v11177_v2  ;;  %606 = vmatprep.mubr.bf16.mxu1 %v11177_v2 }
  0x4d   :  { %1496 = vmatpush1.bf16.msra.mxu0 %v8141_v12  ;;  %1670 = vmatprep.subr.bf16.mxu1 %v8240_v34  ;;  %v8463_v12 = vld [vmem:[%s11164_s2 + $0x18] sm:$0xff]   ;;  %v7963_v34 = vld [vmem:[%s11165_s3 + $0x164] ss:$8 sps:$4 sm:$0xff]  }
  0x4e   :  { %1497 = vmatprep.subr.bf16.mxu0 %v8150_v14  ;;  %v7547_v14 = vld [vmem:[%s11163_s1 + $0x40] sm:$0xff]  }
  0x51   :  { %1498 = vmatpush1.bf16.msra.mxu0 %v8159_v16  ;;  %v8478_v16 = vld [vmem:[%s11164_s2 + $0x20] sm:$0xff]  }
  0x52   :  { %1499 = vmatprep.subr.bf16.mxu0 %v8168_v18  ;;  %v8493_v18 = vld [vmem:[%s11164_s2 + $0x28] sm:$0xff]  }
  0x53   :  { %904 = vmatmul.mubr.bf16.gmra.mxu0 %v8446_v8  ;;  %607 = vmatmul.mubr.bf16.gmra.mxu1 %v7545_v10 }
  0x54   :  { %913 = vmatprep.mubr.bf16.mxu0 %v11177_v2  ;;  %616 = vmatprep.mubr.bf16.mxu1 %v11177_v2 }
  0x55   :  { %1500 = vmatpush1.bf16.msra.mxu0 %v8176_v20  ;;  %v8504_v20 = vld [vmem:[%s11164_s2 + $0x30] sm:$0xff]  }
  0x56   :  { %1501 = vmatprep.subr.bf16.mxu0 %v8186_v22  ;;  %v8515_v22 = vld [vmem:[%s11164_s2 + $0x38] sm:$0xff]  }
  0x59   :  { %1502 = vmatpush1.bf16.msra.mxu0 %v8194_v24  ;;  %v8526_v24 = vld [vmem:[%s11164_s2 + $0x40] sm:$0xff]  }
  0x5a   :  { %1503 = vmatprep.subr.bf16.mxu0 %v8204_v26  ;;  %v8537_v26 = vld [vmem:[%s11164_s2 + $0x48] sm:$0xff]  }
  0x5b   :  { %914 = vmatmul.mubr.bf16.gmra.mxu0 %v8463_v12  ;;  %617 = vmatmul.mubr.bf16.gmra.mxu1 %v7547_v14 }
  0x5c   :  { %923 = vmatprep.mubr.bf16.mxu0 %v11177_v2  ;;  %626 = vmatprep.mubr.bf16.mxu1 %v11177_v2 }
  0x5d   :  { %1504 = vmatpush1.bf16.msra.mxu0 %v8212_v28  ;;  %v8548_v28 = vld [vmem:[%s11164_s2 + $0x50] sm:$0xff]  }
  0x5e   :  { %1505 = vmatprep.subr.bf16.mxu0 %v8222_v30  ;;  %v8570_v30 = vld [vmem:[%s11164_s2 + $0x60] sm:$0xff]  }
  0x61   :  { %1506 = vmatpush1.bf16.msra.mxu0 %v8234_v33  ;;  %v7962_v33 = vld [vmem:[%s11165_s3 + $0x170] ss:$8 sps:$4 sm:$0xff]  }
  0x62   :  { %1843 = vmatprep.subr.bf16.mxu0 %v8279_v42  ;;  %v7971_v42 = vld [vmem:[%s11165_s3 + $0x110] ss:$8 sps:$4 sm:$0xff]  }
  0x63   :  { %924 = vmatmul.mubr.bf16.gmra.mxu0 %v8478_v16  ;;  %627 = vmatmul.mubr.bf16.gmra.mxu1 %v7552_v17  ;;  %v7590_v17 = vld [vmem:[%s11166_s4 + $0x54] ss:$8 sps:$4 sm:$0xff]  }
  0x64   :  { %933 = vmatprep.mubr.bf16.mxu0 %v11177_v2  ;;  %636 = vmatprep.mubr.bf16.mxu1 %v11177_v2 }
  0x6b   :  { %934 = vmatmul.mubr.bf16.gmra.mxu0 %v8493_v18  ;;  %637 = vmatmul.mubr.bf16.gmra.mxu1 %v7554_v19 }
  0x6c   :  { %943 = vmatprep.mubr.bf16.mxu0 %v11177_v2  ;;  %646 = vmatprep.mubr.bf16.mxu1 %v11177_v2 }
  0x73   :  { %944 = vmatmul.mubr.bf16.gmra.mxu0 %v8504_v20  ;;  %647 = vmatmul.mubr.bf16.gmra.mxu1 %v7559_v21 }
  0x74   :  { %953 = vmatprep.mubr.bf16.mxu0 %v11177_v2  ;;  %656 = vmatprep.mubr.bf16.mxu1 %v11177_v2 }
  0x7b   :  { %954 = vmatmul.mubr.bf16.gmra.mxu0 %v8515_v22  ;;  %657 = vmatmul.mubr.bf16.gmra.mxu1 %v7561_v23 }
  0x7c   :  { %963 = vmatprep.mubr.bf16.mxu0 %v11177_v2  ;;  %666 = vmatprep.mubr.bf16.mxu1 %v11177_v2 }
  0x83   :  { %964 = vmatmul.mubr.bf16.gmra.mxu0 %v8526_v24  ;;  %667 = vmatmul.mubr.bf16.gmra.mxu1 %v7566_v25 }
  0x84   :  { %973 = vmatprep.mubr.bf16.mxu0 %v11177_v2  ;;  %676 = vmatprep.mubr.bf16.mxu1 %v11177_v2 }
  0x8b   :  { %974 = vmatmul.mubr.bf16.gmra.mxu0 %v8537_v26  ;;  %677 = vmatmul.mubr.bf16.gmra.mxu1 %v7571_v27  ;;  %v7632_v27 = vld [vmem:[%s11166_s4 + $0x174] ss:$8 sps:$4 sm:$0xff]  }
  0x8c   :  { %983 = vmatprep.mubr.bf16.mxu0 %v11177_v2  ;;  %1142 = vmatprep.mubr.bf16.mxu1 %v11177_v2 }
  0x93   :  { %984 = vmatmul.mubr.bf16.gmra.mxu0 %v8548_v28  ;;  %1143 = vmatmul.mubr.bf16.vlgmr.msra.gmra.mxu1 %v8419_v11 }
  0x94   :  { %993 = vmatprep.mubr.bf16.mxu0 %v11177_v2  ;;  %1152 = vmatprep.mubr.bf16.mxu1 %v11177_v2 }
  0x95   :  { %1671 = vmatpush1.bf16.msra.mxu1 %v8251_v37  ;;  %v7966_v37 = vld [vmem:[%s11165_s3 + $0x150] ss:$8 sps:$4 sm:$0xff]  }
  0x96   :  { %1672 = vmatprep.subr.bf16.mxu1 %v8258_v38  ;;  %v7967_v38 = vld [vmem:[%s11165_s3 + $0x144] ss:$8 sps:$4 sm:$0xff]  }
  0x99   :  { %1673 = vmatpush1.bf16.msra.mxu1 %v8264_v39  ;;  %v7968_v39 = vld [vmem:[%s11165_s3 + $0x140] ss:$8 sps:$4 sm:$0xff]  }
  0x9a   :  { %1674 = vmatprep.subr.bf16.mxu1 %v8271_v40  ;;  %v7969_v40 = vld [vmem:[%s11165_s3 + $0x130] ss:$8 sps:$4 sm:$0xff]  }
  0x9b   :  { %994 = vmatmul.mubr.bf16.gmra.mxu0 %v8558_v29  ;;  %1153 = vmatmul.mubr.bf16.gmra.mxu1 %v8446_v8 }
  0x9c   :  { %1003 = vmatprep.mubr.bf16.mxu0 %v11177_v2  ;;  %1162 = vmatprep.mubr.bf16.mxu1 %v11177_v2 }
  0x9d   :  { %1675 = vmatpush1.bf16.msra.mxu1 %v8289_v44 }
  0x9e   :  { %1676 = vmatprep.subr.bf16.mxu1 %v8296_v45 }
  0xa1   :  { %1677 = vmatpush1.bf16.msra.mxu1 %v8302_v46 }
  0xa2   :  { %1678 = vmatprep.subr.bf16.mxu1 %v8309_v47 }
  0xa3   :  { %1004 = vmatmul.mubr.bf16.gmra.mxu0 %v8570_v30  ;;  %1163 = vmatmul.mubr.bf16.gmra.mxu1 %v8463_v12 }
  0xa4   :  { %1013 = vmatprep.mubr.bf16.mxu0 %v11177_v2  ;;  %1172 = vmatprep.mubr.bf16.mxu1 %v11177_v2 }
  0xa5   :  { %1679 = vmatpush1.bf16.msra.mxu1 %v8324_v51 }
  0xa6   :  { %1680 = vmatprep.subr.bf16.mxu1 %v8330_v52 }
  0xa9   :  { %1681 = vmatpush1.bf16.msra.mxu1 %v8342_v55 }
  0xaa   :  { %1682 = vmatprep.subr.bf16.mxu1 %v8349_v56 }
  0xab   :  { %1014 = vmatmul.mubr.bf16.gmra.mxu0 %v8583_v31  ;;  %1173 = vmatmul.mubr.bf16.gmra.mxu1 %v8478_v16 }
  0xac   :  { %1523 = vmatprep.mubr.bf16.mxu0 %v11177_v2  ;;  %1182 = vmatprep.mubr.bf16.mxu1 %v11177_v2 }
  0xad   :  { %1683 = vmatpush1.bf16.msra.mxu1 %v8364_v60 }
  0xae   :  { %1684 = vmatprep.subr.bf16.mxu1 %v8370_v61 }
  0xb1   :  { %1685 = vmatpush1.bf16.msra.mxu1 %v8375_v62 }
  0xb2   :  { %2437 = vmatprep.subr.bf16.mxu1 %v7584_v32 }
  0xb3   :  { %1524 = vmatmul.mubr.bf16.vlgmr.msra.gmra.mxu0 %v8391_v3  ;;  %1183 = vmatmul.mubr.bf16.gmra.mxu1 %v8493_v18 }
  0xb4   :  { %1844 = vmatpush1.bf16.msra.mxu0 %v7962_v33  ;;  %1192 = vmatprep.mubr.bf16.mxu1 %v11177_v2 }
  0xb5   :  { %1533 = vmatprep.mubr.bf16.mxu0 %v11177_v2  ;;  %1845 = vmatprep.subr.bf16.mxu0 %v7963_v34  ;;  %v7591_v34 = vld [vmem:[%s11166_s4 + $0x40] ss:$8 sps:$4 sm:$0xff]  }
  0xb8   :  { %1846 = vmatpush1.bf16.msra.mxu0 %v7964_v35 }
  0xb9   :  { %1847 = vmatprep.subr.bf16.mxu0 %v7965_v36 }
  0xbb   :  { %1534 = vmatmul.mubr.bf16.gmra.mxu0 %v8419_v11  ;;  %1193 = vmatmul.mubr.bf16.gmra.mxu1 %v8504_v20 }
  0xbc   :  { %1543 = vmatprep.mubr.bf16.mxu0 %v11177_v2  ;;  %1202 = vmatprep.mubr.bf16.mxu1 %v11177_v2 }
  0xbd   :  { %1848 = vmatpush1.bf16.msra.mxu0 %v7966_v37  ;;  %v8759_v37 = vld [vmem:[%s11163_s1 + $0x8] sm:$0xff]  }
  0xbe   :  { %1849 = vmatprep.subr.bf16.mxu0 %v7967_v38 }
  0xc1   :  { %1850 = vmatpush1.bf16.msra.mxu0 %v7968_v39 }
  0xc2   :  { %1851 = vmatprep.subr.bf16.mxu0 %v8386_v0 }
  0xc3   :  { %1544 = vmatmul.mubr.bf16.gmra.mxu0 %v8446_v8  ;;  %1203 = vmatmul.mubr.bf16.gmra.mxu1 %v8515_v22 }
  0xc4   :  { %1553 = vmatprep.mubr.bf16.mxu0 %v11177_v2  ;;  %1212 = vmatprep.mubr.bf16.mxu1 %v11177_v2 }
  0xc5   :  { %1852 = vmatpush1.bf16.msra.mxu0 %v7969_v40 }
  0xc6   :  { %1853 = vmatprep.subr.bf16.mxu0 %v8402_v7 }
  0xc9   :  { %1854 = vmatpush1.bf16.msra.mxu0 %v7970_v41 }
  0xca   :  { %1855 = vmatprep.subr.bf16.mxu0 %v8414_v1 }
  0xcb   :  { %1554 = vmatmul.mubr.bf16.gmra.mxu0 %v8463_v12  ;;  %1213 = vmatmul.mubr.bf16.gmra.mxu1 %v8526_v24  ;;  %v7585_v12 = vld [vmem:[%s11166_s4 + $0x60] ss:$8 sps:$4 sm:$0xff]  }
  0xcc   :  { %1563 = vmatprep.mubr.bf16.mxu0 %v11177_v2  ;;  %1222 = vmatprep.mubr.bf16.mxu1 %v11177_v2 }
  0xcd   :  { %1856 = vmatpush1.bf16.msra.mxu0 %v7971_v42 }
  0xce   :  { %1857 = vmatprep.subr.bf16.mxu0 %v8435_v6 }
  0xd1   :  { %1858 = vmatpush1.bf16.msra.mxu0 %v7972_v43 }
  0xd2   :  { %2770 = vmatprep.subr.bf16.mxu0 %v7632_v27 }
  0xd3   :  { %1564 = vmatmul.mubr.bf16.gmra.mxu0 %v8478_v16  ;;  %1223 = vmatmul.mubr.bf16.gmra.mxu1 %v8537_v26 }
  0xd4   :  { %1573 = vmatprep.mubr.bf16.mxu0 %v11177_v2  ;;  %1232 = vmatprep.mubr.bf16.mxu1 %v11177_v2 }
  0xdb   :  { %1574 = vmatmul.mubr.bf16.gmra.mxu0 %v8493_v18  ;;  %1233 = vmatmul.mubr.bf16.gmra.mxu1 %v8548_v28 }
  0xdc   :  { %1583 = vmatprep.mubr.bf16.mxu0 %v11177_v2  ;;  %1242 = vmatprep.mubr.bf16.mxu1 %v11177_v2 }
  0xe3   :  { %v7095_v44 = vpop.f32.mrf.mxu0  ;;  %1584 = vmatmul.mubr.bf16.gmra.mxu0 %v8504_v20  ;;  %v548_v45 = vpop.f32.mrf.mxu1  ;;  %1243 = vmatmul.mubr.bf16.gmra.mxu1 %v8558_v29 }
  0xe4   :  { %1593 = vmatprep.mubr.bf16.mxu0 %v11177_v2  ;;  %1252 = vmatprep.mubr.bf16.mxu1 %v11177_v2 }
  0xe5   :  { %v7096_v46 = vpop.f32.mrf.mxu0  ;;  %v550_v48 = vpop.f32.mrf.mxu1 }
  0xe6   :  { %v7097_v47 = vadd.f32 %v7096_v46, %v7095_v44  ;;  %v7599_v46 = vld [vmem:[%s11166_s4 + $0x24] ss:$8 sps:$4 sm:$0xff]  }
  0xe7   :  { %v7098_v50 = vpop.f32.mrf.mxu0  ;;  %v552_v51 = vpop.f32.mrf.mxu1 }
  0xe8   :  { %v231_v53 = vadd.f32 %v7097_v47, %v6439_v49 }
  0xe9   :  { %v7099_v52 = vpop.f32.mrf.mxu0  ;;  %v554_v55 = vpop.f32.mrf.mxu1 }
  0xea   :  { %v7100_v54 = vadd.f32 %v7099_v52, %v7098_v50  ;;  %v237_v58 = vmax.f32 %v231_v53, 0.0  ;;  %v7597_v50 = vld [vmem:[%s11166_s4 + $0x20] ss:$8 sps:$4 sm:$0xff]   ;;  %v8800_v53 = vld [vmem:[%s11163_s1 + $0x10] sm:$0xff]  }
  0xeb   :  { %1594 = vmatmul.mubr.bf16.gmra.mxu0 %v8515_v22  ;;  %v558_v57 = vpop.f32.mrf.mxu1  ;;  %1253 = vmatmul.mubr.bf16.gmra.mxu1 %v8570_v30  ;;  %v7588_v22 = vld [vmem:[%s11166_s4 + $0x50] ss:$8 sps:$4 sm:$0xff]  }
  0xec   :  { %v234_v56 = vadd.f32 %v7100_v54, %v6439_v49  ;;  %1603 = vmatprep.mubr.bf16.mxu0 %v11177_v2  ;;  %1262 = vmatprep.mubr.bf16.mxu1 %v11177_v2 }
  0xed   :  { %v8671_v60 = vpop.f32.mrf.mxu1 }
  0xee   :  { %v238_v59 = vmax.f32 %v234_v56, 0.0 }
  0xef   :  { %v8675_v62 = vpop.f32.mrf.mxu1 }
  0xf0   :  { %v8673_v61 = vpack.c.bf16 %v238_v59, %v237_v58 }
  0xf1   :  { %v8677_v63 = vpop.f32.mrf.mxu1 }
  0xf2   :  { %11194 = vst [vmem:[#allocation6_spill] sm:$0xff] %v8673_v61 }
  0xf3   :  { %1604 = vmatmul.mubr.bf16.gmra.mxu0 %v8526_v24  ;;  %v8680_v0 = vpop.f32.mrf.mxu1  ;;  %1263 = vmatmul.mubr.bf16.gmra.mxu1 %v8583_v31 }
  0xf4   :  { %1613 = vmatprep.mubr.bf16.mxu0 %v11177_v2  ;;  %1272 = vmatprep.mubr.bf16.mxu1 %v11177_v2 }
  0xf5   :  { %v8685_v3 = vpop.f32.mrf.mxu1 }
  0xf7   :  { %v8690_v7 = vpop.f32.mrf.mxu1 }
  0xf9   :  { %v8692_v9 = vpop.f32.mrf.mxu1 }
  0xfb   :  { %1614 = vmatmul.mubr.bf16.gmra.mxu0 %v8537_v26  ;;  %v8695_v1 = vpop.f32.mrf.mxu1  ;;  %1273 = vmatmul.mubr.bf16.gmra.mxu1 %v7580_v5  ;;  %v7593_v26 = vld [vmem:[%s11166_s4 + $0x44] ss:$8 sps:$4 sm:$0xff]  }
  0xfc   :  { %1623 = vmatprep.mubr.bf16.mxu0 %v11177_v2  ;;  %1702 = vmatprep.mubr.bf16.mxu1 %v11177_v2 }
  0xfd   :  { %v8699_v11 = vpop.f32.mrf.mxu1 }
  0xff   :  { %v8707_v6 = vpop.f32.mrf.mxu1 }
 0x101   :  { %v8712_v8 = vpop.f32.mrf.mxu1 }
 0x103   :  { %v885_v10 = vpop.f32.mrf.mxu0  ;;  %1624 = vmatmul.mubr.bf16.gmra.mxu0 %v8548_v28  ;;  %v8718_v14 = vpop.f32.mrf.mxu1  ;;  %1703 = vmatmul.mubr.bf16.vlgmr.msra.gmra.mxu1 %v7581_v4 }
 0x104   :  { %v8720_v16 = vadd.f32 %v885_v10, %v548_v45  ;;  %1633 = vmatprep.mubr.bf16.mxu0 %v11177_v2  ;;  %1712 = vmatprep.mubr.bf16.mxu1 %v11177_v2  ;;  %v7594_v45 = vld [vmem:[%s11166_s4 + $0x30] ss:$8 sps:$4 sm:$0xff]  }
 0x105   :  { %v887_v18 = vpop.f32.mrf.mxu0  ;;  %2438 = vmatpush1.bf16.msra.mxu1 %v7582_v13  ;;  %v8727_v19 = vpop.f32.mrf.mxu1 }
 0x106   :  { %v8729_v20 = vadd.f32 %v887_v18, %v550_v48  ;;  %2439 = vmatprep.subr.bf16.mxu1 %v7587_v15  ;;  %v8841_v15 = vld [vmem:[%s11163_s1 + $0x18] sm:$0xff]  }
 0x107   :  { %v889_v21 = vpop.f32.mrf.mxu0  ;;  %v8734_v23 = vpop.f32.mrf.mxu1 }
 0x108   :  { %v8736_v24 = vadd.f32 %v889_v21, %v552_v51 }
 0x109   :  { %v891_v25 = vpop.f32.mrf.mxu0  ;;  %2440 = vmatpush1.bf16.msra.mxu1 %v7585_v12  ;;  %v8744_v28 = vpop.f32.mrf.mxu1 }
 0x10a   :  { %v8746_v32 = vadd.f32 %v891_v25, %v554_v55  ;;  %2441 = vmatprep.subr.bf16.mxu1 %v7590_v17 }
 0x10b   :  { %v895_v33 = vpop.f32.mrf.mxu0  ;;  %1634 = vmatmul.mubr.bf16.gmra.mxu0 %v8558_v29  ;;  %v8752_v35 = vpop.f32.mrf.mxu1  ;;  %1713 = vmatmul.mubr.bf16.gmra.mxu1 %v8759_v37  ;;  %v7596_v29 = vld [vmem:[%s11166_s4 + $0x34] ss:$8 sps:$4 sm:$0xff]  }
 0x10c   :  { %v8754_v36 = vadd.f32 %v895_v33, %v558_v57  ;;  %1643 = vmatprep.mubr.bf16.mxu0 %v11177_v2  ;;  %1722 = vmatprep.mubr.bf16.mxu1 %v11177_v2 }
 0x10d   :  { %v897_v38 = vpop.f32.mrf.mxu0  ;;  %2442 = vmatpush1.bf16.msra.mxu1 %v7588_v22  ;;  %v8767_v39 = vpop.f32.mrf.mxu1 }
 0x10e   :  { %v8770_v40 = vadd.f32 %v897_v38, %v8671_v60  ;;  %2443 = vmatprep.subr.bf16.mxu1 %v7593_v26 }
 0x10f   :  { %v899_v41 = vpop.f32.mrf.mxu0  ;;  %v8772_v42 = vpop.f32.mrf.mxu1 }
 0x110   :  { %v8775_v43 = vadd.f32 %v899_v41, %v8675_v62  ;;  %v7600_v62 = vld [vmem:[%s11166_s4 + $0x10] ss:$8 sps:$4 sm:$0xff]  }
 0x111   :  { %v901_v44 = vpop.f32.mrf.mxu0  ;;  %2444 = vmatpush1.bf16.msra.mxu1 %v7591_v34  ;;  %v8783_v47 = vpop.f32.mrf.mxu1 }
 0x112   :  { %v8786_v48 = vadd.f32 %v901_v44, %v8677_v63  ;;  %2445 = vmatprep.subr.bf16.mxu1 %v7596_v29  ;;  %v7605_v63 = vld [vmem:[%s11166_s4 + $0x4] ss:$8 sps:$4 sm:$0xff]  }
 0x113   :  { %v905_v49 = vpop.f32.mrf.mxu0  ;;  %1644 = vmatmul.mubr.bf16.gmra.mxu0 %v8570_v30  ;;  %v8792_v51 = vpop.f32.mrf.mxu1  ;;  %1723 = vmatmul.mubr.bf16.gmra.mxu1 %v8800_v53  ;;  %v7602_v30 = vld [vmem:[%s11166_s4 + $0x14] ss:$8 sps:$4 sm:$0xff]  }
 0x114   :  { %v8795_v52 = vadd.f32 %v905_v49, %v8680_v0  ;;  %1653 = vmatprep.mubr.bf16.mxu0 %v11177_v2  ;;  %1732 = vmatprep.mubr.bf16.mxu1 %v11177_v2 }
 0x115   :  { %v907_v54 = vpop.f32.mrf.mxu0  ;;  %2446 = vmatpush1.bf16.msra.mxu1 %v7594_v45  ;;  %v8808_v55 = vpop.f32.mrf.mxu1 }
 0x116   :  { %v8811_v56 = vadd.f32 %v907_v54, %v8685_v3  ;;  %2447 = vmatprep.subr.bf16.mxu1 %v7599_v46 }
 0x117   :  { %v909_v57 = vpop.f32.mrf.mxu0  ;;  %v8813_v58 = vpop.f32.mrf.mxu1 }
 0x118   :  { %v8816_v59 = vadd.f32 %v909_v57, %v8690_v7  ;;  %v7603_v7 = vld [vmem:[%s11166_s4] ss:$8 sps:$4 sm:$0xff]  }
 0x119   :  { %v911_v60 = vpop.f32.mrf.mxu0  ;;  %2448 = vmatpush1.bf16.msra.mxu1 %v7597_v50  ;;  %v8824_v0 = vpop.f32.mrf.mxu1 }
 0x11a   :  { %v8827_v3 = vadd.f32 %v911_v60, %v8692_v9  ;;  %2449 = vmatprep.subr.bf16.mxu1 %v7602_v30 }
 0x11b   :  { %v915_v5 = vpop.f32.mrf.mxu0  ;;  %1654 = vmatmul.mubr.bf16.gmra.mxu0 %v8583_v31  ;;  %v8833_v4 = vpop.f32.mrf.mxu1  ;;  %1733 = vmatmul.mubr.bf16.gmra.mxu1 %v8841_v15 }
 0x11c   :  { %v8836_v13 = vadd.f32 %v915_v5, %v8695_v1  ;;  %1875 = vmatprep.mubr.bf16.mxu0 %v11177_v2  ;;  %1742 = vmatprep.mubr.bf16.mxu1 %v11177_v2 }
 0x11d   :  { %v917_v9 = vpop.f32.mrf.mxu0  ;;  %2450 = vmatpush1.bf16.msra.mxu1 %v7600_v62 }
 0x11e   :  { %19 = vsyncpa [#allocation4], 0  ;;  %v8846_v31 = vpop.f32.mrf.mxu1  ;;  %v8849_v10 = vadd.f32 %v917_v9, %v8699_v11  ;;  %2451 = vmatprep.subr.bf16.mxu1 %v7605_v63  ;;  %v7608_v1 = vld [vmem:[%s11166_s4 + $0xf4] ss:$8 sps:$4 sm:$0xff]   ;;  %v7606_v22 = vld [vmem:[%s11166_s4 + $0xf0] ss:$8 sps:$4 sm:$0xff]  }
 0x11f   :  { %v919_v12 = vpop.f32.mrf.mxu0  ;;  %v7611_v26 = vld [vmem:[%s11166_s4 + $0xe4] ss:$8 sps:$4 sm:$0xff]   ;;  %v7614_v44 = vld [vmem:[%s11166_s4 + $0xd4] ss:$8 sps:$4 sm:$0xff]   ;;  %v7636_v45 = vld [vmem:[%s11166_s4 + $0x160] ss:$8 sps:$4 sm:$0xff]  }
 0x120   :  { %v8854_v17 = vpop.f32.mrf.mxu1  ;;  %v8857_v18 = vadd.f32 %v919_v12, %v8707_v6  ;;  %v7630_v6 = vld [vmem:[%s11166_s4 + $0x170] ss:$8 sps:$4 sm:$0xff]   ;;  %v7638_v33 = vld [vmem:[%s11166_s4 + $0x164] ss:$8 sps:$4 sm:$0xff]   ;;  %v7644_v49 = vld [vmem:[%s11166_s4 + $0x154] ss:$8 sps:$4 sm:$0xff]  }
 0x121   :  { %v921_v21 = vpop.f32.mrf.mxu0  ;;  %2452 = vmatpush1.bf16.msra.mxu1 %v7603_v7  ;;  %v8885_v29 = vld [vmem:[%s11163_s1 + $0x20] sm:$0xff]   ;;  %v7612_v54 = vld [vmem:[%s11166_s4 + $0xd0] ss:$8 sps:$4 sm:$0xff]   ;;  %v8938_v9 = vld [vmem:[%s11163_s1 + $0x28] sm:$0xff]   ;;  %vm8011_vm0 = vmmov 0   ;;  %vm4193_vm1 = vcmask 523264  }
 0x122   :  { %v8862_v25 = vpop.f32.mrf.mxu1  ;;  %v8865_v11 = vadd.f32 %v921_v21, %v8712_v8  ;;  %2453 = vmatprep.subr.bf16.mxu1 %v7608_v1  ;;  %v7617_v62 = vld [vmem:[%s11166_s4 + $0xc4] ss:$8 sps:$4 sm:$0xff]   ;;  %v7615_v1 = vld [vmem:[%s11166_s4 + $0xc0] ss:$8 sps:$4 sm:$0xff]   ;;  %v7620_v21 = vld [vmem:[%s11166_s4 + $0xb4] ss:$8 sps:$4 sm:$0xff]  }
 0x123   :  { %v925_v27 = vpop.f32.mrf.mxu0  ;;  %1876 = vmatmul.mubr.bf16.vlgmr.msra.gmra.mxu0 %v8759_v37  ;;  %1743 = vmatmul.mubr.bf16.gmra.mxu1 %v8885_v29  ;;  %v7609_v37 = vld [vmem:[%s11166_s4 + $0xe0] ss:$8 sps:$4 sm:$0xff]   ;;  %v7650_v5 = vld [vmem:[%s11166_s4 + $0x144] ss:$8 sps:$4 sm:$0xff]   ;;  %v7690_v61 = vld [vmem:[%s11166_s4 + $0x1d0] ss:$8 sps:$4 sm:$0xff]  }
 0x124   :  { %v8877_v34 = vpop.f32.mrf.mxu1  ;;  %v8880_v8 = vadd.f32 %v925_v27, %v8718_v14  ;;  %1885 = vmatprep.mubr.bf16.mxu0 %v11177_v2  ;;  %1752 = vmatprep.mubr.bf16.mxu1 %v11177_v2  ;;  %vm6420_vm2 = vcmask 80896   ;;  %s8012_s29 = smov [#allocation3]  }
 0x125   :  { %v927_v38 = vpop.f32.mrf.mxu0  ;;  %2454 = vmatpush2.bf16.msra.mxu1 %v7606_v22  ;;  %2771 = vmatpush1.bf16.msra.mxu0 %v7630_v6  ;;  %v7648_v22 = vld [vmem:[%s11166_s4 + $0x140] ss:$8 sps:$4 sm:$0xff]   ;;  %v7656_v6 = vld [vmem:[%s11166_s4 + $0x134] ss:$8 sps:$4 sm:$0xff]  }
 0x126   :  { %v8893_v41 = vpop.f32.mrf.mxu1  ;;  %v8896_v14 = vadd.f32 %v927_v38, %v8727_v19  ;;  %2455 = vmatprep.subr.bf16.mxu1 %v7611_v26  ;;  %2772 = vmatprep.subr.bf16.mxu0 %v7638_v33  ;;  %v7618_v38 = vld [vmem:[%s11166_s4 + $0xb0] ss:$8 sps:$4 sm:$0xff]  }
 0x127   :  { %v929_v46 = vpop.f32.mrf.mxu0 }
 0x128   :  { %v8907_v50 = vpop.f32.mrf.mxu1  ;;  %v8910_v19 = vadd.f32 %v929_v46, %v8734_v23  ;;  %v7642_v23 = vld [vmem:[%s11166_s4 + $0x150] ss:$8 sps:$4 sm:$0xff]  }
 0x129   :  { %v931_v30 = vpop.f32.mrf.mxu0  ;;  %2456 = vmatpush2.bf16.msra.mxu1 %v7609_v37  ;;  %2773 = vmatpush1.bf16.msra.mxu0 %v7636_v45  ;;  %v7623_v45 = vld [vmem:[%s11166_s4 + $0xa4] ss:$8 sps:$4 sm:$0xff]  }
 0x12a   :  { %v8915_v57 = vpop.f32.mrf.mxu1  ;;  %v8918_v60 = vadd.f32 %v931_v30, %v8744_v28  ;;  %2457 = vmatprep.subr.bf16.mxu1 %v7614_v44  ;;  %2774 = vmatprep.subr.bf16.mxu0 %v7644_v49  ;;  %v7662_v49 = vld [vmem:[%s11166_s4 + $0x124] ss:$8 sps:$4 sm:$0xff]  }
 0x12b   :  { %v935_v63 = vpop.f32.mrf.mxu0  ;;  %1886 = vmatmul.mubr.bf16.gmra.mxu0 %v8800_v53  ;;  %1753 = vmatmul.mubr.bf16.gmra.mxu1 %v8938_v9 }
 0x12c   :  { %v8930_v28 = vpop.f32.mrf.mxu1  ;;  %v8933_v7 = vadd.f32 %v935_v63, %v8752_v35  ;;  %1895 = vmatprep.mubr.bf16.mxu0 %v11177_v2  ;;  %1762 = vmatprep.mubr.bf16.mxu1 %v11177_v2  ;;  %v7626_v63 = vld [vmem:[%s11166_s4 + $0x94] ss:$8 sps:$4 sm:$0xff]  }
 0x12d   :  { %v937_v53 = vpop.f32.mrf.mxu0  ;;  %2458 = vmatpush2.bf16.msra.mxu1 %v7612_v54  ;;  %2775 = vmatpush1.bf16.msra.mxu0 %v7642_v23  ;;  %v8991_v54 = vld [vmem:[%s11163_s1 + $0x30] sm:$0xff]  }
 0x12e   :  { %v8946_v12 = vpop.f32.mrf.mxu1  ;;  %v8949_v35 = vadd.f32 %v937_v53, %v8767_v39  ;;  %2459 = vmatprep.subr.bf16.mxu1 %v7617_v62  ;;  %2776 = vmatprep.subr.bf16.mxu0 %v7650_v5  ;;  %v7621_v62 = vld [vmem:[%s11166_s4 + $0xa0] ss:$8 sps:$4 sm:$0xff]  }
 0x12f   :  { %v939_v26 = vpop.f32.mrf.mxu0  ;;  %v7660_v5 = vld [vmem:[%s11166_s4 + $0x120] ss:$8 sps:$4 sm:$0xff]  }
 0x130   :  { %v8960_v27 = vpop.f32.mrf.mxu1  ;;  %v8963_v39 = vadd.f32 %v939_v26, %v8772_v42  ;;  %v7654_v42 = vld [vmem:[%s11166_s4 + $0x130] ss:$8 sps:$4 sm:$0xff]  }
 0x131   :  { %v941_v33 = vpop.f32.mrf.mxu0  ;;  %2460 = vmatpush2.bf16.msra.mxu1 %v7615_v1  ;;  %2777 = vmatpush1.bf16.msra.mxu0 %v7648_v22  ;;  %v7668_v1 = vld [vmem:[%s11166_s4 + $0x114] ss:$8 sps:$4 sm:$0xff]   ;;  %v7624_v26 = vld [vmem:[%s11166_s4 + $0x90] ss:$8 sps:$4 sm:$0xff]  }
 0x132   :  { %v8968_v37 = vpop.f32.mrf.mxu1  ;;  %v8971_v44 = vadd.f32 %v941_v33, %v8783_v47  ;;  %2461 = vmatprep.subr.bf16.mxu1 %v7620_v21  ;;  %2778 = vmatprep.subr.bf16.mxu0 %v7656_v6 }
 0x133   :  { %v945_v46 = vpop.f32.mrf.mxu0  ;;  %1896 = vmatmul.mubr.bf16.gmra.mxu0 %v8841_v15  ;;  %1763 = vmatmul.mubr.bf16.gmra.mxu1 %v8991_v54 }
 0x134   :  { %v8983_v47 = vpop.f32.mrf.mxu1  ;;  %v8986_v30 = vadd.f32 %v945_v46, %v8792_v51  ;;  %1905 = vmatprep.mubr.bf16.mxu0 %v11177_v2  ;;  %1772 = vmatprep.mubr.bf16.mxu1 %v11177_v2 }
 0x135   :  { %v947_v15 = vpop.f32.mrf.mxu0  ;;  %2462 = vmatpush2.bf16.msra.mxu1 %v7618_v38  ;;  %2779 = vmatpush1.bf16.msra.mxu0 %v7654_v42  ;;  %v7629_v38 = vld [vmem:[%s11166_s4 + $0x84] ss:$8 sps:$4 sm:$0xff]  }
 0x136   :  { %v8999_v23 = vpop.f32.mrf.mxu1  ;;  %v9002_v51 = vadd.f32 %v947_v15, %v8808_v55  ;;  %2463 = vmatprep.subr.bf16.mxu1 %v7623_v45  ;;  %2780 = vmatprep.subr.bf16.mxu0 %v7662_v49  ;;  %v7674_v42 = vld [vmem:[%s11166_s4 + $0x104] ss:$8 sps:$4 sm:$0xff]   ;;  %v9044_v49 = vld [vmem:[%s11163_s1 + $0x38] sm:$0xff]   ;;  %v7627_v15 = vld [vmem:[%s11166_s4 + $0x80] ss:$8 sps:$4 sm:$0xff]  }
 0x137   :  { %v949_v53 = vpop.f32.mrf.mxu0 }
 0x138   :  { %v9013_v21 = vpop.f32.mrf.mxu1  ;;  %v9016_v55 = vadd.f32 %v949_v53, %v8813_v58  ;;  %v7666_v58 = vld [vmem:[%s11166_s4 + $0x110] ss:$8 sps:$4 sm:$0xff]  }
 0x139   :  { %v951_v22 = vpop.f32.mrf.mxu0  ;;  %2464 = vmatpush2.bf16.msra.mxu1 %v7621_v62  ;;  %2781 = vmatpush1.bf16.msra.mxu0 %v7660_v5  ;;  %v7672_v5 = vld [vmem:[%s11166_s4 + $0x100] ss:$8 sps:$4 sm:$0xff]  }
 0x13a   :  { %v9021_v6 = vpop.f32.mrf.mxu1  ;;  %v9024_v33 = vadd.f32 %v951_v22, %v8824_v0  ;;  %2465 = vmatprep.subr.bf16.mxu1 %v7626_v63  ;;  %2782 = vmatprep.subr.bf16.mxu0 %v7668_v1  ;;  %v7635_v63 = vld [vmem:[%s11166_s4 + $0x274] ss:$8 sps:$4 sm:$0xff]  }
 0x13b   :  { %v955_v45 = vpop.f32.mrf.mxu0  ;;  %1906 = vmatmul.mubr.bf16.gmra.mxu0 %v8885_v29  ;;  %1773 = vmatmul.mubr.bf16.gmra.mxu1 %v9044_v49 }
 0x13c   :  { %v9036_v0 = vpop.f32.mrf.mxu1  ;;  %v9039_v46 = vadd.f32 %v955_v45, %v8833_v4  ;;  %1915 = vmatprep.mubr.bf16.mxu0 %v11177_v2  ;;  %1782 = vmatprep.mubr.bf16.mxu1 %v11177_v2  ;;  %v7678_v45 = vld [vmem:[%s11166_s4 + $0x1f0] ss:$8 sps:$4 sm:$0xff]  }
 0x13d   :  { %v957_v29 = vpop.f32.mrf.mxu0  ;;  %2466 = vmatpush2.bf16.msra.mxu1 %v7624_v26  ;;  %2783 = vmatpush1.bf16.msra.mxu0 %v7666_v58 }
 0x13e   :  { %v9052_v62 = vpop.f32.mrf.mxu1  ;;  %v9055_v4 = vadd.f32 %v957_v29, %v8846_v31  ;;  %2467 = vmatprep.subr.bf16.mxu1 %v7629_v38  ;;  %2784 = vmatprep.subr.bf16.mxu0 %v7674_v42  ;;  %v7680_v31 = vld [vmem:[%s11166_s4 + $0x1f4] ss:$8 sps:$4 sm:$0xff]  }
 0x13f   :  { %v959_v53 = vpop.f32.mrf.mxu0 }
 0x140   :  { %v9063_v1 = vpop.f32.mrf.mxu1  ;;  %v9066_v22 = vadd.f32 %v959_v53, %v8854_v17  ;;  %v7686_v53 = vld [vmem:[%s11166_s4 + $0x1e4] ss:$8 sps:$4 sm:$0xff]  }
 0x141   :  { %v961_v26 = vpop.f32.mrf.mxu0  ;;  %2468 = vmatpush2.bf16.msra.mxu1 %v7627_v15  ;;  %2785 = vmatpush1.bf16.msra.mxu0 %v7672_v5  ;;  %v7684_v5 = vld [vmem:[%s11166_s4 + $0x1e0] ss:$8 sps:$4 sm:$0xff]  }
 0x142   :  { %11195 = vst [vmem:[#allocation7_spill] sm:$0xff] %v9066_v22  ;;  %v9071_v38 = vpop.f32.mrf.mxu1  ;;  %v9074_v58 = vadd.f32 %v961_v26, %v8862_v25  ;;  %3136 = vmatprep.subr.bf16.mxu1 %v7635_v63  ;;  %2786 = vmatprep.subr.bf16.mxu0 %v7680_v31  ;;  %v9088_v25 = vld [vmem:[%s11163_s1 + $0x40] sm:$0xff]  }
 0x143   :  { %v965_v42 = vpop.f32.mrf.mxu0  ;;  %1916 = vmatmul.mubr.bf16.gmra.mxu0 %v8938_v9  ;;  %1783 = vmatmul.mubr.bf16.gmra.mxu1 %v9088_v25 }
 0x144   :  { %11196 = vst [vmem:[#allocation8_spill] sm:$0xff] %v9074_v58  ;;  %v9080_v17 = vpop.f32.mrf.mxu1  ;;  %v9083_v29 = vadd.f32 %v965_v42, %v8877_v34  ;;  %1925 = vmatprep.mubr.bf16.mxu0 %v11177_v2  ;;  %1792 = vmatprep.mubr.bf16.mxu1 %v11177_v2  ;;  %v1341_v2 = vlaneseq }
 0x145   :  { %v967_v15 = vpop.f32.mrf.mxu0  ;;  %2787 = vmatpush2.bf16.msra.mxu0 %v7678_v45 }
 0x146   :  { %11197 = vst [vmem:[#allocation9_spill] sm:$0xff] %v9083_v29  ;;  %v9093_v63 = vpop.f32.mrf.mxu1  ;;  %v9096_v9 = vadd.f32 %v967_v15, %v8893_v41  ;;  %2788 = vmatprep.subr.bf16.mxu0 %v7686_v53 }
 0x147   :  { %v969_v34 = vpop.f32.mrf.mxu0 }
 0x148   :  { %11198 = vst [vmem:[#allocation10_spill] sm:$0xff] %v9096_v9  ;;  %v9104_v26 = vpop.f32.mrf.mxu1  ;;  %v9107_v31 = vadd.f32 %v969_v34, %v8907_v50  ;;  %v7692_v50 = vld [vmem:[%s11166_s4 + $0x1d4] ss:$8 sps:$4 sm:$0xff]  }
 0x149   :  { %v971_v42 = vpop.f32.mrf.mxu0  ;;  %2789 = vmatpush2.bf16.msra.mxu0 %v7684_v5 }
 0x14a   :  { %11199 = vst [vmem:[#allocation11_spill] sm:$0xff] %v9107_v31  ;;  %v9109_v41 = vpop.f32.mrf.mxu1  ;;  %v9112_v45 = vadd.f32 %v971_v42, %v8915_v57  ;;  %v9129_v57 = vld [vmem:[%s11163_s1 + $0x48] sm:$0xff]   ;;  %v9134_v42 = vshrl.u32 %v1341_v2, 7  ;;  %2790 = vmatprep.subr.bf16.mxu0 %v7692_v50 }
 0x14b   :  { %v975_v15 = vpop.f32.mrf.mxu0  ;;  %1926 = vmatmul.mubr.bf16.gmra.mxu0 %v8991_v54  ;;  %1793 = vmatmul.mubr.bf16.gmra.mxu1 %v9129_v57  ;;  %v11202_v54 = vmov 0   ;;  %v7699_v2 = vld [vmem:[%s11166_s4 + $0x1c0] ss:$8 sps:$4 sm:$0xff]   ;;  %v7701_v50 = vld [vmem:[%s11166_s4 + $0x1c4] ss:$8 sps:$4 sm:$0xff]  }
 0x14c   :  { %11200 = vst [vmem:[#allocation12_spill] sm:$0xff] %v9112_v45  ;;  %v9121_v34 = vpop.f32.mrf.mxu1  ;;  %v9124_v53 = vadd.f32 %v975_v15, %v8930_v28  ;;  %1935 = vmatprep.mubr.bf16.mxu0 %v11202_v54  ;;  %1802 = vmatprep.mubr.bf16.mxu1 %v11202_v54  ;;  %11203 = vst [vmem:[#allocation14_spill] sm:$0xff] %v9134_v42 }
 0x14d   :  { %v977_v5 = vpop.f32.mrf.mxu0  ;;  %2791 = vmatpush2.bf16.msra.mxu0 %v7690_v61 }
 0x14e   :  { %11201 = vst [vmem:[#allocation13_spill] sm:$0xff] %v9124_v53  ;;  %v9136_v45 = vpop.f32.mrf.mxu1  ;;  %v9139_v28 = vadd.f32 %v977_v5, %v8946_v12  ;;  %2792 = vmatprep.subr.bf16.mxu0 %v7701_v50 }
 0x14f   :  { %v979_v15 = vpop.f32.mrf.mxu0 }
 0x150   :  { %11204 = vst [vmem:[#allocation15_spill] sm:$0xff] %v9139_v28  ;;  %v9141_v53 = vpop.f32.mrf.mxu1  ;;  %v9144_v31 = vadd.f32 %v979_v15, %v8960_v27  ;;  %v1339_v27 = vld [vmem:[%s11169_s7] sm:$0x3]  ;;  %v9169_v28 = vld [vmem:[%s11163_s1 + $0x50] sm:$0xff]  }
 0x151   :  { %v981_v9 = vpop.f32.mrf.mxu0  ;;  %2793 = vmatpush2.bf16.msra.mxu0 %v7699_v2 }
 0x152   :  { %11205 = vst [vmem:[#allocation16_spill] sm:$0xff] %v9144_v31  ;;  %v9153_v12 = vpop.f32.mrf.mxu1  ;;  %v9156_v61 = vadd.f32 %v981_v9, %v8968_v37 }
 0x153   :  { %v985_v5 = vpop.f32.mrf.mxu0  ;;  %1936 = vmatmul.mubr.bf16.gmra.mxu0 %v9044_v49  ;;  %1803 = vmatmul.mubr.bf16.gmra.mxu1 %v9169_v28  ;;  %v11208_v49 = vsub.s32 0, %v9134_v42 }
 0x154   :  { %11206 = vst [vmem:[#allocation17_spill] sm:$0xff] %v9156_v61  ;;  %v9164_v29 = vadd.f32 %v985_v5, %v8983_v47  ;;  %v1144_v31 = vpop.f32.mrf.mxu1  ;;  %1945 = vmatprep.mubr.bf16.mxu0 %v11202_v54  ;;  %1812 = vmatprep.mubr.bf16.mxu1 %v11202_v54 }
 0x155   :  { %v1283_v37 = vadd.f32 %v1144_v31, %v8720_v16  ;;  %v9176_v9 = vrot.slane %v1339_v27, %v11208_v49  ;;  %v987_v50 = vpop.f32.mrf.mxu0 }
 0x156   :  { %11207 = vst [vmem:[#allocation18_spill] sm:$0xff] %v9164_v29  ;;  %v9180_v47 = vadd.f32 %v987_v50, %v8999_v23  ;;  %v1146_v5 = vpop.f32.mrf.mxu1  ;;  %v11209_v29 = vsub.s32 1, %v9134_v42  ;;  %v7705_v23 = vld [vmem:[%s11166_s4 + $0x1b0] ss:$8 sps:$4 sm:$0xff]  }
 0x157   :  { %v1284_v15 = vadd.f32 %v1146_v5, %v8729_v20  ;;  %v989_v58 = vpop.f32.mrf.mxu0  ;;  %v1351_v49 = vadd.f32 %v9176_v9, %v1283_v37  ;;  %v7707_v20 = vld [vmem:[%s11166_s4 + $0x1b4] ss:$8 sps:$4 sm:$0xff]  }
 0x158   :  { %v9185_v61 = vrot.slane %v1339_v27, %v11209_v29  ;;  %v9188_v16 = vadd.f32 %v989_v58, %v9013_v21  ;;  %v1148_v31 = vpop.f32.mrf.mxu1  ;;  %2794 = vmatprep.subr.bf16.mxu0 %v7707_v20 }
 0x159   :  { %v1285_v22 = vadd.f32 %v1148_v31, %v8736_v24  ;;  %v991_v2 = vpop.f32.mrf.mxu0  ;;  %2795 = vmatpush2.bf16.msra.mxu0 %v7705_v23 }
 0x15a   :  { %v9199_v29 = vadd.f32 %v991_v2, %v9021_v6  ;;  %v1150_v27 = vpop.f32.mrf.mxu1  ;;  %v1352_v21 = vadd.f32 %v9185_v61, %v1284_v15  ;;  %v9211_v6 = vld [vmem:[%s11163_s1 + $0x58] sm:$0xff]  }
 0x15b   :  { %v1353_v58 = vadd.f32 %v9176_v9, %v1285_v22  ;;  %v1286_v37 = vadd.f32 %v1150_v27, %v8746_v32  ;;  %v995_v24 = vpop.f32.mrf.mxu0  ;;  %1946 = vmatmul.mubr.bf16.gmra.mxu0 %v9088_v25  ;;  %1813 = vmatmul.mubr.bf16.gmra.mxu1 %v9211_v6  ;;  %v1407_v22 = vmax.f32 %v1351_v49, 0.0 }
 0x15c   :  { %v9206_v50 = vadd.f32 %v995_v24, %v9036_v0  ;;  %v1154_v5 = vpop.f32.mrf.mxu1  ;;  %1955 = vmatprep.mubr.bf16.mxu0 %v11202_v54  ;;  %1822 = vmatprep.mubr.bf16.mxu1 %v11202_v54  ;;  %v1408_v20 = vmax.f32 %v1352_v21, 0.0 }
 0x15d   :  { %v1409_v15 = vmax.f32 %v1353_v58, 0.0  ;;  %v1354_v32 = vadd.f32 %v9185_v61, %v1286_v37  ;;  %v1287_v25 = vadd.f32 %v1154_v5, %v8754_v36  ;;  %v997_v31 = vpop.f32.mrf.mxu0  ;;  %v7714_v58 = vld [vmem:[%s11166_s4 + $0x1a0] ss:$8 sps:$4 sm:$0xff]   ;;  %v7716_v36 = vld [vmem:[%s11166_s4 + $0x1a4] ss:$8 sps:$4 sm:$0xff]  }
 0x15e   :  { %v9219_v0 = vadd.f32 %v997_v31, %v9052_v62  ;;  %v1156_v2 = vpop.f32.mrf.mxu1  ;;  %2796 = vmatprep.subr.bf16.mxu0 %v7716_v36 }
 0x15f   :  { %v9221_v27 = vpack.c.bf16 %v1409_v15, %v1407_v22  ;;  %v1410_v24 = vmax.f32 %v1354_v32, 0.0  ;;  %v1288_v42 = vadd.f32 %v1156_v2, %v8770_v40  ;;  %v999_v49 = vpop.f32.mrf.mxu0  ;;  %v1355_v21 = vadd.f32 %v9176_v9, %v1287_v25  ;;  %2797 = vmatpush2.bf16.msra.mxu0 %v7714_v58 }
 0x160   :  { %v9231_v23 = vadd.f32 %v999_v49, %v9063_v1  ;;  %v1158_v62 = vpop.f32.mrf.mxu1 }
 0x161   :  { %v1289_v37 = vadd.f32 %v1158_v62, %v8775_v43  ;;  %v1001_v5 = vpop.f32.mrf.mxu0  ;;  %v9235_v22 = vpack.c.bf16 %v1410_v24, %v1408_v20  ;;  %v1356_v32 = vadd.f32 %v9185_v61, %v1288_v42  ;;  %v1411_v42 = vmax.f32 %v1355_v21, 0.0 }
 0x162   :  { %v9238_v40 = vadd.f32 %v1001_v5, %v9071_v38  ;;  %v1160_v15 = vpop.f32.mrf.mxu1  ;;  %v9250_v38 = vld [vmem:[%s11163_s1 + $0x60] sm:$0xff]  }
 0x163   :  { %v1357_v31 = vadd.f32 %v9176_v9, %v1289_v37  ;;  %v1290_v1 = vadd.f32 %v1160_v15, %v8786_v48  ;;  %v1005_v2 = vpop.f32.mrf.mxu0  ;;  %1956 = vmatmul.mubr.bf16.gmra.mxu0 %v9129_v57  ;;  %1823 = vmatmul.mubr.bf16.gmra.mxu1 %v9250_v38  ;;  %v1412_v58 = vmax.f32 %v1356_v32, 0.0 }
 0x164   :  { %v9245_v43 = vadd.f32 %v1005_v2, %v9080_v17  ;;  %v1164_v25 = vpop.f32.mrf.mxu1  ;;  %1965 = vmatprep.mubr.bf16.mxu0 %v11202_v54  ;;  %1832 = vmatprep.mubr.bf16.mxu1 %v11202_v54 }
 0x165   :  { %v1413_v20 = vmax.f32 %v1357_v31, 0.0  ;;  %v1358_v48 = vadd.f32 %v9185_v61, %v1290_v1  ;;  %v1291_v24 = vadd.f32 %v1164_v25, %v8795_v52  ;;  %v1007_v57 = vpop.f32.mrf.mxu0 }
 0x166   :  { %v9258_v17 = vadd.f32 %v1007_v57, %v9093_v63  ;;  %v1166_v49 = vpop.f32.mrf.mxu1 }
 0x167   :  { %v9260_v36 = vpack.c.bf16 %v1413_v20, %v1411_v42  ;;  %v1414_v62 = vmax.f32 %v1358_v48, 0.0  ;;  %v1292_v37 = vadd.f32 %v1166_v49, %v8811_v56  ;;  %v1009_v5 = vpop.f32.mrf.mxu0  ;;  %v1359_v52 = vadd.f32 %v9176_v9, %v1291_v24  ;;  %v7720_v56 = vld [vmem:[%s11166_s4 + $0x190] ss:$8 sps:$4 sm:$0xff]   ;;  %v9289_v24 = vld [vmem:[%s11163_s1 + $0x68] sm:$0xff]  }
 0x168   :  { %v9264_v21 = vadd.f32 %v1009_v5, %v9104_v26  ;;  %v1168_v15 = vpop.f32.mrf.mxu1  ;;  %v7722_v26 = vld [vmem:[%s11166_s4 + $0x194] ss:$8 sps:$4 sm:$0xff]  }
 0x169   :  { %v1293_v31 = vadd.f32 %v1168_v15, %v8816_v59  ;;  %v1011_v1 = vpop.f32.mrf.mxu0  ;;  %v9268_v2 = vpack.c.bf16 %v1414_v62, %v1412_v58  ;;  %v1360_v25 = vadd.f32 %v9185_v61, %v1292_v37  ;;  %v1415_v57 = vmax.f32 %v1359_v52, 0.0  ;;  %2798 = vmatprep.subr.bf16.mxu0 %v7722_v26  ;;  %v7725_v37 = vld [vmem:[%s11166_s4 + $0x184] ss:$8 sps:$4 sm:$0xff]  }
 0x16a   :  { %v9271_v63 = vadd.f32 %v1011_v1, %v9109_v41  ;;  %v1170_v32 = vpop.f32.mrf.mxu1  ;;  %2799 = vmatpush2.bf16.msra.mxu0 %v7720_v56  ;;  %v7723_v1 = vld [vmem:[%s11166_s4 + $0x180] ss:$8 sps:$4 sm:$0xff]  }
 0x16b   :  { %v1361_v42 = vadd.f32 %v9176_v9, %v1293_v31  ;;  %v1294_v59 = vadd.f32 %v1170_v32, %v8827_v3  ;;  %v1015_v20 = vpop.f32.mrf.mxu0  ;;  %1966 = vmatmul.mubr.bf16.gmra.mxu0 %v9169_v28  ;;  %1833 = vmatmul.mubr.bf16.gmra.mxu1 %v9289_v24  ;;  %v1416_v5 = vmax.f32 %v1360_v25, 0.0 }
 0x16c   :  { %v9284_v41 = vadd.f32 %v1015_v20, %v9121_v34  ;;  %v1174_v48 = vpop.f32.mrf.mxu1  ;;  %1975 = vmatprep.mubr.bf16.mxu0 %v11202_v54  ;;  %2469 = vmatprep.mubr.bf16.mxu1 %v11202_v54 }
 0x16d   :  { %v1417_v49 = vmax.f32 %v1361_v42, 0.0  ;;  %v1362_v3 = vadd.f32 %v9185_v61, %v1294_v59  ;;  %v1295_v58 = vadd.f32 %v1174_v48, %v8836_v13  ;;  %v1017_v28 = vpop.f32.mrf.mxu0  ;;  %2800 = vmatprep.subr.bf16.mxu0 %v7725_v37 }
 0x16e   :  { %v9297_v34 = vadd.f32 %v1017_v28, %v9136_v45  ;;  %v1176_v62 = vpop.f32.mrf.mxu1  ;;  %2801 = vmatpush2.bf16.msra.mxu0 %v7723_v1 }
 0x16f   :  { %v9302_v15 = vpack.c.bf16 %v1417_v49, %v1415_v57  ;;  %v1418_v52 = vmax.f32 %v1362_v3, 0.0  ;;  %v1296_v31 = vadd.f32 %v1176_v62, %v8849_v10  ;;  %v1019_v13 = vpop.f32.mrf.mxu0  ;;  %v1363_v56 = vadd.f32 %v9176_v9, %v1295_v58  ;;  %v7633_v10 = vld [vmem:[%s11166_s4 + $0x270] ss:$8 sps:$4 sm:$0xff]  }
 0x170   :  { %v9309_v45 = vadd.f32 %v1019_v13, %v9141_v53  ;;  %v1178_v32 = vpop.f32.mrf.mxu1  ;;  %v7641_v53 = vld [vmem:[%s11166_s4 + $0x264] ss:$8 sps:$4 sm:$0xff]  }
 0x171   :  { %v1297_v26 = vadd.f32 %v1178_v32, %v8857_v18  ;;  %v1021_v25 = vpop.f32.mrf.mxu0  ;;  %v9313_v42 = vpack.c.bf16 %v1418_v52, %v1416_v5  ;;  %v1364_v48 = vadd.f32 %v9185_v61, %v1296_v31  ;;  %v7647_v5 = vld [vmem:[%s11166_s4 + $0x254] ss:$8 sps:$4 sm:$0xff]  }
 0x172   :  { %v9319_v59 = vadd.f32 %v1021_v25, %v9153_v12  ;;  %v1180_v20 = vpop.f32.mrf.mxu1  ;;  %v1419_v12 = vmax.f32 %v1363_v56, 0.0 }
 0x173   :  { %v1365_v18 = vadd.f32 %v9176_v9, %v1297_v26  ;;  %v1298_v57 = vadd.f32 %v1180_v20, %v8865_v11  ;;  %v9327_v49 = vpop.f32.mrf.mxu0  ;;  %1976 = vmatmul.mubr.bf16.gmra.mxu0 %v9211_v6  ;;  %2470 = vmatmul.mubr.bf16.vlgmr.msra.gmra.mxu1 %v11202_v54  ;;  %v7639_v11 = vld [vmem:[%s11166_s4 + $0x260] ss:$8 sps:$4 sm:$0xff]   ;;  %v1420_v52 = vmax.f32 %v1364_v48, 0.0  ;;  %v7645_v20 = vld [vmem:[%s11166_s4 + $0x250] ss:$8 sps:$4 sm:$0xff]  }
 0x174   :  { %v1184_v3 = vpop.f32.mrf.mxu1  ;;  %1985 = vmatprep.mubr.bf16.mxu0 %v11202_v54  ;;  %2479 = vmatprep.mubr.bf16.mxu1 %v9235_v22 }
 0x175   :  { %v1421_v58 = vmax.f32 %v1365_v18, 0.0  ;;  %v1366_v28 = vadd.f32 %v9185_v61, %v1298_v57  ;;  %v1299_v62 = vadd.f32 %v1184_v3, %v8880_v8  ;;  %v9335_v37 = vpop.f32.mrf.mxu0  ;;  %3137 = vmatpush1.bf16.msra.mxu1 %v7633_v10 }
 0x176   :  { %v1186_v6 = vpop.f32.mrf.mxu1  ;;  %3138 = vmatprep.subr.bf16.mxu1 %v7641_v53 }
 0x177   :  { %v9343_v31 = vpack.c.bf16 %v1421_v58, %v1419_v12  ;;  %v1422_v13 = vmax.f32 %v1366_v28, 0.0  ;;  %v1300_v8 = vadd.f32 %v1186_v6, %v8896_v14  ;;  %v9346_v1 = vpop.f32.mrf.mxu0  ;;  %v1367_v56 = vadd.f32 %v9176_v9, %v1299_v62  ;;  %v7653_v14 = vld [vmem:[%s11166_s4 + $0x244] ss:$8 sps:$4 sm:$0xff]   ;;  %v7659_v6 = vld [vmem:[%s11166_s4 + $0x234] ss:$8 sps:$4 sm:$0xff]  }
 0x178   :  { %v1188_v32 = vpop.f32.mrf.mxu1 }
 0x179   :  { %v1301_v26 = vadd.f32 %v1188_v32, %v8910_v19  ;;  %v9350_v25 = vpop.f32.mrf.mxu0  ;;  %v9352_v10 = vpack.c.bf16 %v1422_v13, %v1420_v52  ;;  %3139 = vmatpush1.bf16.msra.mxu1 %v7639_v11  ;;  %v1368_v48 = vadd.f32 %v9185_v61, %v1300_v8  ;;  %v1423_v12 = vmax.f32 %v1367_v56, 0.0 }
 0x17a   :  { %v1190_v53 = vpop.f32.mrf.mxu1  ;;  %3140 = vmatprep.subr.bf16.mxu1 %v7647_v5 }
 0x17b   :  { %v1369_v18 = vadd.f32 %v9176_v9, %v1301_v26  ;;  %v1302_v19 = vadd.f32 %v1190_v53, %v8918_v60  ;;  %v9363_v57 = vpop.f32.mrf.mxu0  ;;  %1986 = vmatmul.mubr.bf16.gmra.mxu0 %v9250_v38  ;;  %2480 = vmatmul.mubr.bf16.gmra.mxu1 %v9221_v27  ;;  %v7651_v60 = vld [vmem:[%s11166_s4 + $0x240] ss:$8 sps:$4 sm:$0xff]   ;;  %v1424_v5 = vmax.f32 %v1368_v48, 0.0 }
 0x17c   :  { %v1194_v3 = vpop.f32.mrf.mxu1  ;;  %1995 = vmatprep.mubr.bf16.mxu0 %v11202_v54  ;;  %2489 = vmatprep.mubr.bf16.mxu1 %v9268_v2 }
 0x17d   :  { %v1425_v58 = vmax.f32 %v1369_v18, 0.0  ;;  %v1370_v28 = vadd.f32 %v9185_v61, %v1302_v19  ;;  %v1303_v62 = vadd.f32 %v1194_v3, %v8933_v7  ;;  %v9371_v11 = vpop.f32.mrf.mxu0  ;;  %3141 = vmatpush1.bf16.msra.mxu1 %v7645_v20 }
 0x17e   :  { %v1196_v38 = vpop.f32.mrf.mxu1  ;;  %3142 = vmatprep.subr.bf16.mxu1 %v7653_v14  ;;  %v7657_v14 = vld [vmem:[%s11166_s4 + $0x230] ss:$8 sps:$4 sm:$0xff]  }
 0x17f   :  { %v9379_v52 = vpack.c.bf16 %v1425_v58, %v1423_v12  ;;  %v1426_v13 = vmax.f32 %v1370_v28, 0.0  ;;  %v1304_v7 = vadd.f32 %v1196_v38, %v8949_v35  ;;  %v9382_v8 = vpop.f32.mrf.mxu0  ;;  %v1371_v56 = vadd.f32 %v9176_v9, %v1303_v62  ;;  %v7665_v35 = vld [vmem:[%s11166_s4 + $0x224] ss:$8 sps:$4 sm:$0xff]  }
 0x180   :  { %v1198_v32 = vpop.f32.mrf.mxu1 }
 0x181   :  { %11210 = vst [vmem:[#allocation19_spill] sm:$0xff] %v9379_v52  ;;  %v1305_v26 = vadd.f32 %v1198_v32, %v8963_v39  ;;  %v9386_v20 = vpop.f32.mrf.mxu0  ;;  %v9388_v53 = vpack.c.bf16 %v1426_v13, %v1424_v5  ;;  %3143 = vmatpush1.bf16.msra.mxu1 %v7651_v60  ;;  %v1372_v18 = vadd.f32 %v9185_v61, %v1304_v7  ;;  %v1427_v58 = vmax.f32 %v1371_v56, 0.0 }
 0x182   :  { %v1200_v48 = vpop.f32.mrf.mxu1  ;;  %3144 = vmatprep.subr.bf16.mxu1 %v7659_v6 }
 0x183   :  { %11211 = vst [vmem:[#allocation20_spill] sm:$0xff] %v9388_v53  ;;  %v1373_v19 = vadd.f32 %v9176_v9, %v1305_v26  ;;  %v1306_v39 = vadd.f32 %v1200_v48, %v8971_v44  ;;  %v9399_v3 = vpop.f32.mrf.mxu0  ;;  %1996 = vmatmul.mubr.bf16.gmra.mxu0 %v9289_v24  ;;  %2490 = vmatmul.mubr.bf16.gmra.mxu1 %v9260_v36  ;;  %v7663_v44 = vld [vmem:[%s11166_s4 + $0x220] ss:$8 sps:$4 sm:$0xff]   ;;  %v1428_v6 = vmax.f32 %v1372_v18, 0.0 }
 0x184   :  { %v1204_v12 = vpop.f32.mrf.mxu1  ;;  %2005 = vmatprep.mubr.bf16.mxu0 %v11202_v54  ;;  %2499 = vmatprep.mubr.bf16.mxu1 %v9313_v42  ;;  %v7671_v54 = vld [vmem:[%s11166_s4 + $0x214] ss:$8 sps:$4 sm:$0xff]  }
 0x185   :  { %v1429_v28 = vmax.f32 %v1373_v19, 0.0  ;;  %v1374_v62 = vadd.f32 %v9185_v61, %v1306_v39  ;;  %v1307_v60 = vadd.f32 %v1204_v12, %v8986_v30  ;;  %v9407_v38 = vpop.f32.mrf.mxu0  ;;  %3145 = vmatpush1.bf16.msra.mxu1 %v7657_v14 }
 0x186   :  { %v1206_v24 = vpop.f32.mrf.mxu1  ;;  %3146 = vmatprep.subr.bf16.mxu1 %v7665_v35  ;;  %v7669_v35 = vld [vmem:[%s11166_s4 + $0x210] ss:$8 sps:$4 sm:$0xff]  }
 0x187   :  { %v9415_v5 = vpack.c.bf16 %v1429_v28, %v1427_v58  ;;  %v1430_v13 = vmax.f32 %v1374_v62, 0.0  ;;  %v1308_v30 = vadd.f32 %v1206_v24, %v9002_v51  ;;  %v9418_v7 = vpop.f32.mrf.mxu0  ;;  %v1375_v56 = vadd.f32 %v9176_v9, %v1307_v60  ;;  %v7677_v51 = vld [vmem:[%s11166_s4 + $0x204] ss:$8 sps:$4 sm:$0xff]   ;;  %v7986_v58 = vld [vmem:[%s11163_s1 + $0x70] sm:$0xff]  }
 0x188   :  { %v1208_v32 = vpop.f32.mrf.mxu1 }
 0x189   :  { %v1309_v26 = vadd.f32 %v1208_v32, %v9016_v55  ;;  %v9422_v14 = vpop.f32.mrf.mxu0  ;;  %v9424_v48 = vpack.c.bf16 %v1430_v13, %v1428_v6  ;;  %3147 = vmatpush1.bf16.msra.mxu1 %v7663_v44  ;;  %v1376_v19 = vadd.f32 %v9185_v61, %v1308_v30  ;;  %v1431_v62 = vmax.f32 %v1375_v56, 0.0  ;;  %v7683_v13 = vld [vmem:[%s11166_s4 + $0x2f4] ss:$8 sps:$4 sm:$0xff]  }
 0x18a   :  { %v1210_v18 = vpop.f32.mrf.mxu1  ;;  %3148 = vmatprep.subr.bf16.mxu1 %v7671_v54 }
 0x18b   :  { %11212 = vst [vmem:[#allocation21_spill] sm:$0xff] %v9424_v48  ;;  %v1377_v39 = vadd.f32 %v9176_v9, %v1309_v26  ;;  %v1310_v55 = vadd.f32 %v1210_v18, %v9024_v33  ;;  %v9435_v12 = vpop.f32.mrf.mxu0  ;;  %2006 = vmatmul.mubr.bf16.gmra.mxu0 %v7986_v58  ;;  %2500 = vmatmul.mubr.bf16.gmra.mxu1 %v9302_v15  ;;  %v7675_v33 = vld [vmem:[%s11166_s4 + $0x200] ss:$8 sps:$4 sm:$0xff]   ;;  %v1432_v30 = vmax.f32 %v1376_v19, 0.0  ;;  %v7681_v19 = vld [vmem:[%s11166_s4 + $0x2f0] ss:$8 sps:$4 sm:$0xff]  }
 0x18c   :  { %v1214_v28 = vpop.f32.mrf.mxu1  ;;  %2509 = vmatprep.mubr.bf16.mxu1 %v9352_v10 }
 0x18d   :  { %v1433_v60 = vmax.f32 %v1377_v39, 0.0  ;;  %v1378_v44 = vadd.f32 %v9185_v61, %v1310_v55  ;;  %v1311_v24 = vadd.f32 %v1214_v28, %v9039_v46  ;;  %v9444_v54 = vpop.f32.mrf.mxu0  ;;  %3149 = vmatpush1.bf16.msra.mxu1 %v7669_v35  ;;  %v11214_v39 = vld [vmem:[#allocation7_spill] sm:$0xff] }
 0x18e   :  { %v1216_v6 = vpop.f32.mrf.mxu1  ;;  %3150 = vmatprep.subr.bf16.mxu1 %v7677_v51 }
 0x18f   :  { %v9452_v32 = vpack.c.bf16 %v1433_v60, %v1431_v62  ;;  %v1434_v56 = vmax.f32 %v1378_v44, 0.0  ;;  %v1312_v46 = vadd.f32 %v1216_v6, %v9055_v4  ;;  %v9455_v26 = vpop.f32.mrf.mxu0  ;;  %v1379_v35 = vadd.f32 %v9176_v9, %v1311_v24  ;;  %v7689_v4 = vld [vmem:[%s11166_s4 + $0x2e4] ss:$8 sps:$4 sm:$0xff]  }
 0x190   :  { %11213 = vst [vmem:[#allocation22_spill] sm:$0xff] %v9455_v26  ;;  %v1218_v18 = vpop.f32.mrf.mxu1  ;;  %v11216_v44 = vld [vmem:[#allocation8_spill] sm:$0xff] }
 0x191   :  { %v1313_v55 = vadd.f32 %v1218_v18, %v11214_v39  ;;  %v9459_v58 = vpop.f32.mrf.mxu0  ;;  %v9461_v51 = vpack.c.bf16 %v1434_v56, %v1432_v30  ;;  %3151 = vmatpush1.bf16.msra.mxu1 %v7675_v33  ;;  %v1380_v62 = vadd.f32 %v9185_v61, %v1312_v46  ;;  %v1435_v33 = vmax.f32 %v1379_v35, 0.0  ;;  %v7687_v46 = vld [vmem:[%s11166_s4 + $0x2e0] ss:$8 sps:$4 sm:$0xff]   ;;  %v7695_v35 = vld [vmem:[%s11166_s4 + $0x2d4] ss:$8 sps:$4 sm:$0xff]  }
 0x192   :  { %11215 = vst [vmem:[#allocation7_spill] sm:$0xff] %v9459_v58  ;;  %v1220_v28 = vpop.f32.mrf.mxu1  ;;  %3152 = vmatprep.subr.bf16.mxu1 %v7683_v13  ;;  %v11218_v13 = vld [vmem:[#allocation9_spill] sm:$0xff] }
 0x193   :  { %v1381_v60 = vadd.f32 %v9176_v9, %v1313_v55  ;;  %v1314_v24 = vadd.f32 %v1220_v28, %v11216_v44  ;;  %v9472_v6 = vpop.f32.mrf.mxu0  ;;  %2510 = vmatmul.mubr.bf16.gmra.mxu1 %v9343_v31  ;;  %v1436_v28 = vmax.f32 %v1380_v62, 0.0  ;;  %v7693_v62 = vld [vmem:[%s11166_s4 + $0x2d0] ss:$8 sps:$4 sm:$0xff]  }
 0x194   :  { %11217 = vst [vmem:[#allocation8_spill] sm:$0xff] %v9472_v6  ;;  %v1224_v30 = vpop.f32.mrf.mxu1  ;;  %2519 = vmatprep.mubr.bf16.mxu1 %v9388_v53 }
 0x195   :  { %v1437_v56 = vmax.f32 %v1381_v60, 0.0  ;;  %v1382_v18 = vadd.f32 %v9185_v61, %v1314_v24  ;;  %v1315_v39 = vadd.f32 %v1224_v30, %v11218_v13  ;;  %v9478_v58 = vpop.f32.mrf.mxu0  ;;  %3153 = vmatpush2.bf16.msra.mxu1 %v7681_v19  ;;  %v11220_v24 = vld [vmem:[#allocation10_spill] sm:$0xff] }
 0x196   :  { %11219 = vst [vmem:[#allocation9_spill] sm:$0xff] %v9478_v58  ;;  %v1226_v55 = vpop.f32.mrf.mxu1  ;;  %3154 = vmatprep.subr.bf16.mxu1 %v7689_v4  ;;  %v11222_v58 = vld [vmem:[#allocation11_spill] sm:$0xff] }
 0x197   :  { %v9486_v60 = vpack.c.bf16 %v1437_v56, %v1435_v33  ;;  %v1438_v44 = vmax.f32 %v1382_v18, 0.0  ;;  %v1316_v30 = vadd.f32 %v1226_v55, %v11220_v24  ;;  %v9489_v13 = vpop.f32.mrf.mxu0  ;;  %v1383_v19 = vadd.f32 %v9176_v9, %v1315_v39  ;;  %v7698_v56 = vld [vmem:[%s11166_s4 + $0x2c4] ss:$8 sps:$4 sm:$0xff]  }
 0x198   :  { %11221 = vst [vmem:[#allocation10_spill] sm:$0xff] %v9489_v13  ;;  %v1228_v6 = vpop.f32.mrf.mxu1 }
 0x199   :  { %v1317_v26 = vadd.f32 %v1228_v6, %v11222_v58  ;;  %v9493_v53 = vpop.f32.mrf.mxu0  ;;  %v9495_v4 = vpack.c.bf16 %v1438_v44, %v1436_v28  ;;  %3155 = vmatpush2.bf16.msra.mxu1 %v7687_v46  ;;  %v1384_v18 = vadd.f32 %v9185_v61, %v1316_v30  ;;  %v11224_v58 = vld [vmem:[#allocation12_spill] sm:$0xff]  ;;  %v1439_v46 = vmax.f32 %v1383_v19, 0.0  ;;  %v7704_v19 = vld [vmem:[%s11166_s4 + $0x2b4] ss:$8 sps:$4 sm:$0xff]  }
 0x19a   :  { %11223 = vst [vmem:[#allocation11_spill] sm:$0xff] %v9493_v53  ;;  %v1230_v33 = vpop.f32.mrf.mxu1  ;;  %3156 = vmatprep.subr.bf16.mxu1 %v7695_v35  ;;  %v11226_v35 = vld [vmem:[#allocation13_spill] sm:$0xff] }
 0x19b   :  { %v1385_v39 = vadd.f32 %v9176_v9, %v1317_v26  ;;  %v1318_v6 = vadd.f32 %v1230_v33, %v11224_v58  ;;  %v9506_v55 = vpop.f32.mrf.mxu0  ;;  %2520 = vmatmul.mubr.bf16.gmra.mxu1 %v9379_v52  ;;  %v7696_v26 = vld [vmem:[%s11166_s4 + $0x2c0] ss:$8 sps:$4 sm:$0xff]   ;;  %v1440_v33 = vmax.f32 %v1384_v18, 0.0  ;;  %v7702_v18 = vld [vmem:[%s11166_s4 + $0x2b0] ss:$8 sps:$4 sm:$0xff]  }
 0x19c   :  { %11225 = vst [vmem:[#allocation12_spill] sm:$0xff] %v9506_v55  ;;  %v1234_v28 = vpop.f32.mrf.mxu1  ;;  %2529 = vmatprep.mubr.bf16.mxu1 %v9424_v48 }
 0x19d   :  { %v1441_v44 = vmax.f32 %v1385_v39, 0.0  ;;  %v1386_v24 = vadd.f32 %v9185_v61, %v1318_v6  ;;  %v1319_v53 = vadd.f32 %v1234_v28, %v11226_v35  ;;  %v9512_v13 = vpop.f32.mrf.mxu0  ;;  %3157 = vmatpush2.bf16.msra.mxu1 %v7693_v62  ;;  %v11228_v6 = vld [vmem:[#allocation15_spill] sm:$0xff] }
 0x19e   :  { %11227 = vst [vmem:[#allocation13_spill] sm:$0xff] %v9512_v13  ;;  %v1236_v30 = vpop.f32.mrf.mxu1  ;;  %3158 = vmatprep.subr.bf16.mxu1 %v7698_v56  ;;  %v11230_v13 = vld [vmem:[#allocation16_spill] sm:$0xff] }
 0x19f   :  { %v9520_v39 = vpack.c.bf16 %v1441_v44, %v1439_v46  ;;  %v1442_v58 = vmax.f32 %v1386_v24, 0.0  ;;  %v1320_v28 = vadd.f32 %v1236_v30, %v11228_v6  ;;  %v9523_v35 = vpop.f32.mrf.mxu0  ;;  %v1387_v62 = vadd.f32 %v9176_v9, %v1319_v53  ;;  %v7710_v44 = vld [vmem:[%s11166_s4 + $0x2a4] ss:$8 sps:$4 sm:$0xff]  }
 0x1a0   :  { %11229 = vst [vmem:[#allocation15_spill] sm:$0xff] %v9523_v35  ;;  %v1238_v55 = vpop.f32.mrf.mxu1 }
 0x1a1   :  { %v1321_v48 = vadd.f32 %v1238_v55, %v11230_v13  ;;  %v9527_v52 = vpop.f32.mrf.mxu0  ;;  %v9529_v56 = vpack.c.bf16 %v1442_v58, %v1440_v33  ;;  %3159 = vmatpush2.bf16.msra.mxu1 %v7696_v26  ;;  %v1388_v24 = vadd.f32 %v9185_v61, %v1320_v28  ;;  %v11232_v13 = vld [vmem:[#allocation17_spill] sm:$0xff]  ;;  %v1443_v26 = vmax.f32 %v1387_v62, 0.0  ;;  %v7713_v62 = vld [vmem:[%s11166_s4 + $0x294] ss:$8 sps:$4 sm:$0xff]  }
 0x1a2   :  { %11231 = vst [vmem:[#allocation16_spill] sm:$0xff] %v9527_v52  ;;  %v1240_v46 = vpop.f32.mrf.mxu1  ;;  %3160 = vmatprep.subr.bf16.mxu1 %v7704_v19  ;;  %v11234_v19 = vld [vmem:[#allocation18_spill] sm:$0xff] }
 0x1a3   :  { %v1389_v53 = vadd.f32 %v9176_v9, %v1321_v48  ;;  %v1322_v55 = vadd.f32 %v1240_v46, %v11232_v13  ;;  %v9540_v30 = vpop.f32.mrf.mxu0  ;;  %2530 = vmatmul.mubr.bf16.gmra.mxu1 %v9415_v5  ;;  %v7708_v48 = vld [vmem:[%s11166_s4 + $0x2a0] ss:$8 sps:$4 sm:$0xff]   ;;  %v1444_v46 = vmax.f32 %v1388_v24, 0.0  ;;  %v7711_v24 = vld [vmem:[%s11166_s4 + $0x290] ss:$8 sps:$4 sm:$0xff]  }
 0x1a4   :  { %11233 = vst [vmem:[#allocation17_spill] sm:$0xff] %v9540_v30  ;;  %v1244_v33 = vpop.f32.mrf.mxu1  ;;  %2539 = vmatprep.mubr.bf16.mxu1 %v9461_v51 }
 0x1a5   :  { %v1445_v58 = vmax.f32 %v1389_v53, 0.0  ;;  %v1390_v6 = vadd.f32 %v9185_v61, %v1322_v55  ;;  %v1323_v52 = vadd.f32 %v1244_v33, %v11234_v19  ;;  %v9546_v35 = vpop.f32.mrf.mxu0  ;;  %3161 = vmatpush2.bf16.msra.mxu1 %v7702_v18 }
 0x1a6   :  { %11235 = vst [vmem:[#allocation18_spill] sm:$0xff] %v9546_v35  ;;  %v1246_v28 = vpop.f32.mrf.mxu1  ;;  %3162 = vmatprep.subr.bf16.mxu1 %v7710_v44 }
 0x1a7   :  { %v9554_v53 = vpack.c.bf16 %v1445_v58, %v1443_v26  ;;  %v1446_v13 = vmax.f32 %v1390_v6, 0.0  ;;  %v1324_v55 = vadd.f32 %v1246_v28, %v9180_v47  ;;  %v9557_v33 = vpop.f32.mrf.mxu0  ;;  %v1391_v18 = vadd.f32 %v9176_v9, %v1323_v52  ;;  %v7719_v47 = vld [vmem:[%s11166_s4 + $0x284] ss:$8 sps:$4 sm:$0xff]  }
 0x1a8   :  { %v1248_v19 = vpop.f32.mrf.mxu1 }
 0x1a9   :  { %11236 = vst [vmem:[#allocation23_spill] sm:$0xff] %v9554_v53  ;;  %v1325_v30 = vadd.f32 %v1248_v19, %v9188_v16  ;;  %v9561_v35 = vpop.f32.mrf.mxu0  ;;  %v9563_v44 = vpack.c.bf16 %v1446_v13, %v1444_v46  ;;  %3163 = vmatpush2.bf16.msra.mxu1 %v7708_v48  ;;  %v1392_v58 = vadd.f32 %v9185_v61, %v1324_v55  ;;  %v1447_v48 = vmax.f32 %v1391_v18, 0.0 }
 0x1aa   :  { %11237 = vst [vmem:[#allocation24_spill] sm:$0xff] %v9561_v35  ;;  %v1250_v26 = vpop.f32.mrf.mxu1  ;;  %3164 = vmatprep.subr.bf16.mxu1 %v7713_v62 }
 0x1ab   :  { %v1393_v52 = vadd.f32 %v9176_v9, %v1325_v30  ;;  %v1326_v16 = vadd.f32 %v1250_v26, %v9199_v29  ;;  %v9574_v6 = vpop.f32.mrf.mxu0  ;;  %2540 = vmatmul.mubr.bf16.gmra.mxu1 %v9452_v32  ;;  %v7717_v29 = vld [vmem:[%s11166_s4 + $0x280] ss:$8 sps:$4 sm:$0xff]   ;;  %v1448_v55 = vmax.f32 %v1392_v58, 0.0 }
 0x1ac   :  { %11238 = vst [vmem:[#allocation25_spill] sm:$0xff] %v9574_v6  ;;  %v1254_v28 = vpop.f32.mrf.mxu1  ;;  %2549 = vmatprep.mubr.bf16.mxu1 %v9495_v4 }
 0x1ad   :  { %v1449_v46 = vmax.f32 %v1393_v52, 0.0  ;;  %v1394_v13 = vadd.f32 %v9185_v61, %v1326_v16  ;;  %v1327_v62 = vadd.f32 %v1254_v28, %v9206_v50  ;;  %v9580_v19 = vpop.f32.mrf.mxu0  ;;  %3165 = vmatpush2.bf16.msra.mxu1 %v7711_v24 }
 0x1ae   :  { %11239 = vst [vmem:[#allocation26_spill] sm:$0xff] %v9580_v19  ;;  %v1256_v30 = vpop.f32.mrf.mxu1  ;;  %3166 = vmatprep.subr.bf16.mxu1 %v7719_v47 }
 0x1af   :  { %v9585_v26 = vpack.c.bf16 %v1449_v46, %v1447_v48  ;;  %v1450_v18 = vmax.f32 %v1394_v13, 0.0  ;;  %v1328_v52 = vadd.f32 %v1256_v30, %v9219_v0  ;;  %v9588_v16 = vpop.f32.mrf.mxu0  ;;  %v1395_v28 = vadd.f32 %v9176_v9, %v1327_v62 }
 0x1b0   :  { %v1258_v50 = vpop.f32.mrf.mxu1 }
 0x1b1   :  { %11240 = vst [vmem:[#allocation27_spill] sm:$0xff] %v9585_v26  ;;  %v1329_v6 = vadd.f32 %v1258_v50, %v9231_v23  ;;  %v9592_v24 = vpop.f32.mrf.mxu0  ;;  %v9594_v19 = vpack.c.bf16 %v1450_v18, %v1448_v55  ;;  %3167 = vmatpush2.bf16.msra.mxu1 %v7717_v29  ;;  %v1396_v47 = vadd.f32 %v9185_v61, %v1328_v52  ;;  %v1451_v13 = vmax.f32 %v1395_v28, 0.0 }
 0x1b2   :  { %v1260_v35 = vpop.f32.mrf.mxu1 }
 0x1b3   :  { %11241 = vst [vmem:[#allocation28_spill] sm:$0xff] %v9594_v19  ;;  %v1397_v58 = vadd.f32 %v9176_v9, %v1329_v6  ;;  %v1330_v48 = vadd.f32 %v1260_v35, %v9238_v40  ;;  %v9599_v0 = vpop.f32.mrf.mxu0  ;;  %2550 = vmatmul.mubr.bf16.gmra.mxu1 %v9486_v60  ;;  %v1452_v18 = vmax.f32 %v1396_v47, 0.0 }
 0x1b4   :  { %11242 = vst [vmem:[#allocation29_spill] sm:$0xff] %v9599_v0  ;;  %v1264_v46 = vpop.f32.mrf.mxu1  ;;  %2559 = vmatprep.mubr.bf16.mxu1 %v9529_v56 }
 0x1b5   :  { %v1453_v62 = vmax.f32 %v1397_v58, 0.0  ;;  %v1398_v23 = vadd.f32 %v9185_v61, %v1330_v48  ;;  %v1331_v30 = vadd.f32 %v1264_v46, %v9245_v43  ;;  %v9605_v29 = vpop.f32.mrf.mxu0 }
 0x1b6   :  { %v1266_v55 = vpop.f32.mrf.mxu1 }
 0x1b7   :  { %v9607_v6 = vpack.c.bf16 %v1453_v62, %v1451_v13  ;;  %v1454_v40 = vmax.f32 %v1398_v23, 0.0  ;;  %v1332_v35 = vadd.f32 %v1266_v55, %v9258_v17  ;;  %v9610_v52 = vpop.f32.mrf.mxu0  ;;  %v1399_v28 = vadd.f32 %v9176_v9, %v1331_v30 }
 0x1b8   :  { %v1268_v50 = vpop.f32.mrf.mxu1  ;;  %v11184_v17 = vmov 0.0  }
 0x1b9   :  { %11243 = vst [vmem:[#allocation30_spill] sm:$0xff] %v9607_v6  ;;  %v1333_v58 = vadd.f32 %v1268_v50, %v9264_v21  ;;  %v9614_v48 = vpop.f32.mrf.mxu0  ;;  %v9616_v43 = vpack.c.bf16 %v1454_v40, %v1452_v18  ;;  %v1400_v0 = vadd.f32 %v9185_v61, %v1332_v35  ;;  %7423 = vmatprep.subr.bf16.mxu0 %v11184_v17  ;;  %v1455_v21 = vmax.f32 %v1399_v28, 0.0 }
 0x1ba   :  { %11244 = vst [vmem:[#allocation31_spill] sm:$0xff] %v9614_v48  ;;  %v1270_v46 = vpop.f32.mrf.mxu1 }
 0x1bb   :  { %11245 = vst [vmem:[#allocation32_spill] sm:$0xff] %v9616_v43  ;;  %v1401_v47 = vadd.f32 %v9176_v9, %v1333_v58  ;;  %v1334_v13 = vadd.f32 %v1270_v46, %v9271_v63  ;;  %v9621_v62 = vpop.f32.mrf.mxu0  ;;  %2560 = vmatmul.mubr.bf16.gmra.mxu1 %v9520_v39  ;;  %v1456_v63 = vmax.f32 %v1400_v0, 0.0 }
 0x1bc   :  { %11246 = vst [vmem:[#allocation33_spill] sm:$0xff] %v9621_v62  ;;  %v1274_v23 = vpop.f32.mrf.mxu1  ;;  %2569 = vmatprep.mubr.bf16.mxu1 %v9563_v44 }
 0x1bd   :  { %v1457_v30 = vmax.f32 %v1401_v47, 0.0  ;;  %v1402_v55 = vadd.f32 %v9185_v61, %v1334_v13  ;;  %v1335_v18 = vadd.f32 %v1274_v23, %v9284_v41  ;;  %v9628_v40 = vpop.f32.mrf.mxu0 }
 0x1be   :  { %11247 = vst [vmem:[#allocation34_spill] sm:$0xff] %v9628_v40  ;;  %v1276_v35 = vpop.f32.mrf.mxu1 }
 0x1bf   :  { %v9630_v50 = vpack.c.bf16 %v1457_v30, %v1455_v21  ;;  %v1458_v58 = vmax.f32 %v1402_v55, 0.0  ;;  %v1336_v46 = vadd.f32 %v1276_v35, %v9297_v34  ;;  %v9633_v17 = vpop.f32.mrf.mxu0  ;;  %v1403_v28 = vadd.f32 %v9176_v9, %v1335_v18 }
 0x1c0   :  { %11249 = vst [vmem:[#allocation36_spill] sm:$0xff] %v9633_v17  ;;  %v1278_v62 = vpop.f32.mrf.mxu1 }
 0x1c1   :  { %11248 = vst [vmem:[#allocation35_spill] sm:$0xff] %v9630_v50  ;;  %v1337_v47 = vadd.f32 %v1278_v62, %v9309_v45  ;;  %v9637_v13 = vpop.f32.mrf.mxu0  ;;  %v9639_v41 = vpack.c.bf16 %v1458_v58, %v1456_v63  ;;  %v1404_v40 = vadd.f32 %v9185_v61, %v1336_v46  ;;  %v1459_v55 = vmax.f32 %v1403_v28, 0.0 }
 0x1c2   :  { %11250 = vst [vmem:[#allocation37_spill] sm:$0xff] %v9637_v13  ;;  %v1280_v23 = vpop.f32.mrf.mxu1 }
 0x1c3   :  { %11251 = vst [vmem:[#allocation38_spill] sm:$0xff] %v9639_v41  ;;  %v1405_v0 = vadd.f32 %v9176_v9, %v1337_v47  ;;  %v1338_v21 = vadd.f32 %v1280_v23, %v9319_v59  ;;  %v9644_v30 = vpop.f32.mrf.mxu0  ;;  %2570 = vmatmul.mubr.bf16.gmra.mxu1 %v9554_v53  ;;  %v1460_v63 = vmax.f32 %v1404_v40, 0.0 }
 0x1c4   :  { %11252 = vst [vmem:[#allocation39_spill] sm:$0xff] %v9644_v30  ;;  %v1704_v34 = vpop.f32.mrf.mxu1  ;;  %2579 = vmatprep.mubr.bf16.mxu1 %v9594_v19 }
 0x1c5   :  { %v1461_v18 = vmax.f32 %v1405_v0, 0.0  ;;  %v1406_v45 = vadd.f32 %v9185_v61, %v1338_v21  ;;  %v9649_v62 = vpop.f32.mrf.mxu0 }
 0x1c6   :  { %11253 = vst [vmem:[#allocation40_spill] sm:$0xff] %v9649_v62  ;;  %v1706_v35 = vpop.f32.mrf.mxu1 }
 0x1c7   :  { %v9651_v58 = vpack.c.bf16 %v1461_v18, %v1459_v55  ;;  %v1462_v46 = vmax.f32 %v1406_v45, 0.0  ;;  %v9653_v47 = vpop.f32.mrf.mxu0 }
 0x1c8   :  { %11255 = vst [vmem:[#allocation42_spill] sm:$0xff] %v9653_v47  ;;  %v1708_v59 = vpop.f32.mrf.mxu1 }
 0x1c9   :  { %11254 = vst [vmem:[#allocation41_spill] sm:$0xff] %v9651_v58  ;;  %v9655_v23 = vpop.f32.mrf.mxu0  ;;  %v9657_v30 = vpack.c.bf16 %v1462_v46, %v1460_v63 }
 0x1ca   :  { %11256 = vst [vmem:[#allocation43_spill] sm:$0xff] %v9655_v23  ;;  %v1710_v28 = vpop.f32.mrf.mxu1 }
 0x1cb   :  { %11257 = vst [vmem:[#allocation44_spill] sm:$0xff] %v9657_v30  ;;  %v9659_v0 = vpop.f32.mrf.mxu0  ;;  %2580 = vmatmul.mubr.bf16.gmra.mxu1 %v9585_v26  ;;  %v1711_v53 = vadd.f32 %v1710_v28, %v9350_v25 }
 0x1cc   :  { %11258 = vst [vmem:[#allocation45_spill] sm:$0xff] %v9659_v0  ;;  %v1714_v21 = vpop.f32.mrf.mxu1  ;;  %2589 = vmatprep.mubr.bf16.mxu1 %v9616_v43 }
 0x1cd   :  { %v9663_v62 = vpop.f32.mrf.mxu0  ;;  %v1715_v25 = vadd.f32 %v1714_v21, %v9363_v57 }
 0x1ce   :  { %11259 = vst [vmem:[#allocation46_spill] sm:$0xff] %v9663_v62  ;;  %v1716_v40 = vpop.f32.mrf.mxu1 }
 0x1cf   :  { %v9665_v55 = vpop.f32.mrf.mxu0 }
 0x1d0   :  { %11260 = vst [vmem:[#allocation47_spill] sm:$0xff] %v9665_v55  ;;  %v1718_v18 = vpop.f32.mrf.mxu1 }
 0x1d1   :  { %v9667_v45 = vpop.f32.mrf.mxu0 }
 0x1d2   :  { %11261 = vst [vmem:[#allocation48_spill] sm:$0xff] %v9667_v45  ;;  %v1720_v58 = vpop.f32.mrf.mxu1 }
 0x1d3   :  { %v9669_v23 = vpop.f32.mrf.mxu0  ;;  %2590 = vmatmul.mubr.bf16.gmra.mxu1 %v9607_v6 }
 0x1d4   :  { %11262 = vst [vmem:[#allocation49_spill] sm:$0xff] %v9669_v23  ;;  %v9671_v63 = vpop.f32.mrf.mxu1  ;;  %2599 = vmatprep.mubr.bf16.mxu1 %v9639_v41 }
 0x1d5   :  { %v9675_v46 = vpop.f32.mrf.mxu0 }
 0x1d6   :  { %11263 = vst [vmem:[#allocation50_spill] sm:$0xff] %v9675_v46  ;;  %v9677_v30 = vpop.f32.mrf.mxu1 }
 0x1d7   :  { %v9679_v0 = vpop.f32.mrf.mxu0 }
 0x1d8   :  { %11264 = vst [vmem:[#allocation51_spill] sm:$0xff] %v9679_v0  ;;  %v9681_v62 = vpop.f32.mrf.mxu1 }
 0x1d9   :  { %v9683_v55 = vpop.f32.mrf.mxu0 }
 0x1da   :  { %11265 = vst [vmem:[#allocation52_spill] sm:$0xff] %v9683_v55  ;;  %v9685_v45 = vpop.f32.mrf.mxu1 }
 0x1db   :  { %v9687_v47 = vpop.f32.mrf.mxu0  ;;  %2600 = vmatmul.mubr.bf16.gmra.mxu1 %v9630_v50 }
 0x1dc   :  { %11266 = vst [vmem:[#allocation53_spill] sm:$0xff] %v9687_v47  ;;  %v9689_v23 = vpop.f32.mrf.mxu1  ;;  %3168 = vmatprep.mubr.bf16.mxu1 %v9235_v22  ;;  %v1707_v47 = vadd.f32 %v1706_v35, %v9335_v37  ;;  %v1705_v22 = vadd.f32 %v1704_v34, %v9327_v49 }
 0x1dd   :  { %v9693_v41 = vpop.f32.mrf.mxu0 }
 0x1de   :  { %11267 = vst [vmem:[#allocation54_spill] sm:$0xff] %v9693_v41  ;;  %v9695_v46 = vpop.f32.mrf.mxu1 }
 0x1df   :  { %v9697_v6 = vpop.f32.mrf.mxu0 }
 0x1e0   :  { %11268 = vst [vmem:[#allocation55_spill] sm:$0xff] %v9697_v6  ;;  %v9699_v0 = vpop.f32.mrf.mxu1  ;;  %v1709_v6 = vadd.f32 %v1708_v59, %v9346_v1 }
 0x1e1   :  { %v9701_v43 = vpop.f32.mrf.mxu0 }
 0x1e2   :  { %11269 = vst [vmem:[#allocation56_spill] sm:$0xff] %v9701_v43  ;;  %v9703_v55 = vpop.f32.mrf.mxu1 }
 0x1e3   :  { %v1877_v26 = vpop.f32.mrf.mxu0  ;;  %3169 = vmatmul.mubr.bf16.vlgmr.msra.gmra.mxu1 %v9221_v27 }
 0x1e4   :  { %v9706_v13 = vpop.f32.mrf.mxu1  ;;  %3178 = vmatprep.mubr.bf16.mxu1 %v9268_v2  ;;  %v2016_v43 = vadd.f32 %v1877_v26, %v1705_v22 }
 0x1e5   :  { %v1879_v41 = vpop.f32.mrf.mxu0 }
 0x1e6   :  { %v9712_v50 = vpop.f32.mrf.mxu1  ;;  %v2017_v17 = vadd.f32 %v1879_v41, %v1707_v47  ;;  %v2072_v1 = vadd.f32 %v2016_v43, %v9176_v9  ;;  %v1717_v41 = vadd.f32 %v1716_v40, %v9371_v11 }
 0x1e7   :  { %v1881_v19 = vpop.f32.mrf.mxu0 }
 0x1e8   :  { %v9715_v48 = vpop.f32.mrf.mxu1  ;;  %v2018_v37 = vadd.f32 %v1881_v19, %v1709_v6  ;;  %v2073_v27 = vadd.f32 %v2017_v17, %v9185_v61  ;;  %v1719_v17 = vadd.f32 %v1718_v18, %v9382_v8  ;;  %v2128_v11 = vmax.f32 %v2072_v1, 0.0 }
 0x1e9   :  { %v1883_v35 = vpop.f32.mrf.mxu0 }
 0x1ea   :  { %v2074_v49 = vadd.f32 %v2018_v37, %v9176_v9  ;;  %v9719_v34 = vpop.f32.mrf.mxu1  ;;  %v2019_v2 = vadd.f32 %v1883_v35, %v1711_v53  ;;  %v2129_v53 = vmax.f32 %v2073_v27, 0.0  ;;  %v1721_v35 = vadd.f32 %v1720_v58, %v9386_v20 }
 0x1eb   :  { %v1887_v59 = vpop.f32.mrf.mxu0  ;;  %3179 = vmatmul.mubr.bf16.gmra.mxu1 %v9260_v36 }
 0x1ec   :  { %v2075_v26 = vadd.f32 %v2019_v2, %v9185_v61  ;;  %v9724_v47 = vpop.f32.mrf.mxu1  ;;  %v2130_v19 = vmax.f32 %v2074_v49, 0.0  ;;  %3188 = vmatprep.mubr.bf16.mxu1 %v9313_v42  ;;  %v2020_v40 = vadd.f32 %v1887_v59, %v1715_v25  ;;  %v7726_v42 = vld [vmem:[%s11171_s9 + $0x18] sm:$0xff]   ;;  %v1727_v59 = vadd.f32 %v9677_v30, %v9407_v38  ;;  %v7727_v25 = vld [vmem:[%s11171_s9 + $0x10] sm:$0xff]  }
 0x1ed   :  { %v1889_v6 = vpop.f32.mrf.mxu0  ;;  %v1729_v38 = vadd.f32 %v9681_v62, %v9418_v7  ;;  %v7728_v7 = vld [vmem:[%s11171_s9 + $0x8] sm:$0xff]  }
 0x1ee   :  { %v2131_v28 = vmax.f32 %v2075_v26, 0.0  ;;  %v9730_v43 = vpop.f32.mrf.mxu1  ;;  %v2021_v22 = vadd.f32 %v1889_v6, %v1717_v41  ;;  %v2184_v21 = vpack.c.bf16 %v2130_v19, %v2128_v11  ;;  %v2076_v20 = vadd.f32 %v2020_v40, %v9176_v9 }
 0x1ef   :  { %v1891_v37 = vpop.f32.mrf.mxu0  ;;  %v1725_v19 = vadd.f32 %v9671_v63, %v9399_v3  ;;  %v1731_v3 = vadd.f32 %v9685_v45, %v9422_v14 }
 0x1f0   :  { %v9733_v2 = vpop.f32.mrf.mxu1  ;;  %v2022_v36 = vadd.f32 %v1891_v37, %v1719_v17  ;;  %v2185_v57 = vpack.c.bf16 %v2131_v28, %v2129_v53  ;;  %v2077_v18 = vadd.f32 %v2021_v22, %v9185_v61  ;;  %v11270_v53 = vmov 0.0  }
 0x1f1   :  { %v1893_v8 = vpop.f32.mrf.mxu0  ;;  %v2132_v11 = vmax.f32 %v2076_v20, 0.0  ;;  %v7729_v20 = vld [vmem:[%s11171_s9] sm:$0xff]  }
 0x1f2   :  { %v2078_v27 = vadd.f32 %v2022_v36, %v9176_v9  ;;  %v9740_v49 = vpop.f32.mrf.mxu1  ;;  %v2023_v1 = vadd.f32 %v1893_v8, %v1721_v35  ;;  %2802 = vmatprep.mubr.bf16.mxu0 %v2185_v57  ;;  %v2133_v30 = vmax.f32 %v2077_v18, 0.0  ;;  %v1737_v18 = vadd.f32 %v9695_v46, %v9444_v54  ;;  %v11272_v54 = vld [vmem:[#allocation22_spill] sm:$0xff] }
 0x1f3   :  { %v1897_v58 = vpop.f32.mrf.mxu0  ;;  %2803 = vmatmul.mubr.bf16.vlgmr.msra.gmra.mxu0 %v2184_v21  ;;  %3189 = vmatmul.mubr.bf16.gmra.mxu1 %v9302_v15  ;;  %v1739_v46 = vadd.f32 %v9699_v0, %v11272_v54 }
 0x1f4   :  { %v2079_v41 = vadd.f32 %v2023_v1, %v9185_v61  ;;  %v9746_v26 = vpop.f32.mrf.mxu1  ;;  %7424 = vmatpush3.bf16.msra.mxu0 %v7726_v42  ;;  %v2134_v6 = vmax.f32 %v2078_v27, 0.0  ;;  %3198 = vmatprep.mubr.bf16.mxu1 %v9352_v10  ;;  %v2024_v40 = vadd.f32 %v1897_v58, %v1725_v19  ;;  %v1735_v58 = vadd.f32 %v9689_v23, %v9435_v12 }
 0x1f5   :  { %v1899_v17 = vpop.f32.mrf.mxu0  ;;  %7425 = vmatprep.subr.bf16.mxu0 %v11270_v53 }
 0x1f6   :  { %v2135_v28 = vmax.f32 %v2079_v41, 0.0  ;;  %v9758_v15 = vpop.f32.mrf.mxu1  ;;  %v2025_v22 = vadd.f32 %v1899_v17, %v1727_v59  ;;  %v2186_v62 = vpack.c.bf16 %v2134_v6, %v2132_v11  ;;  %v2080_v45 = vadd.f32 %v2024_v40, %v9176_v9  ;;  %v11271_v41 = vld [vmem:[#allocation20_spill] sm:$0xff] }
 0x1f7   :  { %v1901_v37 = vpop.f32.mrf.mxu0 }
 0x1f8   :  { %v9762_v63 = vpop.f32.mrf.mxu1  ;;  %v2026_v10 = vadd.f32 %v1901_v37, %v1729_v38  ;;  %v2187_v35 = vpack.c.bf16 %v2135_v28, %v2133_v30  ;;  %7426 = vmatpush3.bf16.msra.mxu0 %v7727_v25  ;;  %v2081_v57 = vadd.f32 %v2025_v22, %v9185_v61  ;;  %v2136_v38 = vmax.f32 %v2080_v45, 0.0  ;;  %v11273_v22 = vld [vmem:[#allocation7_spill] sm:$0xff] }
 0x1f9   :  { %v1903_v36 = vpop.f32.mrf.mxu0  ;;  %7427 = vmatprep.subr.bf16.mxu0 %v11270_v53  ;;  %v1741_v12 = vadd.f32 %v9703_v55, %v11273_v22  ;;  %v11274_v55 = vld [vmem:[#allocation9_spill] sm:$0xff]  ;;  %v11275_v45 = vld [vmem:[#allocation19_spill] sm:$0xff] }
 0x1fa   :  { %v2082_v42 = vadd.f32 %v2026_v10, %v9176_v9  ;;  %v9770_v21 = vpop.f32.mrf.mxu1  ;;  %v2027_v14 = vadd.f32 %v1903_v36, %v1731_v3  ;;  %2812 = vmatprep.mubr.bf16.mxu0 %v2187_v35  ;;  %v2137_v19 = vmax.f32 %v2081_v57, 0.0  ;;  %v1747_v57 = vadd.f32 %v9712_v50, %v11274_v55  ;;  %v11281_v55 = vld [vmem:[#allocation12_spill] sm:$0xff] }
 0x1fb   :  { %v1907_v8 = vpop.f32.mrf.mxu0  ;;  %2813 = vmatmul.mubr.bf16.gmra.mxu0 %v2186_v62  ;;  %3199 = vmatmul.mubr.bf16.gmra.mxu1 %v9343_v31 }
 0x1fc   :  { %v2083_v27 = vadd.f32 %v2027_v14, %v9185_v61  ;;  %v9776_v1 = vpop.f32.mrf.mxu1  ;;  %7428 = vmatpush3.bf16.msra.mxu0 %v7728_v7  ;;  %v2138_v59 = vmax.f32 %v2082_v42, 0.0  ;;  %3208 = vmatprep.mubr.bf16.mxu1 %v11271_v41  ;;  %v2028_v30 = vadd.f32 %v1907_v8, %v1735_v58  ;;  %v11276_v8 = vld [vmem:[#allocation8_spill] sm:$0xff] }
 0x1fd   :  { %v1909_v25 = vpop.f32.mrf.mxu0  ;;  %7429 = vmatprep.subr.bf16.mxu0 %v11270_v53 }
 0x1fe   :  { %v2139_v6 = vmax.f32 %v2083_v27, 0.0  ;;  %v9788_v31 = vpop.f32.mrf.mxu1  ;;  %v2029_v17 = vadd.f32 %v1909_v25, %v1737_v18  ;;  %v2188_v37 = vpack.c.bf16 %v2138_v59, %v2136_v38  ;;  %v2084_v62 = vadd.f32 %v2028_v30, %v9176_v9  ;;  %v11278_v59 = vld [vmem:[#allocation10_spill] sm:$0xff]  ;;  %v11279_v38 = vld [vmem:[#allocation11_spill] sm:$0xff] }
 0x1ff   :  { %v1911_v28 = vpop.f32.mrf.mxu0  ;;  %v1745_v18 = vadd.f32 %v9706_v13, %v11276_v8  ;;  %v1749_v41 = vadd.f32 %v9715_v48, %v11278_v59  ;;  %v1751_v30 = vadd.f32 %v9719_v34, %v11279_v38  ;;  %v11282_v8 = vld [vmem:[#allocation15_spill] sm:$0xff] }
 0x200   :  { %v9792_v23 = vpop.f32.mrf.mxu1  ;;  %v2030_v11 = vadd.f32 %v1911_v28, %v1739_v46  ;;  %v2189_v40 = vpack.c.bf16 %v2139_v6, %v2137_v19  ;;  %7430 = vmatpush3.bf16.msra.mxu0 %v7729_v20  ;;  %v2085_v0 = vadd.f32 %v2029_v17, %v9185_v61  ;;  %v11277_v20 = vld [vmem:[#allocation21_spill] sm:$0xff]  ;;  %v2140_v19 = vmax.f32 %v2084_v62, 0.0 }
 0x201   :  { %v1913_v3 = vpop.f32.mrf.mxu0 }
 0x202   :  { %v2086_v10 = vadd.f32 %v2030_v11, %v9176_v9  ;;  %v9796_v35 = vpop.f32.mrf.mxu1  ;;  %v2031_v7 = vadd.f32 %v1913_v3, %v1741_v12  ;;  %2822 = vmatprep.mubr.bf16.mxu0 %v2189_v40  ;;  %v2141_v25 = vmax.f32 %v2085_v0, 0.0 }
 0x203   :  { %v1917_v36 = vpop.f32.mrf.mxu0  ;;  %2823 = vmatmul.mubr.bf16.gmra.mxu0 %v2188_v37  ;;  %3209 = vmatmul.mubr.bf16.gmra.mxu1 %v11275_v45 }
 0x204   :  { %v2087_v42 = vadd.f32 %v2031_v7, %v9185_v61  ;;  %v9802_v14 = vpop.f32.mrf.mxu1  ;;  %v2142_v27 = vmax.f32 %v2086_v10, 0.0  ;;  %3218 = vmatprep.mubr.bf16.mxu1 %v11277_v20  ;;  %v2032_v6 = vadd.f32 %v1917_v36, %v1745_v18  ;;  %v11280_v7 = vld [vmem:[#allocation13_spill] sm:$0xff]  ;;  %v1759_v18 = vadd.f32 %v9733_v2, %v11282_v8 }
 0x205   :  { %v1919_v58 = vpop.f32.mrf.mxu0  ;;  %v1757_v34 = vadd.f32 %v9730_v43, %v11280_v7 }
 0x206   :  { %v2143_v54 = vmax.f32 %v2087_v42, 0.0  ;;  %v9810_v46 = vpop.f32.mrf.mxu1  ;;  %v2033_v50 = vadd.f32 %v1919_v58, %v1747_v57  ;;  %v2190_v12 = vpack.c.bf16 %v2142_v27, %v2140_v19  ;;  %v2088_v0 = vadd.f32 %v2032_v6, %v9176_v9 }
 0x207   :  { %v1921_v17 = vpop.f32.mrf.mxu0  ;;  %v1755_v57 = vadd.f32 %v9724_v47, %v11281_v55 }
 0x208   :  { %v9814_v28 = vpop.f32.mrf.mxu1  ;;  %v2034_v13 = vadd.f32 %v1921_v17, %v1749_v41  ;;  %v2191_v22 = vpack.c.bf16 %v2143_v54, %v2141_v25  ;;  %v2089_v40 = vadd.f32 %v2033_v50, %v9185_v61  ;;  %v2144_v59 = vmax.f32 %v2088_v0, 0.0  ;;  %v11283_v54 = vld [vmem:[#allocation16_spill] sm:$0xff]  ;;  %v11285_v0 = vld [vmem:[#allocation17_spill] sm:$0xff] }
 0x209   :  { %v1923_v11 = vpop.f32.mrf.mxu0 }
 0x20a   :  { %v2090_v48 = vadd.f32 %v2034_v13, %v9176_v9  ;;  %v9818_v37 = vpop.f32.mrf.mxu1  ;;  %v2035_v3 = vadd.f32 %v1923_v11, %v1751_v30  ;;  %2832 = vmatprep.mubr.bf16.mxu0 %v2191_v22  ;;  %v2145_v27 = vmax.f32 %v2089_v40, 0.0 }
 0x20b   :  { %v1927_v10 = vpop.f32.mrf.mxu0  ;;  %2833 = vmatmul.mubr.bf16.gmra.mxu0 %v2190_v12  ;;  %3219 = vmatmul.mubr.bf16.gmra.mxu1 %v9415_v5  ;;  %v1761_v5 = vadd.f32 %v9740_v49, %v11283_v54  ;;  %v11284_v12 = vld [vmem:[#allocation18_spill] sm:$0xff] }
 0x20c   :  { %v2091_v62 = vadd.f32 %v2035_v3, %v9185_v61  ;;  %v9824_v36 = vpop.f32.mrf.mxu1  ;;  %v2146_v42 = vmax.f32 %v2090_v48, 0.0  ;;  %3228 = vmatprep.mubr.bf16.mxu1 %v9461_v51  ;;  %v2036_v41 = vadd.f32 %v1927_v10, %v1755_v57  ;;  %v1767_v49 = vadd.f32 %v9758_v15, %v11284_v12  ;;  %v7730_v48 = vld [vmem:[%s11172_s10 + $0x178] sm:$0xff]  }
 0x20d   :  { %v1929_v45 = vpop.f32.mrf.mxu0  ;;  %v7731_v3 = vld [vmem:[%s11172_s10 + $0x138] sm:$0xff]   ;;  %v1765_v10 = vadd.f32 %v9746_v26, %v11285_v0  ;;  %7150 = vmatprep.subr.bf16.mxu1 %v7730_v48 }
 0x20e   :  { %v2147_v20 = vmax.f32 %v2091_v62, 0.0  ;;  %v9832_v58 = vpop.f32.mrf.mxu1  ;;  %v2037_v43 = vadd.f32 %v1929_v45, %v1757_v34  ;;  %v2192_v51 = vpack.c.bf16 %v2146_v42, %v2144_v59  ;;  %v2092_v13 = vadd.f32 %v2036_v41, %v9176_v9  ;;  %7151 = vmatpush3.bf16.msra.mxu1 %v7731_v3 }
 0x20f   :  { %v1931_v25 = vpop.f32.mrf.mxu0  ;;  %v1769_v34 = vadd.f32 %v9762_v63, %v9557_v33 }
 0x210   :  { %v9836_v50 = vpop.f32.mrf.mxu1  ;;  %v2038_v47 = vadd.f32 %v1931_v25, %v1759_v18  ;;  %v2193_v19 = vpack.c.bf16 %v2147_v20, %v2145_v27  ;;  %v2093_v17 = vadd.f32 %v2037_v43, %v9185_v61  ;;  %v2148_v42 = vmax.f32 %v2092_v13, 0.0  ;;  %v11286_v18 = vld [vmem:[#allocation24_spill] sm:$0xff] }
 0x211   :  { %v1933_v6 = vpop.f32.mrf.mxu0  ;;  %v1771_v26 = vadd.f32 %v9770_v21, %v11286_v18  ;;  %v1779_v13 = vadd.f32 %v9792_v23, %v9588_v16  ;;  %v11289_v18 = vld [vmem:[#allocation29_spill] sm:$0xff] }
 0x212   :  { %v2094_v2 = vadd.f32 %v2038_v47, %v9176_v9  ;;  %v9840_v38 = vpop.f32.mrf.mxu1  ;;  %v2039_v30 = vadd.f32 %v1933_v6, %v1761_v5  ;;  %2842 = vmatprep.mubr.bf16.mxu0 %v2193_v19  ;;  %v2149_v62 = vmax.f32 %v2093_v17, 0.0  ;;  %v11287_v47 = vld [vmem:[#allocation26_spill] sm:$0xff]  ;;  %v11288_v6 = vld [vmem:[#allocation25_spill] sm:$0xff] }
 0x213   :  { %v1937_v22 = vpop.f32.mrf.mxu0  ;;  %2843 = vmatmul.mubr.bf16.gmra.mxu0 %v2192_v51  ;;  %3229 = vmatmul.mubr.bf16.gmra.mxu1 %v9452_v32  ;;  %v1777_v21 = vadd.f32 %v9788_v31, %v11287_v47  ;;  %v1775_v17 = vadd.f32 %v9776_v1, %v11288_v6 }
 0x214   :  { %v2095_v11 = vadd.f32 %v2039_v30, %v9185_v61  ;;  %v9846_v40 = vpop.f32.mrf.mxu1  ;;  %v2150_v7 = vmax.f32 %v2094_v2, 0.0  ;;  %3238 = vmatprep.mubr.bf16.mxu1 %v9495_v4  ;;  %v2040_v45 = vadd.f32 %v1937_v22, %v1765_v10 }
 0x215   :  { %v1939_v15 = vpop.f32.mrf.mxu0 }
 0x216   :  { %v2151_v32 = vmax.f32 %v2095_v11, 0.0  ;;  %v9860_v55 = vpop.f32.mrf.mxu1  ;;  %v2041_v57 = vadd.f32 %v1939_v15, %v1767_v49  ;;  %v2194_v43 = vpack.c.bf16 %v2150_v7, %v2148_v42  ;;  %v2096_v54 = vadd.f32 %v2040_v45, %v9176_v9 }
 0x217   :  { %v1941_v8 = vpop.f32.mrf.mxu0  ;;  %v1787_v42 = vadd.f32 %v9810_v46, %v9605_v29 }
 0x218   :  { %v9864_v27 = vpop.f32.mrf.mxu1  ;;  %v2042_v4 = vadd.f32 %v1941_v8, %v1769_v34  ;;  %v2195_v20 = vpack.c.bf16 %v2151_v32, %v2149_v62  ;;  %v2097_v33 = vadd.f32 %v2041_v57, %v9185_v61  ;;  %v2152_v11 = vmax.f32 %v2096_v54, 0.0  ;;  %v7732_v62 = vld [vmem:[%s11172_s10 + $0x170] sm:$0xff]   ;;  %v7734_v57 = vld [vmem:[%s11172_s10 + $0x78] sm:$0xff]  }
 0x219   :  { %v1943_v59 = vpop.f32.mrf.mxu0  ;;  %7152 = vmatprep.subr.bf16.mxu1 %v7732_v62  ;;  %7106 = vmatprep.subr.bf16.mxu0 %v7734_v57  ;;  %v11290_v54 = vld [vmem:[#allocation31_spill] sm:$0xff] }
 0x21a   :  { %v2098_v63 = vadd.f32 %v2042_v4, %v9176_v9  ;;  %v9868_v41 = vpop.f32.mrf.mxu1  ;;  %v2043_v25 = vadd.f32 %v1943_v59, %v1771_v26  ;;  %2852 = vmatprep.mubr.bf16.mxu0 %v2195_v20  ;;  %v2153_v22 = vmax.f32 %v2097_v33, 0.0  ;;  %v1785_v26 = vadd.f32 %v9802_v14, %v11289_v18 }
 0x21b   :  { %v1947_v5 = vpop.f32.mrf.mxu0  ;;  %2853 = vmatmul.mubr.bf16.gmra.mxu0 %v2194_v43  ;;  %3239 = vmatmul.mubr.bf16.gmra.mxu1 %v9486_v60  ;;  %v1781_v60 = vadd.f32 %v9796_v35, %v9592_v24  ;;  %v7733_v24 = vld [vmem:[%s11172_s10 + $0x130] sm:$0xff]   ;;  %v1789_v43 = vadd.f32 %v9814_v28, %v9610_v52  ;;  %v1791_v14 = vadd.f32 %v9818_v37, %v11290_v54  ;;  %v11298_v54 = vld [vmem:[#allocation27_spill] sm:$0xff] }
 0x21c   :  { %v2099_v19 = vadd.f32 %v2043_v25, %v9185_v61  ;;  %v9874_v51 = vpop.f32.mrf.mxu1  ;;  %v2154_v2 = vmax.f32 %v2098_v63, 0.0  ;;  %3248 = vmatprep.mubr.bf16.mxu1 %v9529_v56  ;;  %v2044_v48 = vadd.f32 %v1947_v5, %v1775_v17  ;;  %7153 = vmatpush3.bf16.msra.mxu1 %v7733_v24 }
 0x21d   :  { %v1949_v30 = vpop.f32.mrf.mxu0 }
 0x21e   :  { %v2155_v12 = vmax.f32 %v2099_v19, 0.0  ;;  %v9882_v49 = vpop.f32.mrf.mxu1  ;;  %v2045_v31 = vadd.f32 %v1949_v30, %v1777_v21  ;;  %v2196_v56 = vpack.c.bf16 %v2154_v2, %v2152_v11  ;;  %v2100_v35 = vadd.f32 %v2044_v48, %v9176_v9  ;;  %v11293_v11 = vld [vmem:[#allocation33_spill] sm:$0xff] }
 0x21f   :  { %v1951_v3 = vpop.f32.mrf.mxu0  ;;  %v1795_v48 = vadd.f32 %v9824_v36, %v11293_v11 }
 0x220   :  { %v9886_v0 = vpop.f32.mrf.mxu1  ;;  %v2046_v1 = vadd.f32 %v1951_v3, %v1779_v13  ;;  %v2197_v10 = vpack.c.bf16 %v2155_v12, %v2153_v22  ;;  %v2101_v15 = vadd.f32 %v2045_v31, %v9185_v61  ;;  %v2156_v63 = vmax.f32 %v2100_v35, 0.0  ;;  %v11291_v13 = vld [vmem:[#allocation34_spill] sm:$0xff]  ;;  %v11292_v31 = vld [vmem:[#allocation23_spill] sm:$0xff]  ;;  %v11296_v35 = vld [vmem:[#allocation37_spill] sm:$0xff] }
 0x221   :  { %v1953_v7 = vpop.f32.mrf.mxu0  ;;  %v1797_v37 = vadd.f32 %v9832_v58, %v11291_v13 }
 0x222   :  { %v2102_v16 = vadd.f32 %v2046_v1, %v9176_v9  ;;  %v9890_v23 = vpop.f32.mrf.mxu1  ;;  %v2047_v34 = vadd.f32 %v1953_v7, %v1781_v60  ;;  %2862 = vmatprep.mubr.bf16.mxu0 %v2197_v10  ;;  %v2157_v59 = vmax.f32 %v2101_v15, 0.0  ;;  %v11294_v60 = vld [vmem:[#allocation28_spill] sm:$0xff] }
 0x223   :  { %v1957_v32 = vpop.f32.mrf.mxu0  ;;  %2863 = vmatmul.mubr.bf16.gmra.mxu0 %v2196_v56  ;;  %3249 = vmatmul.mubr.bf16.gmra.mxu1 %v9520_v39  ;;  %v11295_v10 = vld [vmem:[#allocation36_spill] sm:$0xff] }
 0x224   :  { %v2103_v45 = vadd.f32 %v2047_v34, %v9185_v61  ;;  %v9905_v8 = vpop.f32.mrf.mxu1  ;;  %v2158_v4 = vmax.f32 %v2102_v16, 0.0  ;;  %3258 = vmatprep.mubr.bf16.mxu1 %v9563_v44  ;;  %v2048_v39 = vadd.f32 %v1957_v32, %v1785_v26  ;;  %v1799_v56 = vadd.f32 %v9836_v50, %v11295_v10  ;;  %v7742_v50 = vld [vmem:[%s11172_s10 + $0x128] sm:$0xff]  }
 0x225   :  { %v1959_v20 = vpop.f32.mrf.mxu0  ;;  %v1801_v32 = vadd.f32 %v9840_v38, %v11296_v35  ;;  %v11304_v35 = vld [vmem:[#allocation30_spill] sm:$0xff] }
 0x226   :  { %v2159_v29 = vmax.f32 %v2103_v45, 0.0  ;;  %v9913_v46 = vpop.f32.mrf.mxu1  ;;  %v2049_v33 = vadd.f32 %v1959_v20, %v1787_v42  ;;  %v2198_v21 = vpack.c.bf16 %v2158_v4, %v2156_v63  ;;  %v2104_v2 = vadd.f32 %v2048_v39, %v9176_v9  ;;  %v7740_v45 = vld [vmem:[%s11172_s10 + $0x168] sm:$0xff]  }
 0x227   :  { %v1961_v25 = vpop.f32.mrf.mxu0  ;;  %7154 = vmatprep.subr.bf16.mxu1 %v7740_v45  ;;  %v11306_v45 = vld [vmem:[#allocation38_spill] sm:$0xff] }
 0x228   :  { %v9917_v5 = vpop.f32.mrf.mxu1  ;;  %v2050_v44 = vadd.f32 %v1961_v25, %v1789_v43  ;;  %v2199_v47 = vpack.c.bf16 %v2159_v29, %v2157_v59  ;;  %v2105_v52 = vadd.f32 %v2049_v33, %v9185_v61  ;;  %v2160_v34 = vmax.f32 %v2104_v2, 0.0  ;;  %7155 = vmatpush3.bf16.msra.mxu1 %v7742_v50  ;;  %v11297_v33 = vld [vmem:[#allocation40_spill] sm:$0xff] }
 0x229   :  { %v1963_v19 = vpop.f32.mrf.mxu0  ;;  %v1807_v63 = vadd.f32 %v9860_v55, %v11297_v33 }
 0x22a   :  { %v2106_v28 = vadd.f32 %v2050_v44, %v9176_v9  ;;  %v9921_v6 = vpop.f32.mrf.mxu1  ;;  %v2051_v17 = vadd.f32 %v1963_v19, %v1791_v14  ;;  %2872 = vmatprep.mubr.bf16.mxu0 %v2199_v47  ;;  %v2161_v7 = vmax.f32 %v2105_v52, 0.0  ;;  %v11299_v14 = vld [vmem:[#allocation39_spill] sm:$0xff]  ;;  %v11301_v52 = vld [vmem:[#allocation42_spill] sm:$0xff] }
 0x22b   :  { %v1967_v30 = vpop.f32.mrf.mxu0  ;;  %2873 = vmatmul.mubr.bf16.gmra.mxu0 %v2198_v21  ;;  %3259 = vmatmul.mubr.bf16.gmra.mxu1 %v11292_v31  ;;  %v1805_v44 = vadd.f32 %v9846_v40, %v11299_v14  ;;  %v11300_v21 = vld [vmem:[#allocation32_spill] sm:$0xff]  ;;  %v11302_v31 = vld [vmem:[#allocation43_spill] sm:$0xff] }
 0x22c   :  { %v2107_v22 = vadd.f32 %v2051_v17, %v9185_v61  ;;  %v9927_v12 = vpop.f32.mrf.mxu1  ;;  %v2162_v3 = vmax.f32 %v2106_v28, 0.0  ;;  %3268 = vmatprep.mubr.bf16.mxu1 %v11294_v60  ;;  %v2052_v62 = vadd.f32 %v1967_v30, %v1795_v48  ;;  %v1809_v28 = vadd.f32 %v9864_v27, %v11301_v52 }
 0x22d   :  { %v1969_v1 = vpop.f32.mrf.mxu0  ;;  %v1811_v11 = vadd.f32 %v9868_v41, %v11302_v31 }
 0x22e   :  { %v2163_v15 = vmax.f32 %v2107_v22, 0.0  ;;  %v9935_v16 = vpop.f32.mrf.mxu1  ;;  %v2053_v58 = vadd.f32 %v1969_v1, %v1797_v37  ;;  %v2200_v18 = vpack.c.bf16 %v2162_v3, %v2160_v34  ;;  %v2108_v59 = vadd.f32 %v2052_v62, %v9176_v9  ;;  %v11303_v34 = vld [vmem:[#allocation46_spill] sm:$0xff] }
 0x22f   :  { %v1971_v24 = vpop.f32.mrf.mxu0  ;;  %v1817_v41 = vadd.f32 %v9882_v49, %v11303_v34 }
 0x230   :  { %v9939_v57 = vpop.f32.mrf.mxu1  ;;  %v2054_v36 = vadd.f32 %v1971_v24, %v1799_v56  ;;  %v2201_v42 = vpack.c.bf16 %v2163_v15, %v2161_v7  ;;  %v2109_v4 = vadd.f32 %v2053_v58, %v9185_v61  ;;  %v2164_v13 = vmax.f32 %v2108_v59, 0.0 }
 0x231   :  { %v1973_v26 = vpop.f32.mrf.mxu0 }
 0x232   :  { %v2110_v20 = vadd.f32 %v2054_v36, %v9176_v9  ;;  %v9949_v43 = vpop.f32.mrf.mxu1  ;;  %v2055_v38 = vadd.f32 %v1973_v26, %v1801_v32  ;;  %2882 = vmatprep.mubr.bf16.mxu0 %v2201_v42  ;;  %v2165_v17 = vmax.f32 %v2109_v4, 0.0  ;;  %v11305_v32 = vld [vmem:[#allocation45_spill] sm:$0xff] }
 0x233   :  { %v1977_v29 = vpop.f32.mrf.mxu0  ;;  %2883 = vmatmul.mubr.bf16.gmra.mxu0 %v2200_v18  ;;  %3269 = vmatmul.mubr.bf16.gmra.mxu1 %v11298_v54  ;;  %v1815_v36 = vadd.f32 %v9874_v51, %v11305_v32  ;;  %v11307_v18 = vld [vmem:[#allocation47_spill] sm:$0xff]  ;;  %v11308_v51 = vld [vmem:[#allocation48_spill] sm:$0xff] }
 0x234   :  { %v2111_v39 = vadd.f32 %v2055_v38, %v9185_v61  ;;  %v9955_v25 = vpop.f32.mrf.mxu1  ;;  %v2166_v47 = vmax.f32 %v2110_v20, 0.0  ;;  %3278 = vmatprep.mubr.bf16.mxu1 %v11300_v21  ;;  %v2056_v37 = vadd.f32 %v1977_v29, %v1805_v44  ;;  %v1819_v26 = vadd.f32 %v9886_v0, %v11307_v18  ;;  %v7751_v0 = vld [vmem:[%s11172_s10 + $0x120] sm:$0xff]   ;;  %v7761_v18 = vld [vmem:[%s11172_s10 + $0x110] sm:$0xff]  }
 0x235   :  { %v1979_v19 = vpop.f32.mrf.mxu0 }
 0x236   :  { %v2167_v2 = vmax.f32 %v2111_v39, 0.0  ;;  %v2057_v30 = vadd.f32 %v1979_v19, %v1807_v63  ;;  %v9963_v55 = vpop.f32.mrf.mxu1  ;;  %v2202_v60 = vpack.c.bf16 %v2166_v47, %v2164_v13  ;;  %v2112_v15 = vadd.f32 %v2056_v37, %v9176_v9  ;;  %v7750_v63 = vld [vmem:[%s11172_s10 + $0x160] sm:$0xff]   ;;  %v11309_v13 = vld [vmem:[#allocation50_spill] sm:$0xff] }
 0x237   :  { %v1981_v22 = vpop.f32.mrf.mxu0  ;;  %v1821_v39 = vadd.f32 %v9890_v23, %v11308_v51  ;;  %7156 = vmatprep.subr.bf16.mxu1 %v7750_v63  ;;  %v1827_v37 = vadd.f32 %v9913_v46, %v11309_v13  ;;  %v7763_v63 = vld [vmem:[%s11172_s10 + $0x148] sm:$0xff]   ;;  %v11315_v51 = vld [vmem:[#allocation54_spill] sm:$0xff] }
 0x238   :  { %v2058_v48 = vadd.f32 %v1981_v22, %v1809_v28  ;;  %v9967_v40 = vpop.f32.mrf.mxu1  ;;  %v2203_v3 = vpack.c.bf16 %v2167_v2, %v2165_v17  ;;  %v2113_v10 = vadd.f32 %v2057_v30, %v9185_v61  ;;  %v2168_v59 = vmax.f32 %v2112_v15, 0.0  ;;  %7157 = vmatpush3.bf16.msra.mxu1 %v7751_v0  ;;  %v7755_v30 = vld [vmem:[%s11172_s10 + $0x158] sm:$0xff]   ;;  %v11316_v0 = vld [vmem:[#allocation41_spill] sm:$0xff] }
 0x239   :  { %v1983_v1 = vpop.f32.mrf.mxu0  ;;  %7158 = vmatprep.subr.bf16.mxu1 %v7755_v30 }
 0x23a   :  { %v2114_v27 = vadd.f32 %v2058_v48, %v9176_v9  ;;  %v2059_v56 = vadd.f32 %v1983_v1, %v1811_v11  ;;  %v9971_v7 = vpop.f32.mrf.mxu1  ;;  %2892 = vmatprep.mubr.bf16.mxu0 %v2203_v3  ;;  %v2169_v4 = vmax.f32 %v2113_v10, 0.0  ;;  %v11310_v11 = vld [vmem:[#allocation35_spill] sm:$0xff]  ;;  %v11311_v3 = vld [vmem:[#allocation49_spill] sm:$0xff]  ;;  %v11312_v10 = vld [vmem:[#allocation44_spill] sm:$0xff] }
 0x23b   :  { %v1987_v58 = vpop.f32.mrf.mxu0  ;;  %2893 = vmatmul.mubr.bf16.gmra.mxu0 %v2202_v60  ;;  %3279 = vmatmul.mubr.bf16.gmra.mxu1 %v11304_v35  ;;  %v7757_v48 = vld [vmem:[%s11172_s10 + $0x118] sm:$0xff]   ;;  %v1825_v60 = vadd.f32 %v9905_v8, %v11311_v3  ;;  %v7759_v8 = vld [vmem:[%s11172_s10 + $0x150] sm:$0xff]   ;;  %v7767_v3 = vld [vmem:[%s11172_s10 + $0x140] sm:$0xff]  }
 0x23c   :  { %v2115_v62 = vadd.f32 %v2059_v56, %v9185_v61  ;;  %v9977_v24 = vpop.f32.mrf.mxu1  ;;  %v2170_v42 = vmax.f32 %v2114_v27, 0.0  ;;  %3288 = vmatprep.mubr.bf16.mxu1 %v11306_v45  ;;  %v2060_v29 = vadd.f32 %v1987_v58, %v1815_v36  ;;  %v11313_v56 = vld [vmem:[#allocation51_spill] sm:$0xff]  ;;  %7159 = vmatpush3.bf16.msra.mxu1 %v7757_v48  ;;  %v11314_v36 = vld [vmem:[#allocation52_spill] sm:$0xff] }
 0x23d   :  { %v1989_v50 = vpop.f32.mrf.mxu0  ;;  %v1829_v46 = vadd.f32 %v9917_v5, %v11313_v56  ;;  %7160 = vmatprep.subr.bf16.mxu1 %v7759_v8 }
 0x23e   :  { %v2171_v20 = vmax.f32 %v2115_v62, 0.0  ;;  %v2061_v38 = vadd.f32 %v1989_v50, %v1817_v41  ;;  %v9985_v49 = vpop.f32.mrf.mxu1  ;;  %v2204_v47 = vpack.c.bf16 %v2170_v42, %v2168_v59  ;;  %v2116_v23 = vadd.f32 %v2060_v29, %v9176_v9 }
 0x23f   :  { %v1991_v33 = vpop.f32.mrf.mxu0  ;;  %v1831_v42 = vadd.f32 %v9921_v6, %v11314_v36 }
 0x240   :  { %v2062_v54 = vadd.f32 %v1991_v33, %v1819_v26  ;;  %v9992_v14 = vpop.f32.mrf.mxu1  ;;  %v2205_v44 = vpack.c.bf16 %v2171_v20, %v2169_v4  ;;  %v2117_v19 = vadd.f32 %v2061_v38, %v9185_v61  ;;  %v2172_v62 = vmax.f32 %v2116_v23, 0.0  ;;  %7161 = vmatpush3.bf16.msra.mxu1 %v7761_v18  ;;  %v11318_v23 = vld [vmem:[#allocation55_spill] sm:$0xff] }
 0x241   :  { %v1993_v21 = vpop.f32.mrf.mxu0  ;;  %7162 = vmatprep.subr.bf16.mxu1 %v7763_v63 }
 0x242   :  { %v2118_v52 = vadd.f32 %v2062_v54, %v9176_v9  ;;  %v2063_v28 = vadd.f32 %v1993_v21, %v1821_v39  ;;  %v9999_v17 = vpop.f32.mrf.mxu1  ;;  %2902 = vmatprep.mubr.bf16.mxu0 %v2205_v44  ;;  %v2173_v15 = vmax.f32 %v2117_v19, 0.0  ;;  %v1837_v39 = vadd.f32 %v9935_v16, %v11315_v51  ;;  %v11317_v21 = vld [vmem:[#allocation53_spill] sm:$0xff]  ;;  %v11322_v51 = vld [vmem:[#allocation6_spill] sm:$0xff] }
 0x243   :  { %v1997_v2 = vpop.f32.mrf.mxu0  ;;  %2903 = vmatmul.mubr.bf16.gmra.mxu0 %v2204_v47  ;;  %3289 = vmatmul.mubr.bf16.gmra.mxu1 %v11310_v11  ;;  %v7765_v47 = vld [vmem:[%s11172_s10 + $0x108] sm:$0xff]   ;;  %v1835_v19 = vadd.f32 %v9927_v12, %v11317_v21  ;;  %v11319_v12 = vld [vmem:[#allocation56_spill] sm:$0xff] }
 0x244   :  { %v2119_v22 = vadd.f32 %v2063_v28, %v9185_v61  ;;  %v10008_v31 = vpop.f32.mrf.mxu1  ;;  %v2174_v1 = vmax.f32 %v2118_v52, 0.0  ;;  %3298 = vmatprep.mubr.bf16.mxu1 %v11312_v10  ;;  %v2064_v35 = vadd.f32 %v1997_v2, %v1825_v60  ;;  %v1839_v2 = vadd.f32 %v9939_v57, %v11318_v23  ;;  %7163 = vmatpush3.bf16.msra.mxu1 %v7765_v47 }
 0x245   :  { %v1999_v27 = vpop.f32.mrf.mxu0  ;;  %v1841_v60 = vadd.f32 %v9949_v43, %v11319_v12  ;;  %7164 = vmatprep.subr.bf16.mxu1 %v7767_v3  ;;  %v7747_v12 = vld [vmem:[%s11172_s10 + $0x10] sm:$0xff]  }
 0x246   :  { %v2175_v58 = vmax.f32 %v2119_v22, 0.0  ;;  %v2065_v34 = vadd.f32 %v1999_v27, %v1827_v37  ;;  %v10019_v41 = vpop.f32.mrf.mxu1  ;;  %v2206_v26 = vpack.c.bf16 %v2174_v1, %v2172_v62  ;;  %v2120_v6 = vadd.f32 %v2064_v35, %v9176_v9  ;;  %v7769_v27 = vld [vmem:[%s11172_s10 + $0x100] sm:$0xff]   ;;  %v7771_v35 = vld [vmem:[%s11172_s10 + $0x278] sm:$0xff]  }
 0x247   :  { %v2001_v32 = vpop.f32.mrf.mxu0 }
 0x248   :  { %v2066_v45 = vadd.f32 %v2001_v32, %v1829_v46  ;;  %v10026_v50 = vpop.f32.mrf.mxu1  ;;  %v2207_v5 = vpack.c.bf16 %v2175_v58, %v2173_v15  ;;  %v2121_v20 = vadd.f32 %v2065_v34, %v9185_v61  ;;  %v2176_v22 = vmax.f32 %v2120_v6, 0.0  ;;  %7165 = vmatpush3.bf16.msra.mxu1 %v7769_v27  ;;  %v7735_v6 = vld [vmem:[%s11172_s10 + $0x38] sm:$0xff]   ;;  %v7749_v27 = vld [vmem:[%s11172_s10 + $0x8] sm:$0xff]  }
 0x249   :  { %v2003_v4 = vpop.f32.mrf.mxu0  ;;  %7194 = vmatprep.subr.bf16.mxu1 %v7771_v35 }
 0x24a   :  { %v2122_v38 = vadd.f32 %v2066_v45, %v9176_v9  ;;  %v2067_v59 = vadd.f32 %v2003_v4, %v1831_v42  ;;  %v10033_v29 = vpop.f32.mrf.mxu1  ;;  %2912 = vmatprep.mubr.bf16.mxu0 %v2207_v5  ;;  %v2177_v16 = vmax.f32 %v2121_v20, 0.0 }
 0x24b   :  { %v2007_v33 = vpop.f32.mrf.mxu0  ;;  %2913 = vmatmul.mubr.bf16.gmra.mxu0 %v2206_v26  ;;  %3299 = vmatmul.mubr.bf16.gmra.mxu1 %v11316_v0  ;;  %v7738_v0 = vld [vmem:[%s11172_s10 + $0x68] sm:$0xff]  }
 0x24c   :  { %v2123_v54 = vadd.f32 %v2067_v59, %v9185_v61  ;;  %v10042_v44 = vpop.f32.mrf.mxu1  ;;  %v2178_v52 = vmax.f32 %v2122_v38, 0.0  ;;  %v2068_v11 = vadd.f32 %v2007_v33, %v1835_v19  ;;  %v7736_v33 = vld [vmem:[%s11172_s10 + $0x70] sm:$0xff]   ;;  %v7739_v19 = vld [vmem:[%s11172_s10 + $0x28] sm:$0xff]  }
 0x24d   :  { %v2009_v28 = vpop.f32.mrf.mxu0 }
 0x24e   :  { %v2179_v30 = vmax.f32 %v2123_v54, 0.0  ;;  %v2069_v13 = vadd.f32 %v2009_v28, %v1837_v39  ;;  %v10052_v37 = vpop.f32.mrf.mxu1  ;;  %v2208_v56 = vpack.c.bf16 %v2178_v52, %v2176_v22  ;;  %v2124_v43 = vadd.f32 %v2068_v11, %v9176_v9  ;;  %v7737_v54 = vld [vmem:[%s11172_s10 + $0x30] sm:$0xff]   ;;  %v7741_v52 = vld [vmem:[%s11172_s10 + $0x60] sm:$0xff]   ;;  %v7745_v22 = vld [vmem:[%s11172_s10 + $0x18] sm:$0xff]  }
 0x24f   :  { %v2011_v48 = vpop.f32.mrf.mxu0  ;;  %v7746_v11 = vld [vmem:[%s11172_s10 + $0x50] sm:$0xff]  }
 0x250   :  { %v2070_v1 = vadd.f32 %v2011_v48, %v1839_v2  ;;  %v10059_v10 = vpop.f32.mrf.mxu1  ;;  %v2209_v57 = vpack.c.bf16 %v2179_v30, %v2177_v16  ;;  %v2125_v15 = vadd.f32 %v2069_v13, %v9185_v61  ;;  %v2180_v18 = vmax.f32 %v2124_v43, 0.0  ;;  %v7743_v2 = vld [vmem:[%s11172_s10 + $0x20] sm:$0xff]   ;;  %v7744_v16 = vld [vmem:[%s11172_s10 + $0x58] sm:$0xff]  }
 0x251   :  { %v2013_v46 = vpop.f32.mrf.mxu0 }
 0x252   :  { %v2126_v58 = vadd.f32 %v2070_v1, %v9176_v9  ;;  %v2071_v34 = vadd.f32 %v2013_v46, %v1841_v60  ;;  %v10066_v62 = vpop.f32.mrf.mxu1  ;;  %2922 = vmatprep.mubr.bf16.mxu0 %v2209_v57  ;;  %v2181_v42 = vmax.f32 %v2125_v15, 0.0  ;;  %v7748_v60 = vld [vmem:[%s11172_s10 + $0x48] sm:$0xff]  }
 0x253   :  { %2923 = vmatmul.mubr.bf16.gmra.mxu0 %v2208_v56  ;;  %v7752_v56 = vld [vmem:[%s11172_s10 + $0x40] sm:$0xff]  }
 0x254   :  { %v2127_v32 = vadd.f32 %v2071_v34, %v9185_v61  ;;  %v10073_v8 = vpop.f32.mrf.mxu1  ;;  %v2182_v36 = vmax.f32 %v2126_v58, 0.0  ;;  %v7753_v58 = vld [vmem:[%s11172_s10] sm:$0xff]   ;;  %v7754_v34 = vld [vmem:[%s11172_s10 + $0xf8] sm:$0xff]  }
 0x256   :  { %v2183_v45 = vmax.f32 %v2127_v32, 0.0  ;;  %v10075_v5 = vpop.f32.mrf.mxu1  ;;  %v2210_v9 = vpack.c.bf16 %v2182_v36, %v2180_v18 }
 0x258   :  { %v10077_v26 = vpop.f32.mrf.mxu1  ;;  %v2211_v4 = vpack.c.bf16 %v2183_v45, %v2181_v42 }
 0x25a   :  { %v10079_v20 = vpop.f32.mrf.mxu1  ;;  %2932 = vmatprep.mubr.bf16.mxu0 %v2211_v4 }
 0x25b   :  { %2933 = vmatmul.mubr.bf16.gmra.mxu0 %v2210_v9 }
 0x25c   :  { %v10081_v38 = vpop.f32.mrf.mxu1  ;;  %7431 = vmatprep.mubr.msk.bf16.mxu0 %vm8011_vm0, %v11270_v53 }
 0x25d   :  { %11320 = vst [vmem:[#allocation20_spill] sm:$0xff] %v10081_v38 }
 0x25e   :  { %v10085_v61 = vpop.f32.mrf.mxu1 }
 0x260   :  { %v10087_v59 = vpop.f32.mrf.mxu1 }
 0x261   :  { %11321 = vst [vmem:[#allocation22_spill] sm:$0xff] %v10087_v59 }
 0x262   :  { %v10095_v63 = vpop.f32.mrf.mxu1 }
 0x263   :  { %7432 = vmatmul.mubr.msk.bf16.vlgmr.msra.gmra.mxu0 %vm4193_vm1, %v11322_v51 }
 0x264   :  { %v10098_v39 = vpop.f32.mrf.mxu1  ;;  %7107 = vmatpush3.bf16.msra.mxu0 %v7735_v6 }
 0x265   :  { %7108 = vmatprep.subr.bf16.mxu0 %v7736_v33 }
 0x266   :  { %v10106_v47 = vpop.f32.mrf.mxu1 }
 0x268   :  { %v10108_v21 = vpop.f32.mrf.mxu1  ;;  %7109 = vmatpush3.bf16.msra.mxu0 %v7737_v54 }
 0x269   :  { %7110 = vmatprep.subr.bf16.mxu0 %v7738_v0 }
 0x26a   :  { %v10116_v28 = vpop.f32.mrf.mxu1 }
 0x26c   :  { %v10118_v23 = vpop.f32.mrf.mxu1  ;;  %7111 = vmatpush3.bf16.msra.mxu0 %v7739_v19 }
 0x26d   :  { %7112 = vmatprep.subr.bf16.mxu0 %v7741_v52 }
 0x26e   :  { %v10126_v30 = vpop.f32.mrf.mxu1 }
 0x26f   :  { %11323 = vst [vmem:[#allocation7_spill] sm:$0xff] %v10126_v30 }
 0x270   :  { %v10128_v13 = vpop.f32.mrf.mxu1  ;;  %7113 = vmatpush3.bf16.msra.mxu0 %v7743_v2 }
 0x271   :  { %7114 = vmatprep.subr.bf16.mxu0 %v7744_v16 }
 0x272   :  { %v10136_v48 = vpop.f32.mrf.mxu1 }
 0x273   :  { %11324 = vst [vmem:[#allocation9_spill] sm:$0xff] %v10136_v48 }
 0x274   :  { %v10138_v3 = vpop.f32.mrf.mxu1  ;;  %7115 = vmatpush3.bf16.msra.mxu0 %v7745_v22 }
 0x275   :  { %11325 = vst [vmem:[#allocation19_spill] sm:$0xff] %v10138_v3  ;;  %7116 = vmatprep.subr.bf16.mxu0 %v7746_v11 }
 0x276   :  { %v10146_v1 = vpop.f32.mrf.mxu1 }
 0x278   :  { %v10148_v57 = vpop.f32.mrf.mxu1  ;;  %7117 = vmatpush3.bf16.msra.mxu0 %v7747_v12 }
 0x279   :  { %11326 = vst [vmem:[#allocation8_spill] sm:$0xff] %v10148_v57  ;;  %7118 = vmatprep.subr.bf16.mxu0 %v7748_v60 }
 0x27a   :  { %v10156_v46 = vpop.f32.mrf.mxu1 }
 0x27c   :  { %v10158_v15 = vpop.f32.mrf.mxu1  ;;  %7119 = vmatpush3.bf16.msra.mxu0 %v7749_v27 }
 0x27d   :  { %7120 = vmatprep.subr.bf16.mxu0 %v7752_v56 }
 0x27e   :  { %v10166_v43 = vpop.f32.mrf.mxu1 }
 0x27f   :  { %11327 = vst [vmem:[#allocation21_spill] sm:$0xff] %v10166_v43 }
 0x280   :  { %v10168_v35 = vpop.f32.mrf.mxu1  ;;  %7121 = vmatpush3.bf16.msra.mxu0 %v7753_v58 }
 0x281   :  { %7128 = vmatprep.subr.bf16.mxu0 %v7754_v34 }
 0x282   :  { %v10170_v32 = vpop.f32.mrf.mxu1 }
 0x283   :  { %11328 = vst [vmem:[#allocation10_spill] sm:$0xff] %v10170_v32 }
 0x284   :  { %v10172_v36 = vpop.f32.mrf.mxu1 }
 0x286   :  { %v10174_v42 = vpop.f32.mrf.mxu1 }
 0x287   :  { %11329 = vst [vmem:[#allocation11_spill] sm:$0xff] %v10174_v42  ;;  %v3365_v42 = vld [vmem:[%s11170_s8] sm:$0x3] }
 0x288   :  { %v10176_v45 = vpop.f32.mrf.mxu1 }
 0x28a   :  { %v10178_v18 = vpop.f32.mrf.mxu1 }
 0x28b   :  { %11330 = vst [vmem:[#allocation13_spill] sm:$0xff] %v10178_v18 }
 0x28c   :  { %v10180_v4 = vpop.f32.mrf.mxu1 }
 0x28e   :  { %v10182_v9 = vpop.f32.mrf.mxu1 }
 0x290   :  { %v10184_v6 = vpop.f32.mrf.mxu1 }
 0x292   :  { %v10186_v33 = vpop.f32.mrf.mxu1 }
 0x293   :  { %11331 = vst [vmem:[#allocation12_spill] sm:$0xff] %v10186_v33 }
 0x294   :  { %v10188_v51 = vpop.f32.mrf.mxu1 }
 0x295   :  { %11332 = vst [vmem:[#allocation15_spill] sm:$0xff] %v10188_v51 }
 0x296   :  { %v10190_v54 = vpop.f32.mrf.mxu1 }
 0x297   :  { %11333 = vst [vmem:[#allocation16_spill] sm:$0xff] %v10190_v54 }
 0x298   :  { %v10192_v0 = vpop.f32.mrf.mxu1 }
 0x299   :  { %11334 = vst [vmem:[#allocation18_spill] sm:$0xff] %v10192_v0 }
 0x29a   :  { %v10194_v19 = vpop.f32.mrf.mxu1 }
 0x29b   :  { %11335 = vst [vmem:[#allocation17_spill] sm:$0xff] %v10194_v19 }
 0x29c   :  { %v10196_v52 = vpop.f32.mrf.mxu1 }
 0x29d   :  { %11336 = vst [vmem:[#allocation24_spill] sm:$0xff] %v10196_v52 }
 0x29e   :  { %v10198_v2 = vpop.f32.mrf.mxu1 }
 0x29f   :  { %11337 = vst [vmem:[#allocation26_spill] sm:$0xff] %v10198_v2 }
 0x2a0   :  { %v10200_v16 = vpop.f32.mrf.mxu1 }
 0x2a1   :  { %11338 = vst [vmem:[#allocation25_spill] sm:$0xff] %v10200_v16  ;;  %v11340_v16 = vld [vmem:[#allocation14_spill] sm:$0xff] }
 0x2a2   :  { %v10202_v22 = vpop.f32.mrf.mxu1  ;;  %v11341_v2 = vsub.s32 1, %v11340_v16 }
 0x2a3   :  { %11339 = vst [vmem:[#allocation29_spill] sm:$0xff] %v10202_v22 }
 0x2a4   :  { %v3170_v11 = vpop.f32.mrf.mxu1  ;;  %v10215_v52 = vrot.slane %v3365_v42, %v11341_v2 }
 0x2a6   :  { %v3172_v12 = vpop.f32.mrf.mxu1 }
 0x2a8   :  { %v3174_v60 = vpop.f32.mrf.mxu1 }
 0x2aa   :  { %v3176_v27 = vpop.f32.mrf.mxu1 }
 0x2ac   :  { %v10204_v56 = vpop.f32.mrf.mxu1 }
 0x2ae   :  { %v3182_v58 = vpop.f32.mrf.mxu1 }
 0x2b0   :  { %v10206_v34 = vpop.f32.mrf.mxu1 }
 0x2b2   :  { %v3186_v53 = vpop.f32.mrf.mxu1 }
 0x2b3   :  { %v2804_v54 = vpop.f32.mrf.mxu0 }
 0x2b4   :  { %v3190_v19 = vpop.f32.mrf.mxu1  ;;  %v2805_v43 = vadd.f32 %v2804_v54, %v9955_v25  ;;  %v11342_v25 = vsub.s32 0, %v11340_v16 }
 0x2b5   :  { %v2806_v32 = vpop.f32.mrf.mxu0 }
 0x2b6   :  { %v2807_v3 = vadd.f32 %v2806_v32, %v9963_v55  ;;  %v3192_v18 = vpop.f32.mrf.mxu1  ;;  %v3309_v38 = vadd.f32 %v3170_v11, %v2805_v43  ;;  %v10220_v54 = vrot.slane %v3365_v42, %v11342_v25 }
 0x2b7   :  { %v2808_v57 = vpop.f32.mrf.mxu0 }
 0x2b8   :  { %v3310_v22 = vadd.f32 %v3172_v12, %v2807_v3  ;;  %v2809_v0 = vadd.f32 %v2808_v57, %v9967_v40  ;;  %v3194_v30 = vpop.f32.mrf.mxu1  ;;  %v3377_v40 = vadd.f32 %v10220_v54, %v3309_v38 }
 0x2b9   :  { %v2810_v51 = vpop.f32.mrf.mxu0 }
 0x2ba   :  { %v3311_v48 = vadd.f32 %v3174_v60, %v2809_v0  ;;  %v2811_v59 = vadd.f32 %v2810_v51, %v9971_v7  ;;  %v3196_v55 = vpop.f32.mrf.mxu1  ;;  %v3378_v3 = vadd.f32 %v10215_v52, %v3310_v22 }
 0x2bb   :  { %v10223_v32 = vpop.f32.mrf.mxu0 }
 0x2bc   :  { %v3379_v2 = vadd.f32 %v10220_v54, %v3311_v48  ;;  %v3312_v12 = vadd.f32 %v3176_v27, %v2811_v59  ;;  %v10227_v33 = vpop.f32.mrf.mxu1  ;;  %v3434_v16 = vmax.f32 %v3378_v3, 0.0  ;;  %v3433_v48 = vmax.f32 %v3377_v40, 0.0  ;;  %v7758_v3 = vld [vmem:[%s11172_s10 + $0xf0] sm:$0xff]  }
 0x2bd   :  { %v2816_v57 = vpop.f32.mrf.mxu0 }
 0x2be   :  { %v3380_v43 = vadd.f32 %v10215_v52, %v3312_v12  ;;  %v2817_v42 = vadd.f32 %v2816_v57, %v9985_v49  ;;  %v10232_v0 = vpop.f32.mrf.mxu1  ;;  %v3435_v7 = vmax.f32 %v3379_v2, 0.0  ;;  %v7756_v49 = vld [vmem:[%s11172_s10 + $0xb8] sm:$0xff]  }
 0x2bf   :  { %v10234_v51 = vpop.f32.mrf.mxu0 }
 0x2c0   :  { %v3436_v11 = vmax.f32 %v3380_v43, 0.0  ;;  %v10236_v22 = vpop.f32.mrf.mxu1  ;;  %v3314_v59 = vadd.f32 %v3182_v58, %v2817_v42  ;;  %v7051_v12 = vpack.c.bf16 %v3435_v7, %v3433_v48  ;;  %v7762_v48 = vld [vmem:[%s11172_s10 + $0xe8] sm:$0xff]  }
 0x2c1   :  { %v2820_v60 = vpop.f32.mrf.mxu0 }
 0x2c2   :  { %v2821_v27 = vadd.f32 %v2820_v60, %v9999_v17  ;;  %v10239_v38 = vpop.f32.mrf.mxu1  ;;  %v7052_v25 = vpack.c.bf16 %v3436_v11, %v3434_v16  ;;  %v3382_v58 = vadd.f32 %v10215_v52, %v3314_v59 }
 0x2c3   :  { %v2824_v2 = vpop.f32.mrf.mxu0 }
 0x2c4   :  { %v3316_v57 = vadd.f32 %v3186_v53, %v2821_v27  ;;  %v10247_v43 = vpop.f32.mrf.mxu1  ;;  %5754 = vmatprep.mubr.bf16.mxu0 %v7052_v25  ;;  %v2825_v17 = vadd.f32 %v2824_v2, %v10008_v31  ;;  %v7760_v53 = vld [vmem:[%s11172_s10 + $0xb0] sm:$0xff]  }
 0x2c5   :  { %v2826_v40 = vpop.f32.mrf.mxu0  ;;  %5755 = vmatmul.mubr.bf16.vlgmr.msra.gmra.mxu0 %v7051_v12 }
 0x2c6   :  { %v3384_v42 = vadd.f32 %v10215_v52, %v3316_v57  ;;  %v2827_v16 = vadd.f32 %v2826_v40, %v10019_v41  ;;  %v10253_v7 = vpop.f32.mrf.mxu1  ;;  %7129 = vmatpush3.bf16.msra.mxu0 %v7756_v49  ;;  %v3438_v41 = vmax.f32 %v3382_v58, 0.0  ;;  %v3317_v25 = vadd.f32 %v3190_v19, %v2825_v17 }
 0x2c7   :  { %v2828_v11 = vpop.f32.mrf.mxu0  ;;  %7130 = vmatprep.subr.bf16.mxu0 %v7758_v3  ;;  %v7764_v3 = vld [vmem:[%s11172_s10 + $0xa8] sm:$0xff]  }
 0x2c8   :  { %v3440_v31 = vmax.f32 %v3384_v42, 0.0  ;;  %v3318_v59 = vadd.f32 %v3192_v18, %v2827_v16  ;;  %v2829_v60 = vadd.f32 %v2828_v11, %v10026_v50  ;;  %v10262_v27 = vpop.f32.mrf.mxu1  ;;  %v7766_v50 = vld [vmem:[%s11172_s10 + $0xe0] sm:$0xff]   ;;  %v3385_v17 = vadd.f32 %v10220_v54, %v3317_v25 }
 0x2c9   :  { %v2830_v12 = vpop.f32.mrf.mxu0  ;;  %v7768_v11 = vld [vmem:[%s11172_s10 + $0xa0] sm:$0xff]  }
 0x2ca   :  { %v3319_v49 = vadd.f32 %v3194_v30, %v2829_v60  ;;  %v2831_v2 = vadd.f32 %v2830_v12, %v10033_v29  ;;  %v10265_v57 = vpop.f32.mrf.mxu1  ;;  %7131 = vmatpush3.bf16.msra.mxu0 %v7760_v53  ;;  %v7054_v18 = vpack.c.bf16 %v3440_v31, %v3438_v41  ;;  %v3386_v19 = vadd.f32 %v10215_v52, %v3318_v59 }
 0x2cb   :  { %v10270_v40 = vpop.f32.mrf.mxu0  ;;  %7132 = vmatprep.subr.bf16.mxu0 %v7762_v48  ;;  %v3441_v25 = vmax.f32 %v3385_v17, 0.0  ;;  %v7775_v17 = vld [vmem:[%s11172_s10 + $0x270] sm:$0xff]  }
 0x2cc   :  { %v3387_v30 = vadd.f32 %v10220_v54, %v3319_v49  ;;  %v3320_v29 = vadd.f32 %v3196_v55, %v2831_v2  ;;  %v10277_v58 = vpop.f32.mrf.mxu1  ;;  %5795 = vmatprep.mubr.bf16.mxu0 %v7054_v18  ;;  %v7770_v55 = vld [vmem:[%s11172_s10 + $0xd8] sm:$0xff]   ;;  %v3442_v59 = vmax.f32 %v3386_v19, 0.0 }
 0x2cd   :  { %11343 = vst [vmem:[#allocation31_spill] sm:$0xff] %v10277_v58  ;;  %v2836_v42 = vpop.f32.mrf.mxu0  ;;  %v7773_v18 = vld [vmem:[%s11172_s10 + $0x238] sm:$0xff]  }
 0x2ce   :  { %v3388_v16 = vadd.f32 %v10215_v52, %v3320_v29  ;;  %v10281_v53 = vpop.f32.mrf.mxu1  ;;  %7133 = vmatpush3.bf16.msra.mxu0 %v7764_v3  ;;  %v3443_v48 = vmax.f32 %v3387_v30, 0.0  ;;  %v7772_v3 = vld [vmem:[%s11172_s10 + $0x98] sm:$0xff]   ;;  %v7774_v29 = vld [vmem:[%s11172_s10 + $0xd0] sm:$0xff]  }
 0x2cf   :  { %v10286_v31 = vpop.f32.mrf.mxu0  ;;  %7134 = vmatprep.subr.bf16.mxu0 %v7766_v50  ;;  %v2819_v50 = vadd.f32 %v10234_v51, %v9992_v14  ;;  %v2815_v14 = vadd.f32 %v10223_v32, %v9977_v24 }
 0x2d0   :  { %v3444_v60 = vmax.f32 %v3388_v16, 0.0  ;;  %v10291_v41 = vpop.f32.mrf.mxu1  ;;  %v7055_v19 = vpack.c.bf16 %v3443_v48, %v3441_v25  ;;  %v2837_v48 = vadd.f32 %v2836_v42, %v10052_v37  ;;  %v7778_v37 = vld [vmem:[%s11172_s10 + $0xc8] sm:$0xff]  }
 0x2d1   :  { %v2840_v12 = vpop.f32.mrf.mxu0  ;;  %v3315_v24 = vadd.f32 %v10206_v34, %v2819_v50 }
 0x2d2   :  { %v10293_v49 = vpop.f32.mrf.mxu1  ;;  %7135 = vmatpush3.bf16.msra.mxu0 %v7768_v11  ;;  %v7056_v2 = vpack.c.bf16 %v3444_v60, %v3442_v59  ;;  %v2841_v16 = vadd.f32 %v2840_v12, %v10066_v62  ;;  %v7776_v62 = vld [vmem:[%s11172_s10 + $0x90] sm:$0xff]  }
 0x2d3   :  { %v10303_v30 = vpop.f32.mrf.mxu0  ;;  %7136 = vmatprep.subr.bf16.mxu0 %v7770_v55  ;;  %v7777_v60 = vld [vmem:[%s11172_s10 + $0x230] sm:$0xff]  }
 0x2d4   :  { %v10312_v11 = vpop.f32.mrf.mxu1  ;;  %5836 = vmatprep.mubr.bf16.mxu1 %v7056_v2  ;;  %v3324_v42 = vadd.f32 %v10239_v38, %v2841_v16  ;;  %v3313_v2 = vadd.f32 %v10204_v56, %v2815_v14  ;;  %v7781_v38 = vld [vmem:[%s11172_s10 + $0x228] sm:$0xff]  }
 0x2d5   :  { %v2846_v51 = vpop.f32.mrf.mxu0  ;;  %5837 = vmatmul.mubr.bf16.vlgmr.msra.gmra.mxu1 %v7055_v19  ;;  %v7780_v19 = vld [vmem:[%s11172_s10 + $0x88] sm:$0xff]  }
 0x2d6   :  { %v2847_v55 = vadd.f32 %v2846_v51, %v10075_v5  ;;  %v10318_v59 = vpop.f32.mrf.mxu1  ;;  %7137 = vmatpush3.bf16.msra.mxu0 %v7772_v3  ;;  %7195 = vmatpush3.bf16.msra.mxu1 %v7773_v18  ;;  %v7779_v5 = vld [vmem:[%s11172_s10 + $0x268] sm:$0xff]   ;;  %v3322_v3 = vadd.f32 %v10232_v0, %v2837_v48  ;;  %v7783_v0 = vld [vmem:[%s11172_s10 + $0x260] sm:$0xff]   ;;  %v3381_v51 = vadd.f32 %v10220_v54, %v3313_v2 }
 0x2d7   :  { %v2848_v32 = vpop.f32.mrf.mxu0  ;;  %7138 = vmatprep.subr.bf16.mxu0 %v7774_v29  ;;  %7196 = vmatprep.subr.bf16.mxu1 %v7775_v17  ;;  %v3392_v29 = vadd.f32 %v10215_v52, %v3324_v42  ;;  %v7786_v42 = vld [vmem:[%s11172_s10 + $0x1f8] sm:$0xff]  }
 0x2d8   :  { %v3326_v25 = vadd.f32 %v10253_v7, %v2847_v55  ;;  %v10335_v12 = vpop.f32.mrf.mxu1  ;;  %v3383_v7 = vadd.f32 %v10220_v54, %v3315_v24  ;;  %v3390_v55 = vadd.f32 %v10215_v52, %v3322_v3  ;;  %v7784_v24 = vld [vmem:[%s11172_s10 + $0x80] sm:$0xff]  }
 0x2d9   :  { %v2850_v34 = vpop.f32.mrf.mxu0  ;;  %v3448_v2 = vmax.f32 %v3392_v29, 0.0  ;;  %v7789_v29 = vld [vmem:[%s11172_s10 + $0x218] sm:$0xff]  }
 0x2da   :  { %v2851_v18 = vadd.f32 %v2850_v34, %v10079_v20  ;;  %v10340_v50 = vpop.f32.mrf.mxu1  ;;  %7139 = vmatpush3.bf16.msra.mxu0 %v7776_v62  ;;  %7197 = vmatpush3.bf16.msra.mxu1 %v7777_v60  ;;  %v7782_v20 = vld [vmem:[%s11172_s10 + $0xc0] sm:$0xff]   ;;  %v3394_v17 = vadd.f32 %v10215_v52, %v3326_v25  ;;  %v7787_v25 = vld [vmem:[%s11172_s10 + $0x258] sm:$0xff]  }
 0x2db   :  { %v10349_v56 = vpop.f32.mrf.mxu0  ;;  %7140 = vmatprep.subr.bf16.mxu0 %v7778_v37  ;;  %7198 = vmatprep.subr.bf16.mxu1 %v7779_v5  ;;  %v3439_v37 = vmax.f32 %v3383_v7, 0.0  ;;  %v3446_v7 = vmax.f32 %v3390_v55, 0.0 }
 0x2dc   :  { %v3328_v16 = vadd.f32 %v10265_v57, %v2851_v18  ;;  %v10360_v14 = vpop.f32.mrf.mxu1  ;;  %v7785_v57 = vld [vmem:[%s11172_s10 + $0x220] sm:$0xff]   ;;  %v3450_v34 = vmax.f32 %v3394_v17, 0.0  ;;  %v7790_v17 = vld [vmem:[%s11172_s10 + $0x1f0] sm:$0xff]  }
 0x2dd   :  { %v10363_v48 = vpop.f32.mrf.mxu0 }
 0x2de   :  { %v3396_v62 = vadd.f32 %v10215_v52, %v3328_v16  ;;  %v10367_v60 = vpop.f32.mrf.mxu1  ;;  %7141 = vmatpush3.bf16.msra.mxu0 %v7780_v19  ;;  %7199 = vmatpush3.bf16.msra.mxu1 %v7781_v38  ;;  %v3437_v19 = vmax.f32 %v3381_v51, 0.0  ;;  %v2849_v51 = vadd.f32 %v2848_v32, %v10077_v26  ;;  %v7792_v26 = vld [vmem:[%s11172_s10 + $0x1b0] sm:$0xff]  }
 0x2df   :  { %11344 = vst [vmem:[#allocation34_spill] sm:$0xff] %v10367_v60  ;;  %v10375_v5 = vpop.f32.mrf.mxu0  ;;  %7142 = vmatprep.subr.bf16.mxu0 %v7782_v20  ;;  %7200 = vmatprep.subr.bf16.mxu1 %v7783_v0  ;;  %v7788_v0 = vld [vmem:[%s11172_s10 + $0x1b8] sm:$0xff]  }
 0x2e0   :  { %v3452_v3 = vmax.f32 %v3396_v62, 0.0  ;;  %v10383_v18 = vpop.f32.mrf.mxu1  ;;  %v7053_v60 = vpack.c.bf16 %v3439_v37, %v3437_v19  ;;  %v7058_v62 = vpack.c.bf16 %v3448_v2, %v3446_v7  ;;  %v2845_v37 = vadd.f32 %v10303_v30, %v10073_v8  ;;  %v7794_v8 = vld [vmem:[%s11172_s10 + $0x1e8] sm:$0xff]  }
 0x2e1   :  { %v10385_v38 = vpop.f32.mrf.mxu0  ;;  %v7795_v2 = vld [vmem:[%s11172_s10 + $0x248] sm:$0xff]  }
 0x2e2   :  { %v10387_v16 = vpop.f32.mrf.mxu1  ;;  %7143 = vmatpush3.bf16.msra.mxu0 %v7784_v24  ;;  %7201 = vmatpush3.bf16.msra.mxu1 %v7785_v57  ;;  %v7060_v20 = vpack.c.bf16 %v3452_v3, %v3450_v34  ;;  %v7791_v24 = vld [vmem:[%s11172_s10 + $0x250] sm:$0xff]   ;;  %v3325_v19 = vadd.f32 %v10247_v43, %v2845_v37  ;;  %v7798_v43 = vld [vmem:[%s11172_s10 + $0x1e0] sm:$0xff]  }
 0x2e3   :  { %v10392_v58 = vpop.f32.mrf.mxu0  ;;  %7172 = vmatprep.subr.bf16.mxu0 %v7786_v42  ;;  %7202 = vmatprep.subr.bf16.mxu1 %v7787_v25 }
 0x2e4   :  { %v10401_v55 = vpop.f32.mrf.mxu1  ;;  %5918 = vmatprep.mubr.bf16.mxu1 %v7060_v20  ;;  %v3393_v37 = vadd.f32 %v10220_v54, %v3325_v19 }
 0x2e5   :  { %5796 = vmatmul.mubr.bf16.vlgmr.msra.gmra.mxu0 %v7053_v60  ;;  %v2866_v57 = vpop.f32.mrf.mxu0  ;;  %v7793_v60 = vld [vmem:[%s11172_s10 + $0x210] sm:$0xff]  }
 0x2e6   :  { %v2867_v42 = vadd.f32 %v2866_v57, %v10106_v47  ;;  %v10409_v25 = vpop.f32.mrf.mxu1  ;;  %7173 = vmatpush3.bf16.msra.mxu0 %v7788_v0  ;;  %5877 = vmatprep.mubr.bf16.mxu0 %v7058_v62  ;;  %v3327_v47 = vadd.f32 %v10262_v27, %v2849_v51  ;;  %v7796_v27 = vld [vmem:[%s11172_s10 + $0x1a8] sm:$0xff]   ;;  %v7799_v62 = vld [vmem:[%s11172_s10 + $0x240] sm:$0xff]  }
 0x2e7   :  { %7203 = vmatpush3.bf16.msra.mxu1 %v7789_v29  ;;  %v10414_v32 = vpop.f32.mrf.mxu0  ;;  %7174 = vmatprep.subr.bf16.mxu0 %v7790_v17  ;;  %v7797_v29 = vld [vmem:[%s11172_s10 + $0x208] sm:$0xff]  }
 0x2e8   :  { %v10423_v30 = vpop.f32.mrf.mxu1  ;;  %7204 = vmatprep.subr.bf16.mxu1 %v7791_v24  ;;  %v3334_v34 = vadd.f32 %v10318_v59, %v2867_v42 }
 0x2e9   :  { %v2870_v3 = vpop.f32.mrf.mxu0 }
 0x2ea   :  { %v2871_v7 = vadd.f32 %v2870_v3, %v10116_v28  ;;  %v10431_v20 = vpop.f32.mrf.mxu1  ;;  %7175 = vmatpush3.bf16.msra.mxu0 %v7792_v26  ;;  %v3395_v28 = vadd.f32 %v10220_v54, %v3327_v47  ;;  %v3402_v24 = vadd.f32 %v10215_v52, %v3334_v34  ;;  %v7802_v47 = vld [vmem:[%s11172_s10 + $0x1d8] sm:$0xff]  }
 0x2eb   :  { %7205 = vmatpush3.bf16.msra.mxu1 %v7793_v60  ;;  %v2874_v0 = vpop.f32.mrf.mxu0  ;;  %7176 = vmatprep.subr.bf16.mxu0 %v7794_v8  ;;  %v7801_v8 = vld [vmem:[%s11172_s10 + $0x200] sm:$0xff]  }
 0x2ec   :  { %v3336_v59 = vadd.f32 %v10340_v50, %v2871_v7  ;;  %v2875_v17 = vadd.f32 %v2874_v0, %v10118_v23  ;;  %v10445_v51 = vpop.f32.mrf.mxu1  ;;  %7206 = vmatprep.subr.bf16.mxu1 %v7795_v2  ;;  %v7800_v23 = vld [vmem:[%s11172_s10 + $0x1a0] sm:$0xff]   ;;  %v3451_v2 = vmax.f32 %v3395_v28, 0.0  ;;  %v3458_v19 = vmax.f32 %v3402_v24, 0.0  ;;  %v7804_v28 = vld [vmem:[%s11172_s10 + $0x198] sm:$0xff]  }
 0x2ed   :  { %v10451_v57 = vpop.f32.mrf.mxu0  ;;  %v2839_v0 = vadd.f32 %v10286_v31, %v10059_v10  ;;  %v7805_v10 = vld [vmem:[%s11172_s10 + $0x338] sm:$0xff]   ;;  %v2861_v24 = vadd.f32 %v10385_v38, %v10095_v63  ;;  %v2857_v63 = vadd.f32 %v10363_v48, %v10085_v61  ;;  %v7809_v61 = vld [vmem:[%s11172_s10 + $0x330] sm:$0xff]  }
 0x2ee   :  { %v3404_v42 = vadd.f32 %v10215_v52, %v3336_v59  ;;  %v10455_v26 = vpop.f32.mrf.mxu1  ;;  %7177 = vmatpush3.bf16.msra.mxu0 %v7796_v27  ;;  %v3337_v50 = vadd.f32 %v10360_v14, %v2875_v17  ;;  %v7803_v14 = vld [vmem:[%s11172_s10 + $0x378] sm:$0xff]  }
 0x2ef   :  { %7207 = vmatpush3.bf16.msra.mxu1 %v7797_v29  ;;  %v2878_v60 = vpop.f32.mrf.mxu0  ;;  %7178 = vmatprep.subr.bf16.mxu0 %v7798_v43  ;;  %v3449_v29 = vmax.f32 %v3393_v37, 0.0  ;;  %v3332_v48 = vadd.f32 %v10293_v49, %v2861_v24  ;;  %v7812_v49 = vld [vmem:[%s11172_s10 + $0x188] sm:$0xff]   ;;  %v7815_v24 = vld [vmem:[%s11172_s10 + $0x360] sm:$0xff]  }
 0x2f0   :  { %v3460_v34 = vmax.f32 %v3404_v42, 0.0  ;;  %v10467_v3 = vpop.f32.mrf.mxu1  ;;  %7208 = vmatprep.subr.bf16.mxu1 %v7799_v62  ;;  %v2879_v7 = vadd.f32 %v2878_v60, %v10128_v13  ;;  %v3405_v59 = vadd.f32 %v10220_v54, %v3337_v50  ;;  %v7807_v42 = vld [vmem:[%s11172_s10 + $0x370] sm:$0xff]  }
 0x2f1   :  { %v10473_v27 = vpop.f32.mrf.mxu0  ;;  %v7059_v31 = vpack.c.bf16 %v3451_v2, %v3449_v29  ;;  %v3330_v29 = vadd.f32 %v10281_v53, %v2857_v63  ;;  %v7814_v53 = vld [vmem:[%s11172_s10 + $0x1c0] sm:$0xff]  }
 0x2f2   :  { %v10477_v43 = vpop.f32.mrf.mxu1  ;;  %7179 = vmatpush3.bf16.msra.mxu0 %v7800_v23  ;;  %v3339_v17 = vadd.f32 %v10383_v18, %v2879_v7  ;;  %v7064_v13 = vpack.c.bf16 %v3460_v34, %v3458_v19  ;;  %v7806_v18 = vld [vmem:[%s11172_s10 + $0x1d0] sm:$0xff]   ;;  %v2835_v23 = vadd.f32 %v10270_v40, %v10042_v44  ;;  %v3461_v2 = vmax.f32 %v3405_v59, 0.0  ;;  %v7810_v40 = vld [vmem:[%s11172_s10 + $0x1c8] sm:$0xff]  }
 0x2f3   :  { %7209 = vmatpush3.bf16.msra.mxu1 %v7801_v8  ;;  %v10484_v62 = vpop.f32.mrf.mxu0  ;;  %7180 = vmatprep.subr.bf16.mxu0 %v7802_v47  ;;  %v7808_v8 = vld [vmem:[%s11172_s10 + $0x190] sm:$0xff]   ;;  %v3323_v47 = vadd.f32 %v10236_v22, %v2839_v0  ;;  %v7811_v22 = vld [vmem:[%s11172_s10 + $0x368] sm:$0xff]  }
 0x2f4   :  { %v10491_v37 = vpop.f32.mrf.mxu1  ;;  %7238 = vmatprep.subr.bf16.mxu1 %v7803_v14  ;;  %v3407_v50 = vadd.f32 %v10220_v54, %v3339_v17  ;;  %v3321_v19 = vadd.f32 %v10227_v33, %v2835_v23  ;;  %v7813_v33 = vld [vmem:[%s11172_s10 + $0x328] sm:$0xff]   ;;  %v3398_v23 = vadd.f32 %v10215_v52, %v3330_v29 }
 0x2f5   :  { %v10502_v60 = vpop.f32.mrf.mxu0  ;;  %v3391_v59 = vadd.f32 %v10220_v54, %v3323_v47 }
 0x2f6   :  { %5919 = vmatmul.mubr.bf16.vlgmr.msra.gmra.mxu1 %v7059_v31  ;;  %v10506_v38 = vpop.f32.mrf.mxu1  ;;  %7181 = vmatpush3.bf16.msra.mxu0 %v7804_v28  ;;  %v3463_v34 = vmax.f32 %v3407_v50, 0.0  ;;  %v3454_v29 = vmax.f32 %v3398_v23, 0.0  ;;  %v7823_v23 = vld [vmem:[%s11172_s10 + $0x350] sm:$0xff]  }
 0x2f7   :  { %7239 = vmatpush3.bf16.msra.mxu1 %v7805_v10  ;;  %6000 = vmatprep.mubr.bf16.mxu1 %v7064_v13  ;;  %v10512_v44 = vpop.f32.mrf.mxu0  ;;  %v3400_v10 = vadd.f32 %v10215_v52, %v3332_v48  ;;  %v3447_v63 = vmax.f32 %v3391_v59, 0.0  ;;  %v7819_v48 = vld [vmem:[%s11172_s10 + $0x358] sm:$0xff]  }
 0x2f8   :  { %v10521_v14 = vpop.f32.mrf.mxu1  ;;  %7182 = vmatprep.subr.bf16.mxu0 %v7806_v18  ;;  %7240 = vmatprep.subr.bf16.mxu1 %v7807_v42  ;;  %v10527_v7 = vpack.c.bf16 %v3463_v34, %v3461_v2  ;;  %v3389_v18 = vadd.f32 %v10220_v54, %v3321_v19  ;;  %v7817_v2 = vld [vmem:[%s11172_s10 + $0x320] sm:$0xff]   ;;  %v7818_v34 = vld [vmem:[%s11172_s10 + $0x2f8] sm:$0xff]  }
 0x2f9   :  { %v2890_v0 = vpop.f32.mrf.mxu0 }
 0x2fa   :  { %v10530_v28 = vpop.f32.mrf.mxu1  ;;  %7183 = vmatpush3.bf16.msra.mxu0 %v7808_v8 }
 0x2fb   :  { %7241 = vmatpush3.bf16.msra.mxu1 %v7809_v61  ;;  %v2894_v17 = vpop.f32.mrf.mxu0  ;;  %7184 = vmatprep.subr.bf16.mxu0 %v7810_v40  ;;  %v3456_v61 = vmax.f32 %v3400_v10, 0.0 }
 0x2fc   :  { %v2895_v13 = vadd.f32 %v2894_v17, %v10158_v15  ;;  %v10544_v31 = vpop.f32.mrf.mxu1  ;;  %7242 = vmatprep.subr.bf16.mxu1 %v7811_v22  ;;  %v7816_v15 = vld [vmem:[%s11172_s10 + $0x180] sm:$0xff]  }
 0x2fd   :  { %v10550_v42 = vpop.f32.mrf.mxu0 }
 0x2fe   :  { %v10553_v50 = vpop.f32.mrf.mxu1  ;;  %7185 = vmatpush3.bf16.msra.mxu0 %v7812_v49  ;;  %v3345_v8 = vadd.f32 %v10445_v51, %v2895_v13  ;;  %v3445_v51 = vmax.f32 %v3389_v18, 0.0  ;;  %v7820_v49 = vld [vmem:[%s11172_s10 + $0x2b8] sm:$0xff]   ;;  %v7822_v13 = vld [vmem:[%s11172_s10 + $0x2f0] sm:$0xff]  }
 0x2ff   :  { %7243 = vmatpush3.bf16.msra.mxu1 %v7813_v33  ;;  %v2898_v47 = vpop.f32.mrf.mxu0  ;;  %7186 = vmatprep.subr.bf16.mxu0 %v7814_v53 }
 0x300   :  { %v10565_v40 = vpop.f32.mrf.mxu1  ;;  %7244 = vmatprep.subr.bf16.mxu1 %v7815_v24  ;;  %v2899_v22 = vadd.f32 %v2898_v47, %v10168_v35  ;;  %v7057_v59 = vpack.c.bf16 %v3447_v63, %v3445_v51  ;;  %v3413_v17 = vadd.f32 %v10220_v54, %v3345_v8  ;;  %v7821_v35 = vld [vmem:[%s11172_s10 + $0x318] sm:$0xff]   ;;  %v2869_v24 = vadd.f32 %v10414_v32, %v10108_v21 }
 0x301   :  { %v10571_v19 = vpop.f32.mrf.mxu0  ;;  %v2865_v47 = vadd.f32 %v10392_v58, %v10098_v39  ;;  %v2887_v32 = vadd.f32 %v10502_v60, %v10146_v1  ;;  %v7825_v39 = vld [vmem:[%s11172_s10 + $0x310] sm:$0xff]   ;;  %v7826_v58 = vld [vmem:[%s11172_s10 + $0x2e8] sm:$0xff]  }
 0x302   :  { %7187 = vmatpush3.bf16.msra.mxu0 %v7816_v15  ;;  %v3347_v33 = vadd.f32 %v10467_v3, %v2899_v22  ;;  %v10578_v53 = vpop.f32.mrf.mxu1  ;;  %v7062_v3 = vpack.c.bf16 %v3456_v61, %v3454_v29  ;;  %v2891_v15 = vadd.f32 %v2890_v0, %v10156_v46  ;;  %v3469_v46 = vmax.f32 %v3413_v17, 0.0  ;;  %v7827_v1 = vld [vmem:[%s11172_s10 + $0x348] sm:$0xff]  }
 0x303   :  { %7245 = vmatpush3.bf16.msra.mxu1 %v7817_v2  ;;  %v2904_v10 = vpop.f32.mrf.mxu0  ;;  %7216 = vmatprep.subr.bf16.mxu0 %v7818_v34  ;;  %v3333_v22 = vadd.f32 %v10312_v11, %v2865_v47  ;;  %v7829_v11 = vld [vmem:[%s11172_s10 + $0x308] sm:$0xff]  }
 0x304   :  { %v2905_v18 = vadd.f32 %v2904_v10, %v10172_v36  ;;  %7246 = vmatprep.subr.bf16.mxu1 %v7819_v48  ;;  %v3415_v63 = vadd.f32 %v10220_v54, %v3347_v33  ;;  %v7824_v36 = vld [vmem:[%s11172_s10 + $0x2b0] sm:$0xff]   ;;  %v10604_v2 = vpop.f32.mrf.mxu1  ;;  %v3344_v60 = vadd.f32 %v10431_v20, %v2891_v15  ;;  %v7832_v15 = vld [vmem:[%s11172_s10 + $0x2a0] sm:$0xff]  }
 0x305   :  { %5878 = vmatmul.mubr.bf16.vlgmr.msra.gmra.mxu0 %v7057_v59  ;;  %v10594_v8 = vpop.f32.mrf.mxu0 }
 0x306   :  { %v3349_v21 = vadd.f32 %v10491_v37, %v2905_v18  ;;  %7217 = vmatpush3.bf16.msra.mxu0 %v7820_v49  ;;  %5959 = vmatprep.mubr.bf16.mxu0 %v7062_v3  ;;  %v3471_v0 = vmax.f32 %v3415_v63, 0.0  ;;  %v3335_v37 = vadd.f32 %v10335_v12, %v2869_v24  ;;  %v3342_v12 = vadd.f32 %v10409_v25, %v2887_v32  ;;  %v10629_v59 = vpop.f32.mrf.mxu1  ;;  %v7831_v25 = vld [vmem:[%s11172_s10 + $0x340] sm:$0xff]  }
 0x307   :  { %7247 = vmatpush3.bf16.msra.mxu1 %v7821_v35  ;;  %v2908_v34 = vpop.f32.mrf.mxu0  ;;  %7218 = vmatprep.subr.bf16.mxu0 %v7822_v13  ;;  %v3412_v35 = vadd.f32 %v10215_v52, %v3344_v60  ;;  %v3401_v24 = vadd.f32 %v10220_v54, %v3333_v22  ;;  %v7836_v60 = vld [vmem:[%s11172_s10 + $0x298] sm:$0xff]   ;;  %v11346_v22 = vld [vmem:[#allocation22_spill] sm:$0xff] }
 0x308   :  { %v2909_v61 = vadd.f32 %v2908_v34, %v10176_v45  ;;  %7248 = vmatprep.subr.bf16.mxu1 %v7823_v23  ;;  %v10618_v48 = vpack.c.bf16 %v3471_v0, %v3469_v46  ;;  %v3417_v29 = vadd.f32 %v10220_v54, %v3349_v21  ;;  %v7828_v45 = vld [vmem:[%s11172_s10 + $0x2a8] sm:$0xff]   ;;  %v3403_v17 = vadd.f32 %v10220_v54, %v3335_v37  ;;  %v10650_v63 = vpop.f32.mrf.mxu1  ;;  %v7835_v0 = vld [vmem:[%s11172_s10 + $0x478] sm:$0xff]  }
 0x309   :  { %v10620_v51 = vpop.f32.mrf.mxu0  ;;  %v3457_v37 = vmax.f32 %v3401_v24, 0.0 }
 0x30a   :  { %v3351_v49 = vadd.f32 %v10521_v14, %v2909_v61  ;;  %7219 = vmatpush3.bf16.msra.mxu0 %v7824_v36  ;;  %v7830_v14 = vld [vmem:[%s11172_s10 + $0x2e0] sm:$0xff]   ;;  %v3473_v18 = vmax.f32 %v3417_v29, 0.0  ;;  %v3459_v32 = vmax.f32 %v3403_v17, 0.0  ;;  %v2859_v29 = vadd.f32 %v10375_v5, %v11346_v22  ;;  %v11353_v22 = vld [vmem:[#allocation34_spill] sm:$0xff] }
 0x30b   :  { %7249 = vmatpush3.bf16.msra.mxu1 %v7825_v39  ;;  %v2914_v20 = vpop.f32.mrf.mxu0  ;;  %7220 = vmatprep.subr.bf16.mxu0 %v7826_v58  ;;  %v7833_v36 = vld [vmem:[%s11172_s10 + $0x300] sm:$0xff]  }
 0x30c   :  { %v3419_v33 = vadd.f32 %v10220_v54, %v3351_v49  ;;  %v2915_v10 = vadd.f32 %v2914_v20, %v10180_v4  ;;  %7250 = vmatprep.subr.bf16.mxu1 %v7827_v1  ;;  %v3410_v4 = vadd.f32 %v10215_v52, %v3342_v12  ;;  %v11345_v61 = vld [vmem:[#allocation12_spill] sm:$0xff]  ;;  %v7837_v20 = vld [vmem:[%s11172_s10 + $0x438] sm:$0xff]  }
 0x30d   :  { %v2916_v13 = vpop.f32.mrf.mxu0 }
 0x30e   :  { %v3475_v3 = vmax.f32 %v3419_v33, 0.0  ;;  %v2917_v23 = vadd.f32 %v2916_v13, %v10182_v9  ;;  %7221 = vmatpush3.bf16.msra.mxu0 %v7828_v45  ;;  %v3353_v47 = vadd.f32 %v10544_v31, %v2915_v10  ;;  %v7834_v9 = vld [vmem:[%s11172_s10 + $0x2d8] sm:$0xff]   ;;  %v3468_v31 = vmax.f32 %v3412_v35, 0.0  ;;  %v10672_v45 = vpop.f32.mrf.mxu1  ;;  %v11349_v35 = vld [vmem:[#allocation20_spill] sm:$0xff] }
 0x30f   :  { %7251 = vmatpush3.bf16.msra.mxu1 %v7829_v11  ;;  %v2918_v21 = vpop.f32.mrf.mxu0  ;;  %7222 = vmatprep.subr.bf16.mxu0 %v7830_v14  ;;  %v3466_v49 = vmax.f32 %v3410_v4, 0.0  ;;  %v7063_v11 = vpack.c.bf16 %v3459_v32, %v3457_v37  ;;  %v11347_v14 = vld [vmem:[#allocation9_spill] sm:$0xff]  ;;  %v11348_v33 = vld [vmem:[#allocation15_spill] sm:$0xff]  ;;  %v2855_v13 = vadd.f32 %v10349_v56, %v11349_v35  ;;  %v7840_v56 = vld [vmem:[%s11172_s10 + $0x290] sm:$0xff]  }
 0x310   :  { %v10659_v46 = vpack.c.bf16 %v3475_v3, %v3473_v18  ;;  %7252 = vmatprep.subr.bf16.mxu1 %v7831_v25  ;;  %v3354_v34 = vadd.f32 %v10553_v50, %v2917_v23  ;;  %v2919_v39 = vadd.f32 %v2918_v21, %v10184_v6  ;;  %v3421_v12 = vadd.f32 %v10220_v54, %v3353_v47  ;;  %v7839_v25 = vld [vmem:[%s11172_s10 + $0x470] sm:$0xff]   ;;  %v11350_v3 = vld [vmem:[#allocation7_spill] sm:$0xff] }
 0x311   :  { %v2920_v58 = vpop.f32.mrf.mxu0  ;;  %v2881_v17 = vadd.f32 %v10473_v27, %v11347_v14  ;;  %v2877_v23 = vadd.f32 %v10451_v57, %v11350_v3  ;;  %v3331_v47 = vadd.f32 %v10291_v41, %v2859_v29  ;;  %v7841_v57 = vld [vmem:[%s11172_s10 + $0x430] sm:$0xff]   ;;  %v7843_v41 = vld [vmem:[%s11172_s10 + $0x468] sm:$0xff]   ;;  %v7846_v14 = vld [vmem:[%s11172_s10 + $0x2c0] sm:$0xff]  }
 0x312   :  { %v2921_v1 = vadd.f32 %v2920_v58, %v11345_v61  ;;  %7223 = vmatpush3.bf16.msra.mxu0 %v7832_v15  ;;  %v3355_v50 = vadd.f32 %v10565_v40, %v2919_v39  ;;  %v7838_v40 = vld [vmem:[%s11172_s10 + $0x2d0] sm:$0xff]   ;;  %v3422_v24 = vadd.f32 %v10215_v52, %v3354_v34  ;;  %v3477_v21 = vmax.f32 %v3421_v12, 0.0  ;;  %v11352_v58 = vld [vmem:[#allocation31_spill] sm:$0xff]  ;;  %v7844_v12 = vld [vmem:[%s11172_s10 + $0x288] sm:$0xff]  }
 0x313   :  { %7253 = vmatpush3.bf16.msra.mxu1 %v7833_v36  ;;  %v2924_v6 = vpop.f32.mrf.mxu0  ;;  %7224 = vmatprep.subr.bf16.mxu0 %v7834_v9  ;;  %v3300_v36 = vpop.f32.mrf.mxu1  ;;  %v11351_v34 = vld [vmem:[#allocation18_spill] sm:$0xff]  ;;  %v3329_v37 = vadd.f32 %v11352_v58, %v2855_v13  ;;  %v3338_v29 = vadd.f32 %v11353_v22, %v2877_v23  ;;  %v7848_v23 = vld [vmem:[%s11172_s10 + $0x280] sm:$0xff]   ;;  %v11357_v58 = vld [vmem:[#allocation29_spill] sm:$0xff] }
 0x314   :  { %v3356_v5 = vadd.f32 %v10578_v53, %v2921_v1  ;;  %v2925_v10 = vadd.f32 %v2924_v6, %v11348_v33  ;;  %7282 = vmatprep.subr.bf16.mxu1 %v7835_v0  ;;  %v3423_v27 = vadd.f32 %v10220_v54, %v3355_v50  ;;  %v7068_v53 = vpack.c.bf16 %v3468_v31, %v3466_v49  ;;  %v11354_v33 = vld [vmem:[#allocation24_spill] sm:$0xff] }
 0x315   :  { %v10693_v18 = vpop.f32.mrf.mxu0  ;;  %v3340_v0 = vadd.f32 %v10387_v16, %v2881_v17  ;;  %v3478_v61 = vmax.f32 %v3422_v24, 0.0  ;;  %v3399_v50 = vadd.f32 %v10220_v54, %v3331_v47  ;;  %v3302_v6 = vpop.f32.mrf.mxu1  ;;  %v3406_v13 = vadd.f32 %v10215_v52, %v3338_v29 }
 0x316   :  { %v3424_v15 = vadd.f32 %v10215_v52, %v3356_v5  ;;  %v3357_v4 = vadd.f32 %v10604_v2, %v2925_v10  ;;  %6001 = vmatmul.mubr.bf16.vlgmr.msra.gmra.mxu1 %v7063_v11  ;;  %7225 = vmatpush3.bf16.msra.mxu0 %v7836_v60  ;;  %v3479_v9 = vmax.f32 %v3423_v27, 0.0  ;;  %v7842_v2 = vld [vmem:[%s11172_s10 + $0x2c8] sm:$0xff]  }
 0x317   :  { %7283 = vmatpush3.bf16.msra.mxu1 %v7837_v20  ;;  %6082 = vmatprep.mubr.bf16.mxu1 %v7068_v53  ;;  %v2928_v32 = vpop.f32.mrf.mxu0  ;;  %v7845_v11 = vld [vmem:[%s11172_s10 + $0x428] sm:$0xff]   ;;  %v3408_v17 = vadd.f32 %v10215_v52, %v3340_v0  ;;  %v11355_v53 = vld [vmem:[#allocation26_spill] sm:$0xff] }
 0x318   :  { %v3480_v31 = vmax.f32 %v3424_v15, 0.0  ;;  %v2929_v39 = vadd.f32 %v2928_v32, %v11351_v34  ;;  %7226 = vmatprep.subr.bf16.mxu0 %v7838_v40  ;;  %7284 = vmatprep.subr.bf16.mxu1 %v7839_v25  ;;  %v10715_v1 = vpack.c.bf16 %v3479_v9, %v3477_v21  ;;  %v3425_v16 = vadd.f32 %v10220_v54, %v3357_v4  ;;  %v7847_v40 = vld [vmem:[%s11172_s10 + $0x460] sm:$0xff]   ;;  %v3304_v4 = vpop.f32.mrf.mxu1  ;;  %v7850_v9 = vld [vmem:[%s11172_s10 + $0x3f8] sm:$0xff]  }
 0x319   :  { %v10717_v60 = vpop.f32.mrf.mxu0  ;;  %v3397_v25 = vadd.f32 %v10220_v54, %v3329_v37  ;;  %v3455_v15 = vmax.f32 %v3399_v50, 0.0  ;;  %v7849_v21 = vld [vmem:[%s11172_s10 + $0x420] sm:$0xff]   ;;  %v3464_v32 = vmax.f32 %v3408_v17, 0.0  ;;  %v7853_v50 = vld [vmem:[%s11172_s10 + $0x418] sm:$0xff]  }
 0x31a   :  { %v3359_v49 = vadd.f32 %v10650_v63, %v2929_v39  ;;  %7227 = vmatpush3.bf16.msra.mxu0 %v7840_v56  ;;  %v10732_v63 = vpack.c.bf16 %v3480_v31, %v3478_v61  ;;  %v3481_v24 = vmax.f32 %v3425_v16, 0.0  ;;  %v11356_v31 = vld [vmem:[#allocation25_spill] sm:$0xff]  ;;  %v7852_v61 = vld [vmem:[%s11172_s10 + $0x3b8] sm:$0xff]   ;;  %v3306_v29 = vpop.f32.mrf.mxu1 }
 0x31b   :  { %7285 = vmatpush3.bf16.msra.mxu1 %v7841_v57  ;;  %v2934_v20 = vpop.f32.mrf.mxu0  ;;  %7228 = vmatprep.subr.bf16.mxu0 %v7842_v2  ;;  %v3453_v0 = vmax.f32 %v3397_v25, 0.0 }
 0x31c   :  { %v3427_v5 = vadd.f32 %v10220_v54, %v3359_v49  ;;  %v2935_v10 = vadd.f32 %v2934_v20, %v11354_v33  ;;  %7286 = vmatprep.subr.bf16.mxu1 %v7843_v41  ;;  %v3462_v41 = vmax.f32 %v3406_v13, 0.0  ;;  %v11358_v20 = vld [vmem:[#allocation8_spill] sm:$0xff]  ;;  %v7855_v33 = vld [vmem:[%s11172_s10 + $0x450] sm:$0xff]   ;;  %v11360_v13 = vld [vmem:[#allocation19_spill] sm:$0xff] }
 0x31d   :  { %v2936_v35 = vpop.f32.mrf.mxu0  ;;  %v7061_v22 = vpack.c.bf16 %v3455_v15, %v3453_v0  ;;  %v7860_v0 = vld [vmem:[%s11172_s10 + $0x3a8] sm:$0xff]  }
 0x31e   :  { %v3483_v27 = vmax.f32 %v3427_v5, 0.0  ;;  %v2937_v3 = vadd.f32 %v2936_v35, %v11355_v53  ;;  %7229 = vmatpush3.bf16.msra.mxu0 %v7844_v12  ;;  %v3361_v56 = vadd.f32 %v3300_v36, %v2935_v10  ;;  %v7851_v36 = vld [vmem:[%s11172_s10 + $0x458] sm:$0xff]   ;;  %v7066_v5 = vpack.c.bf16 %v3464_v32, %v3462_v41  ;;  %v11359_v10 = vld [vmem:[#allocation13_spill] sm:$0xff] }
 0x31f   :  { %7287 = vmatpush3.bf16.msra.mxu1 %v7845_v11  ;;  %v2938_v47 = vpop.f32.mrf.mxu0  ;;  %7230 = vmatprep.subr.bf16.mxu0 %v7846_v14  ;;  %v2889_v11 = vadd.f32 %v10512_v44, %v11358_v20  ;;  %v11361_v53 = vld [vmem:[#allocation11_spill] sm:$0xff] }
 0x320   :  { %v10752_v57 = vpack.c.bf16 %v3483_v27, %v3481_v24  ;;  %v3362_v2 = vadd.f32 %v3302_v6, %v2937_v3  ;;  %7288 = vmatprep.subr.bf16.mxu1 %v7847_v40  ;;  %v2939_v34 = vadd.f32 %v2938_v47, %v11356_v31  ;;  %v3429_v16 = vadd.f32 %v10220_v54, %v3361_v56  ;;  %v7854_v6 = vld [vmem:[%s11172_s10 + $0x3f0] sm:$0xff]   ;;  %v7869_v20 = vld [vmem:[%s11172_s10 + $0x538] sm:$0xff]  }
 0x321   :  { %v2940_v39 = vpop.f32.mrf.mxu0  ;;  %v2911_v40 = vadd.f32 %v10620_v51, %v11359_v10  ;;  %v2885_v24 = vadd.f32 %v10484_v62, %v11360_v13  ;;  %v7856_v27 = vld [vmem:[%s11172_s10 + $0x3b0] sm:$0xff]   ;;  %v2907_v3 = vadd.f32 %v10594_v8, %v11361_v53  ;;  %v3343_v56 = vadd.f32 %v10423_v30, %v2889_v11  ;;  %v7859_v8 = vld [vmem:[%s11172_s10 + $0x448] sm:$0xff]  }
 0x322   :  { %v2941_v37 = vadd.f32 %v2940_v39, %v11357_v58  ;;  %7231 = vmatpush3.bf16.msra.mxu0 %v7848_v23  ;;  %v3363_v49 = vadd.f32 %v3304_v4, %v2939_v34  ;;  %v3430_v14 = vadd.f32 %v10215_v52, %v3362_v2  ;;  %v3485_v23 = vmax.f32 %v3429_v16, 0.0  ;;  %v7857_v62 = vld [vmem:[%s11172_s10 + $0x410] sm:$0xff]   ;;  %v7858_v4 = vld [vmem:[%s11172_s10 + $0x3e8] sm:$0xff]   ;;  %v7862_v34 = vld [vmem:[%s11172_s10 + $0x3e0] sm:$0xff]  }
 0x323   :  { %7289 = vmatpush3.bf16.msra.mxu1 %v7849_v21  ;;  %v10763_v12 = vpop.f32.mrf.mxu0  ;;  %7260 = vmatprep.subr.bf16.mxu0 %v7850_v9  ;;  %v3352_v9 = vadd.f32 %v10530_v28, %v2911_v40  ;;  %v3350_v31 = vadd.f32 %v10506_v38, %v2907_v3  ;;  %v7861_v28 = vld [vmem:[%s11172_s10 + $0x408] sm:$0xff]   ;;  %v7863_v39 = vld [vmem:[%s11172_s10 + $0x440] sm:$0xff]  }
 0x324   :  { %v3364_v17 = vadd.f32 %v3306_v29, %v2941_v37  ;;  %7290 = vmatprep.subr.bf16.mxu1 %v7851_v36  ;;  %v3431_v25 = vadd.f32 %v10220_v54, %v3363_v49  ;;  %v3486_v47 = vmax.f32 %v3430_v14, 0.0  ;;  %v3341_v36 = vadd.f32 %v10401_v55, %v2885_v24  ;;  %v7864_v58 = vld [vmem:[%s11172_s10 + $0x3a0] sm:$0xff]   ;;  %v11362_v14 = vld [vmem:[#allocation10_spill] sm:$0xff]  ;;  %v11363_v40 = vld [vmem:[#allocation21_spill] sm:$0xff] }
 0x325   :  { %5960 = vmatmul.mubr.bf16.vlgmr.msra.gmra.mxu0 %v7061_v22  ;;  %v7433_v35 = vpop.f32.mrf.mxu0  ;;  %v3411_v55 = vadd.f32 %v10220_v54, %v3343_v56  ;;  %v3420_v41 = vadd.f32 %v10215_v52, %v3352_v9  ;;  %v3418_v37 = vadd.f32 %v10215_v52, %v3350_v31  ;;  %v7866_v22 = vld [vmem:[%s11172_s10 + $0x3d8] sm:$0xff]   ;;  %v7874_v13 = vld [vmem:[%s11172_s10 + $0x3c8] sm:$0xff]  }
 0x326   :  { %v3432_v44 = vadd.f32 %v10215_v52, %v3364_v17  ;;  %7261 = vmatpush3.bf16.msra.mxu0 %v7852_v61  ;;  %6041 = vmatprep.mubr.bf16.mxu0 %v7066_v5  ;;  %v3487_v51 = vmax.f32 %v3431_v25, 0.0  ;;  %v3409_v38 = vadd.f32 %v10220_v54, %v3341_v36  ;;  %v7865_v61 = vld [vmem:[%s11172_s10 + $0x400] sm:$0xff]   ;;  %v7867_v54 = vld [vmem:[%s11172_s10 + $0x578] sm:$0xff]   ;;  %v2901_v17 = vadd.f32 %v10571_v19, %v11362_v14  ;;  %v7870_v5 = vld [vmem:[%s11172_s10 + $0x3d0] sm:$0xff]  }
 0x327   :  { %7291 = vmatpush3.bf16.msra.mxu1 %v7853_v50  ;;  %v10788_v15 = vpop.f32.mrf.mxu0  ;;  %7262 = vmatprep.subr.bf16.mxu0 %v7854_v6  ;;  %v3467_v29 = vmax.f32 %v3411_v55, 0.0  ;;  %v3476_v16 = vmax.f32 %v3420_v41, 0.0  ;;  %v7868_v50 = vld [vmem:[%s11172_s10 + $0x398] sm:$0xff]   ;;  %v3474_v6 = vmax.f32 %v3418_v37, 0.0  ;;  %v2897_v25 = vadd.f32 %v10550_v42, %v11363_v40  ;;  %v7872_v35 = vld [vmem:[%s11172_s10 + $0x390] sm:$0xff]   ;;  %v7875_v42 = vld [vmem:[%s11172_s10 + $0x568] sm:$0xff]  }
 0x328   :  { %v3488_v21 = vmax.f32 %v3432_v44, 0.0  ;;  %7292 = vmatprep.subr.bf16.mxu1 %v7855_v33  ;;  %v10801_v32 = vpack.c.bf16 %v3487_v51, %v3485_v23  ;;  %v3465_v49 = vmax.f32 %v3409_v38, 0.0  ;;  %v7871_v33 = vld [vmem:[%s11172_s10 + $0x570] sm:$0xff]   ;;  %v3348_v24 = vadd.f32 %v10477_v43, %v2901_v17  ;;  %v7877_v53 = vld [vmem:[%s11172_s10 + $0x528] sm:$0xff]   ;;  %v7878_v43 = vld [vmem:[%s11172_s10 + $0x3c0] sm:$0xff]  }
 0x329   :  { %v7434_v2 = vpop.f32.mrf.mxu0  ;;  %v7072_v10 = vpack.c.bf16 %v3476_v16, %v3474_v6  ;;  %v7873_v19 = vld [vmem:[%s11172_s10 + $0x530] sm:$0xff]   ;;  %v3346_v44 = vadd.f32 %v10455_v26, %v2897_v25  ;;  %v7879_v26 = vld [vmem:[%s11172_s10 + $0x560] sm:$0xff]   ;;  %v7885_v9 = vld [vmem:[%s11172_s10 + $0x518] sm:$0xff]  }
 0x32a   :  { %7263 = vmatpush3.bf16.msra.mxu0 %v7856_v27  ;;  %v10807_v30 = vpack.c.bf16 %v3488_v21, %v3486_v47  ;;  %v7067_v11 = vpack.c.bf16 %v3467_v29, %v3465_v49  ;;  %v7876_v27 = vld [vmem:[%s11172_s10 + $0x388] sm:$0xff]   ;;  %v3416_v3 = vadd.f32 %v10215_v52, %v3348_v24  ;;  %v7880_v51 = vld [vmem:[%s11172_s10 + $0x380] sm:$0xff]   ;;  %v7883_v47 = vld [vmem:[%s11172_s10 + $0x558] sm:$0xff]  }
 0x32b   :  { %7293 = vmatpush3.bf16.msra.mxu1 %v7857_v62  ;;  %7264 = vmatprep.subr.bf16.mxu0 %v7858_v4  ;;  %v3414_v23 = vadd.f32 %v10215_v52, %v3346_v44  ;;  %v7881_v62 = vld [vmem:[%s11172_s10 + $0x520] sm:$0xff]   ;;  %v7882_v4 = vld [vmem:[%s11172_s10 + $0x4f8] sm:$0xff]   ;;  %v7886_v2 = vld [vmem:[%s11172_s10 + $0x4f0] sm:$0xff]  }
 0x32c   :  { %7294 = vmatprep.subr.bf16.mxu1 %v7859_v8  ;;  %v3472_v56 = vmax.f32 %v3416_v3, 0.0  ;;  %v7884_v8 = vld [vmem:[%s11172_s10 + $0x4b8] sm:$0xff]   ;;  %v11364_v31 = vld [vmem:[#allocation17_spill] sm:$0xff]  ;;  %v11365_v55 = vld [vmem:[#allocation16_spill] sm:$0xff] }
 0x32d   :  { %v3470_v21 = vmax.f32 %v3414_v23, 0.0  ;;  %v7889_v41 = vld [vmem:[%s11172_s10 + $0x510] sm:$0xff]   ;;  %v7893_v37 = vld [vmem:[%s11172_s10 + $0x508] sm:$0xff]   ;;  %v7898_v16 = vld [vmem:[%s11172_s10 + $0x4d8] sm:$0xff]  }
 0x32e   :  { %7265 = vmatpush3.bf16.msra.mxu0 %v7860_v0  ;;  %v7887_v0 = vld [vmem:[%s11172_s10 + $0x550] sm:$0xff]   ;;  %v7899_v49 = vld [vmem:[%s11172_s10 + $0x678] sm:$0xff]   ;;  %v7908_v40 = vld [vmem:[%s11172_s10 + $0x488] sm:$0xff]  }
 0x32f   :  { %7295 = vmatpush3.bf16.msra.mxu1 %v7861_v28  ;;  %7266 = vmatprep.subr.bf16.mxu0 %v7862_v34  ;;  %v7070_v36 = vpack.c.bf16 %v3472_v56, %v3470_v21  ;;  %v2931_v28 = vadd.f32 %v10717_v60, %v11364_v31  ;;  %v7888_v34 = vld [vmem:[%s11172_s10 + $0x4b0] sm:$0xff]   ;;  %v7890_v60 = vld [vmem:[%s11172_s10 + $0x4e8] sm:$0xff]   ;;  %v7913_v24 = vld [vmem:[%s11172_s10 + $0x620] sm:$0xff]  }
 0x330   :  { %7296 = vmatprep.subr.bf16.mxu1 %v7863_v39  ;;  %v2927_v39 = vadd.f32 %v10693_v18, %v11365_v55  ;;  %v7892_v18 = vld [vmem:[%s11172_s10 + $0x4a8] sm:$0xff]   ;;  %v7903_v14 = vld [vmem:[%s11172_s10 + $0x670] sm:$0xff]   ;;  %v7915_v44 = vld [vmem:[%s11172_s10 + $0x658] sm:$0xff]  }
 0x331   :  { %v3360_v38 = vadd.f32 %v10672_v45, %v2931_v28  ;;  %v7895_v45 = vld [vmem:[%s11172_s10 + $0x540] sm:$0xff]   ;;  %v7909_v25 = vld [vmem:[%s11172_s10 + $0x628] sm:$0xff]   ;;  %v7919_v3 = vld [vmem:[%s11172_s10 + $0x650] sm:$0xff]  }
 0x332   :  { %7267 = vmatpush3.bf16.msra.mxu0 %v7864_v58  ;;  %v3358_v58 = vadd.f32 %v10629_v59, %v2927_v39  ;;  %v7896_v59 = vld [vmem:[%s11172_s10 + $0x4a0] sm:$0xff]   ;;  %v7921_v23 = vld [vmem:[%s11172_s10 + $0x610] sm:$0xff]   ;;  %v7934_v31 = vld [vmem:[%s11172_s10 + $0x5c8] sm:$0xff]  }
 0x333   :  { %7297 = vmatpush3.bf16.msra.mxu1 %v7865_v61  ;;  %7268 = vmatprep.subr.bf16.mxu0 %v7866_v22  ;;  %v7894_v61 = vld [vmem:[%s11172_s10 + $0x4e0] sm:$0xff]   ;;  %v3428_v22 = vadd.f32 %v10215_v52, %v3360_v38  ;;  %v7935_v28 = vld [vmem:[%s11172_s10 + $0x588] sm:$0xff]   ;;  %v7938_v55 = vld [vmem:[%s11172_s10 + $0x6f8] sm:$0xff]  }
 0x334   :  { %7326 = vmatprep.subr.bf16.mxu1 %v7867_v54  ;;  %v3426_v29 = vadd.f32 %v10215_v52, %v3358_v58  ;;  %v7897_v54 = vld [vmem:[%s11172_s10 + $0x500] sm:$0xff]   ;;  %v7900_v52 = vld [vmem:[%s11172_s10 + $0x498] sm:$0xff]   ;;  %v7943_v38 = vld [vmem:[%s11172_s10 + $0x6a8] sm:$0xff]  }
 0x335   :  { %v7927_v56 = vld [vmem:[%s11172_s10 + $0x640] sm:$0xff]   ;;  %v7939_v39 = vld [vmem:[%s11172_s10 + $0x6b8] sm:$0xff]  }
 0x336   :  { %6083 = vmatmul.mubr.bf16.vlgmr.msra.gmra.mxu1 %v7067_v11  ;;  %7269 = vmatpush3.bf16.msra.mxu0 %v7868_v50  ;;  %v3484_v50 = vmax.f32 %v3428_v22, 0.0  ;;  %v3482_v6 = vmax.f32 %v3426_v29, 0.0  ;;  %v7902_v11 = vld [vmem:[%s11172_s10 + $0x4d0] sm:$0xff]   ;;  %v7929_v21 = vld [vmem:[%s11172_s10 + $0x600] sm:$0xff]   ;;  %v7947_v58 = vld [vmem:[%s11172_s10 + $0x698] sm:$0xff]  }
 0x337   :  { %7327 = vmatpush3.bf16.msra.mxu1 %v7869_v20  ;;  %6164 = vmatprep.mubr.bf16.mxu1 %v7072_v10  ;;  %v7901_v20 = vld [vmem:[%s11172_s10 + $0x638] sm:$0xff]   ;;  %v7906_v10 = vld [vmem:[%s11172_s10 + $0x4c8] sm:$0xff]   ;;  %v7953_v29 = vld [vmem:[%s11172_s10 + $0x680] sm:$0xff]  }
 0x338   :  { %7270 = vmatprep.subr.bf16.mxu0 %v7870_v5  ;;  %7328 = vmatprep.subr.bf16.mxu1 %v7871_v33  ;;  %v7076_v17 = vpack.c.bf16 %v3484_v50, %v3482_v6  ;;  %v7904_v5 = vld [vmem:[%s11172_s10 + $0x490] sm:$0xff]   ;;  %v7951_v22 = vld [vmem:[%s11172_s10 + $0x688] sm:$0xff]   ;;  %v7958_v50 = vld [vmem:[%s11174_s12 + $0x18] sm:$0xff]  }
 0x339   :  { %v7905_v33 = vld [vmem:[%s11172_s10 + $0x630] sm:$0xff]   ;;  %v7960_v6 = vld [vmem:[%s11174_s12 + $0x8] sm:$0xff]  }
 0x33a   :  { %7271 = vmatpush3.bf16.msra.mxu0 %v7872_v35  ;;  %v7910_v35 = vld [vmem:[%s11172_s10 + $0x4c0] sm:$0xff]  }
 0x33b   :  { %7329 = vmatpush3.bf16.msra.mxu1 %v7873_v19  ;;  %7272 = vmatprep.subr.bf16.mxu0 %v7874_v13  ;;  %v7911_v19 = vld [vmem:[%s11172_s10 + $0x660] sm:$0xff]  }
 0x33c   :  { %7330 = vmatprep.subr.bf16.mxu1 %v7875_v42  ;;  %v7912_v13 = vld [vmem:[%s11172_s10 + $0x480] sm:$0xff]   ;;  %v7914_v42 = vld [vmem:[%s11172_s10 + $0x5f8] sm:$0xff]  }
 0x33e   :  { %7273 = vmatpush3.bf16.msra.mxu0 %v7876_v27  ;;  %v7916_v27 = vld [vmem:[%s11172_s10 + $0x5b8] sm:$0xff]  }
 0x33f   :  { %7331 = vmatpush3.bf16.msra.mxu1 %v7877_v53  ;;  %7274 = vmatprep.subr.bf16.mxu0 %v7878_v43  ;;  %v7917_v53 = vld [vmem:[%s11172_s10 + $0x618] sm:$0xff]   ;;  %v7918_v43 = vld [vmem:[%s11172_s10 + $0x5f0] sm:$0xff]  }
 0x340   :  { %7332 = vmatprep.subr.bf16.mxu1 %v7879_v26  ;;  %v7920_v26 = vld [vmem:[%s11172_s10 + $0x5b0] sm:$0xff]  }
 0x342   :  { %7275 = vmatpush3.bf16.msra.mxu0 %v7880_v51  ;;  %v7922_v51 = vld [vmem:[%s11172_s10 + $0x5e8] sm:$0xff]  }
 0x343   :  { %7333 = vmatpush3.bf16.msra.mxu1 %v7881_v62  ;;  %7304 = vmatprep.subr.bf16.mxu0 %v7882_v4  ;;  %v7925_v62 = vld [vmem:[%s11172_s10 + $0x608] sm:$0xff]   ;;  %v7926_v4 = vld [vmem:[%s11172_s10 + $0x5e0] sm:$0xff]  }
 0x344   :  { %7334 = vmatprep.subr.bf16.mxu1 %v7883_v47  ;;  %v7928_v47 = vld [vmem:[%s11172_s10 + $0x5a0] sm:$0xff]  }
 0x345   :  { %6042 = vmatmul.mubr.bf16.vlgmr.msra.gmra.mxu0 %v10527_v7  ;;  %v7891_v7 = vld [vmem:[%s11172_s10 + $0x548] sm:$0xff]  }
 0x346   :  { %7305 = vmatpush3.bf16.msra.mxu0 %v7884_v8  ;;  %6123 = vmatprep.mubr.bf16.mxu0 %v7070_v36  ;;  %v7930_v8 = vld [vmem:[%s11172_s10 + $0x5d8] sm:$0xff]   ;;  %v11366_v36 = vmov 0.0  }
 0x347   :  { %7335 = vmatpush3.bf16.msra.mxu1 %v7885_v9  ;;  %7306 = vmatprep.subr.bf16.mxu0 %v7886_v2  ;;  %v7931_v9 = vld [vmem:[%s11172_s10 + $0x598] sm:$0xff]   ;;  %v7932_v2 = vld [vmem:[%s11172_s10 + $0x5d0] sm:$0xff]  }
 0x348   :  { %7336 = vmatprep.subr.bf16.mxu1 %v7887_v0  ;;  %v7933_v0 = vld [vmem:[%s11172_s10 + $0x590] sm:$0xff]  }
 0x34a   :  { %7307 = vmatpush3.bf16.msra.mxu0 %v7888_v34  ;;  %v7937_v34 = vld [vmem:[%s11172_s10 + $0x580] sm:$0xff]  }
 0x34b   :  { %7337 = vmatpush3.bf16.msra.mxu1 %v7889_v41  ;;  %7308 = vmatprep.subr.bf16.mxu0 %v7890_v60  ;;  %v7940_v41 = vld [vmem:[%s11172_s10 + $0x6f0] sm:$0xff]  }
 0x34c   :  { %7338 = vmatprep.subr.bf16.mxu1 %v7891_v7  ;;  %v7941_v60 = vld [vmem:[%s11172_s10 + $0x6b0] sm:$0xff]   ;;  %v7942_v7 = vld [vmem:[%s11172_s10 + $0x6e8] sm:$0xff]  }
 0x34e   :  { %7309 = vmatpush3.bf16.msra.mxu0 %v7892_v18  ;;  %v7946_v18 = vld [vmem:[%s11172_s10 + $0x6d8] sm:$0xff]  }
 0x34f   :  { %7339 = vmatpush3.bf16.msra.mxu1 %v7893_v37  ;;  %7310 = vmatprep.subr.bf16.mxu0 %v7894_v61  ;;  %v7948_v37 = vld [vmem:[%s11172_s10 + $0x6d0] sm:$0xff]  }
 0x350   :  { %7340 = vmatprep.subr.bf16.mxu1 %v7895_v45  ;;  %v7949_v61 = vld [vmem:[%s11172_s10 + $0x690] sm:$0xff]   ;;  %v7950_v45 = vld [vmem:[%s11172_s10 + $0x6c8] sm:$0xff]  }
 0x352   :  { %7311 = vmatpush3.bf16.msra.mxu0 %v7896_v59  ;;  %v7952_v59 = vld [vmem:[%s11172_s10 + $0x6c0] sm:$0xff]  }
 0x353   :  { %7341 = vmatpush3.bf16.msra.mxu1 %v7897_v54  ;;  %7312 = vmatprep.subr.bf16.mxu0 %v7898_v16  ;;  %v7954_v54 = vld [vmem:[%s11174_s12 + $0x38] sm:$0xff]   ;;  %v7955_v16 = vld [vmem:[%s11174_s12 + $0x30] sm:$0xff]  }
 0x354   :  { %7370 = vmatprep.subr.bf16.mxu1 %v7899_v49  ;;  %v7956_v49 = vld [vmem:[%s11174_s12 + $0x28] sm:$0xff]  }
 0x356   :  { %6165 = vmatmul.mubr.bf16.vlgmr.msra.gmra.mxu1 %v10659_v46  ;;  %7313 = vmatpush3.bf16.msra.mxu0 %v7900_v52  ;;  %v7907_v46 = vld [vmem:[%s11172_s10 + $0x668] sm:$0xff]   ;;  %v7959_v52 = vld [vmem:[%s11174_s12 + $0x10] sm:$0xff]  }
 0x357   :  { %7371 = vmatpush3.bf16.msra.mxu1 %v7901_v20  ;;  %6246 = vmatprep.mubr.bf16.mxu1 %v7076_v17  ;;  %v7961_v20 = vld [vmem:[%s11174_s12] sm:$0xff]  }
 0x358   :  { %7314 = vmatprep.subr.bf16.mxu0 %v7902_v11  ;;  %7372 = vmatprep.subr.bf16.mxu1 %v7903_v14 }
 0x35a   :  { %7315 = vmatpush3.bf16.msra.mxu0 %v7904_v5 }
 0x35b   :  { %7373 = vmatpush3.bf16.msra.mxu1 %v7905_v33  ;;  %7316 = vmatprep.subr.bf16.mxu0 %v7906_v10 }
 0x35c   :  { %7374 = vmatprep.subr.bf16.mxu1 %v7907_v46 }
 0x35e   :  { %7317 = vmatpush3.bf16.msra.mxu0 %v7908_v40 }
 0x35f   :  { %7375 = vmatpush3.bf16.msra.mxu1 %v7909_v25  ;;  %7318 = vmatprep.subr.bf16.mxu0 %v7910_v35 }
 0x360   :  { %7376 = vmatprep.subr.bf16.mxu1 %v7911_v19 }
 0x362   :  { %7319 = vmatpush3.bf16.msra.mxu0 %v7912_v13 }
 0x363   :  { %7377 = vmatpush3.bf16.msra.mxu1 %v7913_v24  ;;  %7348 = vmatprep.subr.bf16.mxu0 %v7914_v42 }
 0x364   :  { %7378 = vmatprep.subr.bf16.mxu1 %v7915_v44 }
 0x365   :  { %6124 = vmatmul.mubr.bf16.vlgmr.msra.gmra.mxu0 %v10618_v48  ;;  %v7923_v48 = vld [vmem:[%s11172_s10 + $0x648] sm:$0xff]  }
 0x366   :  { %7349 = vmatpush3.bf16.msra.mxu0 %v7916_v27  ;;  %6205 = vmatprep.mubr.bf16.mxu0 %v10732_v63  ;;  %v7924_v63 = vld [vmem:[%s11172_s10 + $0x5a8] sm:$0xff]  }
 0x367   :  { %7379 = vmatpush3.bf16.msra.mxu1 %v7917_v53  ;;  %7350 = vmatprep.subr.bf16.mxu0 %v7918_v43 }
 0x368   :  { %7380 = vmatprep.subr.bf16.mxu1 %v7919_v3 }
 0x36a   :  { %7351 = vmatpush3.bf16.msra.mxu0 %v7920_v26 }
 0x36b   :  { %7381 = vmatpush3.bf16.msra.mxu1 %v7921_v23  ;;  %7352 = vmatprep.subr.bf16.mxu0 %v7922_v51 }
 0x36c   :  { %7382 = vmatprep.subr.bf16.mxu1 %v7923_v48 }
 0x36e   :  { %7353 = vmatpush3.bf16.msra.mxu0 %v7924_v63 }
 0x36f   :  { %7383 = vmatpush3.bf16.msra.mxu1 %v7925_v62  ;;  %7354 = vmatprep.subr.bf16.mxu0 %v7926_v4 }
 0x370   :  { %7384 = vmatprep.subr.bf16.mxu1 %v7927_v56 }
 0x372   :  { %7355 = vmatpush3.bf16.msra.mxu0 %v7928_v47 }
 0x373   :  { %7385 = vmatpush3.bf16.msra.mxu1 %v7929_v21  ;;  %7356 = vmatprep.subr.bf16.mxu0 %v7930_v8 }
 0x374   :  { %7435 = vmatprep.subr.bf16.mxu1 %v11366_v36 }
 0x376   :  { %6247 = vmatmul.mubr.bf16.vlgmr.msra.gmra.mxu1 %v10752_v57  ;;  %7357 = vmatpush3.bf16.msra.mxu0 %v7931_v9  ;;  %v7936_v57 = vld [vmem:[%s11172_s10 + $0x5c0] sm:$0xff]  }
 0x377   :  { %7358 = vmatprep.subr.bf16.mxu0 %v7932_v2  ;;  %7451 = vmatprep.mubr.msk.bf16.mxu1 %vm8011_vm0, %v11366_v36 }
 0x378   :  { %7436 = vmatpush3.bf16.msra.mxu1 %v7954_v54 }
 0x379   :  { %7437 = vmatprep.subr.bf16.mxu1 %v11366_v36 }
 0x37a   :  { %7359 = vmatpush3.bf16.msra.mxu0 %v7933_v0 }
 0x37b   :  { %7360 = vmatprep.subr.bf16.mxu0 %v7934_v31 }
 0x37c   :  { %7438 = vmatpush3.bf16.msra.mxu1 %v7955_v16 }
 0x37d   :  { %7439 = vmatprep.subr.bf16.mxu1 %v11366_v36 }
 0x37e   :  { %7361 = vmatpush3.bf16.msra.mxu0 %v7935_v28 }
 0x37f   :  { %7362 = vmatprep.subr.bf16.mxu0 %v7936_v57 }
 0x380   :  { %7440 = vmatpush3.bf16.msra.mxu1 %v7956_v49 }
 0x381   :  { %7441 = vmatprep.subr.bf16.mxu1 %v11366_v36 }
 0x382   :  { %7363 = vmatpush3.bf16.msra.mxu0 %v7937_v34 }
 0x383   :  { %7392 = vmatprep.subr.bf16.mxu0 %v7938_v55 }
 0x385   :  { %6206 = vmatmul.mubr.bf16.vlgmr.msra.gmra.mxu0 %v10715_v1  ;;  %v7944_v1 = vld [vmem:[%s11172_s10 + $0x6e0] sm:$0xff]   ;;  %v7122_v11 = vpop.f32.mrf.mxu0 }
 0x386   :  { %7393 = vmatpush3.bf16.msra.mxu0 %v7939_v39  ;;  %6287 = vmatprep.mubr.bf16.mxu0 %v10807_v30  ;;  %v7945_v30 = vld [vmem:[%s11172_s10 + $0x6a0] sm:$0xff]  }
 0x387   :  { %7394 = vmatprep.subr.bf16.mxu0 %v7940_v41  ;;  %v7123_v14 = vpop.f32.mrf.mxu0 }
 0x388   :  { %v7124_v2 = vadd.f32 %v7123_v14, %v7122_v11 }
 0x389   :  { %v7125_v17 = vpop.f32.mrf.mxu0 }
 0x38a   :  { %7395 = vmatpush3.bf16.msra.mxu0 %v7941_v60  ;;  %v5757_v28 = vadd.f32 %v7124_v2, %v10763_v12 }
 0x38b   :  { %7396 = vmatprep.subr.bf16.mxu0 %v7942_v7  ;;  %v7126_v5 = vpop.f32.mrf.mxu0 }
 0x38c   :  { %v7127_v57 = vadd.f32 %v7126_v5, %v7125_v17 }
 0x38e   :  { %7397 = vmatpush3.bf16.msra.mxu0 %v7943_v38  ;;  %v5760_v7 = vadd.f32 %v7127_v57, %v10788_v15 }
 0x38f   :  { %7398 = vmatprep.subr.bf16.mxu0 %v7944_v1 }
 0x392   :  { %7399 = vmatpush3.bf16.msra.mxu0 %v7945_v30 }
 0x393   :  { %7400 = vmatprep.subr.bf16.mxu0 %v7946_v18 }
 0x395   :  { %v7166_v46 = vpop.f32.mrf.mxu1 }
 0x396   :  { %7401 = vmatpush3.bf16.msra.mxu0 %v7947_v58 }
 0x397   :  { %7402 = vmatprep.subr.bf16.mxu0 %v7948_v37  ;;  %v7167_v25 = vpop.f32.mrf.mxu1 }
 0x398   :  { %v7168_v38 = vadd.f32 %v7167_v25, %v7166_v46 }
 0x399   :  { %v7169_v19 = vpop.f32.mrf.mxu1 }
 0x39a   :  { %7403 = vmatpush3.bf16.msra.mxu0 %v7949_v61 }
 0x39b   :  { %7404 = vmatprep.subr.bf16.mxu0 %v7950_v45  ;;  %v7170_v24 = vpop.f32.mrf.mxu1 }
 0x39c   :  { %v7171_v61 = vadd.f32 %v7170_v24, %v7169_v19 }
 0x39e   :  { %7405 = vmatpush3.bf16.msra.mxu0 %v7951_v22 }
 0x39f   :  { %7406 = vmatprep.subr.bf16.mxu0 %v7952_v59 }
 0x3a2   :  { %7407 = vmatpush3.bf16.msra.mxu0 %v7953_v29 }
 0x3a5   :  { %6288 = vmatmul.mubr.bf16.vlgmr.msra.gmra.mxu0 %v10801_v32  ;;  %v7957_v32 = vld [vmem:[%s11174_s12 + $0x20] sm:$0xff]   ;;  %v7144_v33 = vpop.f32.mrf.mxu0 }
 0x3a6   :  { %7442 = vmatpush3.bf16.msra.mxu1 %v7957_v32 }
 0x3a7   :  { %7443 = vmatprep.subr.bf16.mxu1 %v11366_v36  ;;  %v7145_v10 = vpop.f32.mrf.mxu0 }
 0x3a8   :  { %v7146_v0 = vadd.f32 %v7145_v10, %v7144_v33 }
 0x3a9   :  { %v7147_v40 = vpop.f32.mrf.mxu0 }
 0x3aa   :  { %7444 = vmatpush3.bf16.msra.mxu1 %v7958_v50  ;;  %v5798_v55 = vadd.f32 %v7146_v0, %v5757_v28 }
 0x3ab   :  { %7445 = vmatprep.subr.bf16.mxu1 %v11366_v36  ;;  %v7148_v35 = vpop.f32.mrf.mxu0 }
 0x3ac   :  { %v7149_v39 = vadd.f32 %v7148_v35, %v7147_v40  ;;  %v5839_v18 = vadd.f32 %v7168_v38, %v5798_v55 }
 0x3ae   :  { %7446 = vmatpush3.bf16.msra.mxu1 %v7959_v52  ;;  %v5801_v30 = vadd.f32 %v7149_v39, %v5760_v7 }
 0x3af   :  { %7447 = vmatprep.subr.bf16.mxu1 %v11366_v36 }
 0x3b0   :  { %v5842_v12 = vadd.f32 %v7171_v61, %v5801_v30 }
 0x3b2   :  { %7448 = vmatpush3.bf16.msra.mxu1 %v7960_v6 }
 0x3b3   :  { %7449 = vmatprep.subr.bf16.mxu1 %v11366_v36 }
 0x3b6   :  { %7450 = vmatpush3.bf16.msra.mxu1 %v7961_v20  ;;  %v7210_v44 = vpop.f32.mrf.mxu1 }
 0x3b8   :  { %v7211_v53 = vpop.f32.mrf.mxu1 }
 0x3b9   :  { %v7212_v29 = vadd.f32 %v7211_v53, %v7210_v44 }
 0x3ba   :  { %v7213_v3 = vpop.f32.mrf.mxu1 }
 0x3bc   :  { %v7214_v23 = vpop.f32.mrf.mxu1 }
 0x3bd   :  { %v7215_v52 = vadd.f32 %v7214_v23, %v7213_v3 }
 0x3c5   :  { %v7188_v13 = vpop.f32.mrf.mxu0 }
 0x3c7   :  { %v7189_v42 = vpop.f32.mrf.mxu0 }
 0x3c8   :  { %v7190_v1 = vadd.f32 %v7189_v42, %v7188_v13 }
 0x3c9   :  { %v7191_v27 = vpop.f32.mrf.mxu0 }
 0x3ca   :  { %v5880_v45 = vadd.f32 %v7190_v1, %v5839_v18  ;;  %v7013_v1 = vld [vmem:[%s11173_s11] ss:$0 sm:$0xff]  ;;  %s6428_s11 = sshll.u32 %s8012_s29, 4  ;;  %s6429_s11 = int_to_ptr.vmem [resolvable:$true] %s6428_s11 }
 0x3cb   :  { %v7192_v43 = vpop.f32.mrf.mxu0  ;;  %s7987_s30 = scalar_lea.vmem %s6429_s11, 256  ;;  %p7992_p1 = scmp.lt.s32.totalorder %s6429_s11, %s6429_s11 }
 0x3cc   :  { %v7193_v22 = vadd.f32 %v7192_v43, %v7191_v27  ;;  %v5921_v32 = vadd.f32 %v7212_v29, %v5880_v45  ;;  %p7988_p0 = scmp.ne.s32.totalorder %s6429_s11, %s7987_s30  ;;  %p7993_p2 = scmp.lt.s32.totalorder %s7987_s30, %s7987_s30 }
 0x3ce   :  { %v5883_v49 = vadd.f32 %v7193_v22, %v5842_v12  ;;  %v7014_v12 = vld [vmem:[%s11175_s13] ss:$0 sm:$0xff]  ;;  %p7994_p3 = por %p7993_p2, %p7992_p1 }
 0x3d0   :  { %v5924_v14 = vadd.f32 %v7215_v52, %v5883_v49  ;;  %p7995_p4 = pnand %p7994_p3, %p7988_p0 }
 0x3d6   :  { %v7254_v48 = vpop.f32.mrf.mxu1 }
 0x3d8   :  { %v7255_v62 = vpop.f32.mrf.mxu1 }
 0x3d9   :  { %v7256_v11 = vadd.f32 %v7255_v62, %v7254_v48 }
 0x3da   :  { %v7257_v56 = vpop.f32.mrf.mxu1 }
 0x3dc   :  { %v7258_v21 = vpop.f32.mrf.mxu1 }
 0x3dd   :  { %v7259_v40 = vadd.f32 %v7258_v21, %v7257_v56 }
 0x3e5   :  { %v7232_v26 = vpop.f32.mrf.mxu0 }
 0x3e7   :  { %v7233_v51 = vpop.f32.mrf.mxu0 }
 0x3e8   :  { %v7234_v54 = vadd.f32 %v7233_v51, %v7232_v26 }
 0x3e9   :  { %v7235_v63 = vpop.f32.mrf.mxu0 }
 0x3ea   :  { %v5962_v6 = vadd.f32 %v7234_v54, %v5921_v32 }
 0x3eb   :  { %v7236_v4 = vpop.f32.mrf.mxu0 }
 0x3ec   :  { %v7237_v15 = vadd.f32 %v7236_v4, %v7235_v63  ;;  %v6003_v46 = vadd.f32 %v7256_v11, %v5962_v6 }
 0x3ee   :  { %v5965_v10 = vadd.f32 %v7237_v15, %v5924_v14 }
 0x3f0   :  { %v6006_v42 = vadd.f32 %v7259_v40, %v5965_v10 }
 0x3f6   :  { %v7298_v9 = vpop.f32.mrf.mxu1 }
 0x3f8   :  { %v7299_v31 = vpop.f32.mrf.mxu1 }
 0x3f9   :  { %v7300_v24 = vadd.f32 %v7299_v31, %v7298_v9 }
 0x3fa   :  { %v7301_v41 = vpop.f32.mrf.mxu1 }
 0x3fc   :  { %v7302_v58 = vpop.f32.mrf.mxu1 }
 0x3fd   :  { %v7303_v26 = vadd.f32 %v7302_v58, %v7301_v41 }
 0x405   :  { %v7276_v47 = vpop.f32.mrf.mxu0 }
 0x407   :  { %v7277_v8 = vpop.f32.mrf.mxu0 }
 0x408   :  { %v7278_v17 = vadd.f32 %v7277_v8, %v7276_v47 }
 0x409   :  { %v7279_v36 = vpop.f32.mrf.mxu0 }
 0x40a   :  { %v6044_v25 = vadd.f32 %v7278_v17, %v6003_v46 }
 0x40b   :  { %v7280_v34 = vpop.f32.mrf.mxu0 }
 0x40c   :  { %v7281_v35 = vadd.f32 %v7280_v34, %v7279_v36  ;;  %v6085_v43 = vadd.f32 %v7300_v24, %v6044_v25 }
 0x40e   :  { %v6047_v53 = vadd.f32 %v7281_v35, %v6006_v42 }
 0x410   :  { %v6088_v62 = vadd.f32 %v7303_v26, %v6047_v53 }
 0x416   :  { %v7342_v59 = vpop.f32.mrf.mxu1 }
 0x418   :  { %v7343_v50 = vpop.f32.mrf.mxu1 }
 0x419   :  { %v7344_v63 = vadd.f32 %v7343_v50, %v7342_v59 }
 0x41a   :  { %v7345_v5 = vpop.f32.mrf.mxu1 }
 0x41c   :  { %v7346_v19 = vpop.f32.mrf.mxu1 }
 0x41d   :  { %v7347_v2 = vadd.f32 %v7346_v19, %v7345_v5 }
 0x425   :  { %v7320_v60 = vpop.f32.mrf.mxu0 }
 0x427   :  { %v7321_v37 = vpop.f32.mrf.mxu0 }
 0x428   :  { %v7322_v44 = vadd.f32 %v7321_v37, %v7320_v60 }
 0x429   :  { %v7323_v16 = vpop.f32.mrf.mxu0 }
 0x42a   :  { %v6126_v23 = vadd.f32 %v7322_v44, %v6085_v43 }
 0x42b   :  { %v7324_v20 = vpop.f32.mrf.mxu0 }
 0x42c   :  { %v7325_v51 = vadd.f32 %v7324_v20, %v7323_v16  ;;  %v6167_v21 = vadd.f32 %v7344_v63, %v6126_v23 }
 0x42e   :  { %v6129_v56 = vadd.f32 %v7325_v51, %v6088_v62 }
 0x430   :  { %v6170_v28 = vadd.f32 %v7347_v2, %v6129_v56 }
 0x436   :  { %v7386_v27 = vpop.f32.mrf.mxu1 }
 0x438   :  { %v7387_v48 = vpop.f32.mrf.mxu1 }
 0x439   :  { %v7388_v31 = vadd.f32 %v7387_v48, %v7386_v27 }
 0x43a   :  { %v7389_v8 = vpop.f32.mrf.mxu1 }
 0x43c   :  { %v7390_v57 = vpop.f32.mrf.mxu1 }
 0x43d   :  { %v7391_v7 = vadd.f32 %v7390_v57, %v7389_v8 }
 0x445   :  { %v7364_v33 = vpop.f32.mrf.mxu0 }
 0x447   :  { %v7365_v13 = vpop.f32.mrf.mxu0 }
 0x448   :  { %v7366_v4 = vadd.f32 %v7365_v13, %v7364_v33 }
 0x449   :  { %v7367_v3 = vpop.f32.mrf.mxu0 }
 0x44a   :  { %v6208_v36 = vadd.f32 %v7366_v4, %v6167_v21 }
 0x44b   :  { %v7368_v47 = vpop.f32.mrf.mxu0 }
 0x44c   :  { %v7369_v9 = vadd.f32 %v7368_v47, %v7367_v3  ;;  %v6249_v39 = vadd.f32 %v7388_v31, %v6208_v36 }
 0x44e   :  { %v6211_v55 = vadd.f32 %v7369_v9, %v6170_v28 }
 0x450   :  { %v6252_v18 = vadd.f32 %v7391_v7, %v6211_v55 }
 0x465   :  { %v7408_v0 = vpop.f32.mrf.mxu0 }
 0x467   :  { %v7409_v34 = vpop.f32.mrf.mxu0 }
 0x468   :  { %v7410_v41 = vadd.f32 %v7409_v34, %v7408_v0 }
 0x469   :  { %v7411_v60 = vpop.f32.mrf.mxu0 }
 0x46a   :  { %v6290_v38 = vadd.f32 %v7410_v41, %v6249_v39 }
 0x46b   :  { %v7412_v30 = vpop.f32.mrf.mxu0 }
 0x46c   :  { %v7413_v58 = vadd.f32 %v7412_v30, %v7411_v60  ;;  %v6303_v37 = vadd.f32 %v7013_v1, %v6290_v38 }
 0x46e   :  { %v6293_v61 = vadd.f32 %v7413_v58, %v6252_v18  ;;  %v6305_v22 = vmax.f32 %v6303_v37, 0.0 }
 0x470   :  { %v6304_v45 = vadd.f32 %v7013_v1, %v6293_v61 }
 0x472   :  { %v6306_v59 = vmax.f32 %v6304_v45, 0.0 }
 0x474   :  { %v6307_v29 = vpack.c.bf16 %v6306_v59, %v6305_v22 }
 0x476   :  { %7452 = vmatmul.mubr.bf16.vlgmr.msra.gmra.mxu1 %v6307_v29 }
 0x536   :  { %v6413_v54 = vpop.f32.mrf.mxu1 }
 0x537   :  { %v6414_v16 = vadd.f32 %v7014_v12, %v6413_v54 }
 0x538   :  { %v7453_v49 = vpop.f32.mrf.mxu1 }
 0x539   :  { %6421 = vst.msk [vmem:[#allocation3] sm:$0xff] %vm6420_vm2, %v6414_v16 }
 0x53a   :  { %v6416_v32 = vpop.f32.mrf.mxu1 }
 0x53b   :  { %v6417_v50 = vadd.f32 %v7014_v12, %v6416_v32 }
 0x53c   :  { %v7454_v52 = vpop.f32.mrf.mxu1 }
 0x53d   :  { %6422 = vst.msk [vmem:[#allocation3 + $0x8] sm:$0xff] %vm6420_vm2, %v6417_v50 }
 0x53e   :  { %7998 = shalt.err (!%p7995_p4)
}
 0x53f   :  { %s8013_s13 = smov 128   ;;  %s8014_s15 = smov 8  }
 0x540   :  { %6434 = dma.vmem_to_hbm [thread:$0]  %s6429_s11, 256, %s11176_s14, [#allocation4], %s8013_s13, %s8013_s13, %s8014_s15  }
 0x541   :  { %8007 = dma.done.wait [#allocation4], 256  }
 0x542   :  { %8008 = vsyncadd [#allocation4], 4294967040 }
 0x543   :  { %6438 = vsyncpa [#allocation4], 1 }

</bundles_post_ra>
